<compile_context>
chip_gen: v7x
topology: tpu7x:2x2x1
jax: 0.10.0
libtpu: 0.0.40
codegen_flags: <defaults>
</compile_context>

<pallas_src>
import jax
import jax.numpy as jnp
import numpy as np
from jax.experimental import pallas as pl
from jax.experimental.pallas import tpu as pltpu


_TAPS = tuple((ki - 1, kj - 1) for ki in range(3) for kj in range(3))
_NC_TAPS = tuple(t for t in _TAPS if t != (0, 0))          # 8 non-center taps


def make_invnet_kernel(Cin, Ch, Cout, H, W):
    HW = H * W

    def kernel(x_ref, mask_ref, w1_ref, b1_ref, w2_ref, b2_ref, o_ref):
        # x_ref   : (Cin, Bblk, HW)  VMEM  8 images, one per sublane, lane-dense
        # mask_ref: (8, HW)          VMEM  combined 0/1 edge mask per tap
        # w1_ref  : (Ch*Cin*9,)      SMEM  [co*Cin*9 + ci*9 + ki*3 + kj]
        # b1_ref  : (Ch,)            SMEM
        # w2_ref  : (Cout*Ch*9,)     SMEM  [co*Ch*9 + ch*9 + ki*3 + kj]
        # b2_ref  : (Cout,)          SMEM
        # o_ref   : (Cout, Bblk, HW) VMEM

        # Per-tap combined edge masks, hoisted once per grid step (amortized
        # over the 8 images in this block).
        tap_mask = {(0, 0): None}
        for i, t in enumerate(_NC_TAPS):
            tap_mask[t] = mask_ref[pl.ds(i, 1), :]                 # (1, HW)

        def rolled(plane, dr, dc):
            # plane[..., p] -> plane[..., p + dr*W + dc] (wrap handled by mask).
            s = dr * W + dc
            return plane if s == 0 else pltpu.roll(plane, (-s) % HW, axis=1)

        x_planes = [x_ref[ci] for ci in range(Cin)]                # (Bblk, HW)

        # ---- conv1 (3x3, 'same') + bias + ReLU ------------------------------
        # One roll+mask per (ci, tap), reused across all Ch output channels;
        # weights come from SMEM scalars (broadcast multiply on the VPU).
        h_acc = [None] * Ch
        for ci in range(Cin):
            for ti, (dr, dc) in enumerate(_TAPS):
                sh = rolled(x_planes[ci], dr, dc)
                m = tap_mask[(dr, dc)]
                if m is not None:
                    sh = sh * m
                for co in range(Ch):
                    w = w1_ref[co * Cin * 9 + ci * 9 + ti]
                    contrib = w * sh                               # (Bblk, HW)
                    h_acc[co] = contrib if h_acc[co] is None else h_acc[co] + contrib
        hidden = [jnp.maximum(h_acc[co] + b1_ref[co], 0.0) for co in range(Ch)]

        # ---- conv2 (3x3, 'same') + bias + residual --------------------------
        # One roll per (ch, tap); the edge mask is applied once per tap to the
        # channel-summed partial (linearity), not per hidden channel.
        acc2 = [None] * Cout
        for ti, (dr, dc) in enumerate(_TAPS):
            m = tap_mask[(dr, dc)]
            tap_acc = [None] * Cout
            for ch in range(Ch):
                sh = rolled(hidden[ch], dr, dc)
                for co in range(Cout):
                    w = w2_ref[co * Ch * 9 + ch * 9 + ti]
                    contrib = w * sh
                    tap_acc[co] = contrib if tap_acc[co] is None else tap_acc[co] + contrib
            for co in range(Cout):
                t = tap_acc[co] if m is None else tap_acc[co] * m
                acc2[co] = t if acc2[co] is None else acc2[co] + t

        for co in range(Cout):
            o_ref[co] = x_planes[co] + acc2[co] + b2_ref[co]       # full vst

    return kernel


def invnet_forward(x, w1, b1, w2, b2, *, bblk=8):
    """x: (B, Cin, H, W) f32; w1: (Ch, Cin, 3, 3); b1: (Ch,);
       w2: (Cout, Ch, 3, 3); b2: (Cout,)."""
    B, Cin, H, W = x.shape
    Ch = w1.shape[0]
    Cout = w2.shape[0]
    assert w1.shape == (Ch, Cin, 3, 3) and w2.shape == (Cout, Ch, 3, 3)
    assert b1.shape == (Ch,) and b2.shape == (Cout,)
    # Residual add requires matching channel counts.
    assert Cout == Cin, "InvNet residual denoiser requires Cout == Cin"
    HW = H * W

    # Batch-in-sublanes layout: (Cin, B, HW), batch padded to a multiple of 8.
    BP = -(-B // bblk) * bblk
    x_t = jnp.transpose(x.reshape(B, Cin, HW), (1, 0, 2))          # (Cin, B, HW)
    if BP != B:
        x_t = jnp.pad(x_t, ((0, 0), (0, BP - B), (0, 0)))

    # Flat SMEM weight / bias tables (scalar reads inside the kernel).
    w1_flat = w1.reshape(Ch * Cin * 9)
    w2_flat = w2.reshape(Cout * Ch * 9)

    # Combined 0/1 edge-validity mask per non-center tap, built host-side over
    # the flattened spatial axis (no in-kernel integer div/mod or mask products).
    rows = np.repeat(np.arange(H), W)
    cols = np.tile(np.arange(W), H)
    mask_rows = []
    for dr, dc in _NC_TAPS:
        valid = ((rows + dr >= 0) & (rows + dr < H)
                 & (cols + dc >= 0) & (cols + dc < W))
        mask_rows.append(valid.astype(np.float32))
    masks = jnp.asarray(np.stack(mask_rows))                       # (8, HW)

    kernel = make_invnet_kernel(Cin, Ch, Cout, H, W)
    out = pl.pallas_call(
        kernel,
        out_shape=jax.ShapeDtypeStruct((Cout, BP, HW), jnp.float32),
        grid_spec=pltpu.PrefetchScalarGridSpec(
            num_scalar_prefetch=0,
            grid=(BP // bblk,),
            in_specs=[
                pl.BlockSpec((Cin, bblk, HW), lambda b: (0, b, 0)),  # x
                pl.BlockSpec((8, HW), lambda b: (0, 0)),             # tap masks
                pl.BlockSpec(memory_space=pltpu.SMEM),                # w1
                pl.BlockSpec(memory_space=pltpu.SMEM),                # b1
                pl.BlockSpec(memory_space=pltpu.SMEM),                # w2
                pl.BlockSpec(memory_space=pltpu.SMEM),                # b2
            ],
            out_specs=pl.BlockSpec((Cout, bblk, HW), lambda b: (0, b, 0)),
        ),
        compiler_params=pltpu.CompilerParams(
            dimension_semantics=("parallel",),
            vmem_limit_bytes=32 * 1024 * 1024,
        ),
    )(x_t, masks, w1_flat, b1, w2_flat, b2)
    out = jnp.transpose(out, (1, 0, 2))[:B]
    return out.reshape(B, Cout, H, W)


def invnet_reference(x, w1, b1, w2, b2):
    """Pure-JAX reference of the same residual denoiser (for validation)."""
    def conv(z, w, b):
        y = jax.lax.conv_general_dilated(
            z, w, window_strides=(1, 1), padding=((1, 1), (1, 1)),
            dimension_numbers=("NCHW", "OIHW", "NCHW"))
        return y + b[None, :, None, None]

    h = jax.nn.relu(conv(x, w1, b1))
    return x + conv(h, w2, b2)


if __name__ == "__main__":
    # B=16 -> grid of 2 blocks of 8 sublane-packed images (both TCs on v7x).
    B, Cin, Ch, Cout, H, W = 16, 1, 8, 1, 16, 16

    key = jax.random.PRNGKey(0)
    kx, k1, kb1, k2, kb2 = jax.random.split(key, 5)
    x = jax.random.normal(kx, (B, Cin, H, W), dtype=jnp.float32)
    w1 = 0.1 * jax.random.normal(k1, (Ch, Cin, 3, 3), dtype=jnp.float32)
    b1 = 0.1 * jax.random.normal(kb1, (Ch,), dtype=jnp.float32)
    w2 = 0.1 * jax.random.normal(k2, (Cout, Ch, 3, 3), dtype=jnp.float32)
    b2 = 0.1 * jax.random.normal(kb2, (Cout,), dtype=jnp.float32)

    out = jax.block_until_ready(invnet_forward(x, w1, b1, w2, b2))
    ref = invnet_reference(x, w1, b1, w2, b2)
    np.testing.assert_allclose(np.asarray(out), np.asarray(ref),
                               atol=1e-5, rtol=1e-5)
    print("KERNEL_OK")
</pallas_src>

<mosaic_0001>
module attributes {stable_mosaic.version = 11 : i64} {
  func.func @kernel(%arg0: i32, %arg1: memref<1x8x256xf32, #tpu.memory_space<vmem>>, %arg2: memref<8x256xf32, #tpu.memory_space<vmem>>, %arg3: memref<72xf32, #tpu.memory_space<smem>>, %arg4: memref<8xf32, #tpu.memory_space<smem>>, %arg5: memref<72xf32, #tpu.memory_space<smem>>, %arg6: memref<1xf32, #tpu.memory_space<smem>>, %arg7: memref<1x8x256xf32, #tpu.memory_space<vmem>>) attributes {dimension_semantics = [#tpu.dimension_semantics<parallel>], iteration_bounds = array<i64: 2>, scalar_prefetch = 0 : i64, scratch_operands = 0 : i64, tpu.core_type = #tpu.core_type<tc>, window_params = [{transform_indices = @transform_0, window_bounds = array<i64: 1, 8, 256>}, {pipeline_mode = #tpu.pipeline_mode<synchronous>, transform_indices = @transform_1, window_bounds = array<i64: 8, 256>}, {transform_indices = @transform_2, window_bounds = array<i64: 72>}, {transform_indices = @transform_3, window_bounds = array<i64: 8>}, {transform_indices = @transform_4, window_bounds = array<i64: 72>}, {transform_indices = @transform_5, window_bounds = array<i64: 1>}, {transform_indices = @transform_6, window_bounds = array<i64: 1, 8, 256>}]} {
    %c0 = arith.constant 0 : index
    %c0_0 = arith.constant 0 : index
    %0 = vector.load %arg2[%c0, %c0_0] : memref<8x256xf32, #tpu.memory_space<vmem>>, vector<1x256xf32>
    %c1 = arith.constant 1 : index
    %c0_1 = arith.constant 0 : index
    %1 = vector.load %arg2[%c1, %c0_1] : memref<8x256xf32, #tpu.memory_space<vmem>>, vector<1x256xf32>
    %c2 = arith.constant 2 : index
    %c0_2 = arith.constant 0 : index
    %2 = vector.load %arg2[%c2, %c0_2] : memref<8x256xf32, #tpu.memory_space<vmem>>, vector<1x256xf32>
    %c3 = arith.constant 3 : index
    %c0_3 = arith.constant 0 : index
    %3 = vector.load %arg2[%c3, %c0_3] : memref<8x256xf32, #tpu.memory_space<vmem>>, vector<1x256xf32>
    %c4 = arith.constant 4 : index
    %c0_4 = arith.constant 0 : index
    %4 = vector.load %arg2[%c4, %c0_4] : memref<8x256xf32, #tpu.memory_space<vmem>>, vector<1x256xf32>
    %c5 = arith.constant 5 : index
    %c0_5 = arith.constant 0 : index
    %5 = vector.load %arg2[%c5, %c0_5] : memref<8x256xf32, #tpu.memory_space<vmem>>, vector<1x256xf32>
    %c6 = arith.constant 6 : index
    %c0_6 = arith.constant 0 : index
    %6 = vector.load %arg2[%c6, %c0_6] : memref<8x256xf32, #tpu.memory_space<vmem>>, vector<1x256xf32>
    %c7 = arith.constant 7 : index
    %c0_7 = arith.constant 0 : index
    %7 = vector.load %arg2[%c7, %c0_7] : memref<8x256xf32, #tpu.memory_space<vmem>>, vector<1x256xf32>
    %c0_8 = arith.constant 0 : index
    %c0_9 = arith.constant 0 : index
    %c0_10 = arith.constant 0 : index
    %8 = vector.load %arg1[%c0_8, %c0_9, %c0_10] : memref<1x8x256xf32, #tpu.memory_space<vmem>>, vector<1x8x256xf32>
    %9 = vector.shape_cast %8 : vector<1x8x256xf32> to vector<8x256xf32>
    %c17_i32 = arith.constant 17 : i32
    %10 = tpu.dynamic_rotate %9 by %c17_i32 dim 1 : vector<8x256xf32>, i32 -> vector<8x256xf32>
    %11 = vector.broadcast %0 : vector<1x256xf32> to vector<8x256xf32>
    %12 = arith.mulf %10, %11 : vector<8x256xf32>
    %c0_11 = arith.constant 0 : index
    %13 = memref.load %arg3[%c0_11] : memref<72xf32, #tpu.memory_space<smem>>
    %14 = vector.broadcast %13 : f32 to vector<8x256xf32>
    %15 = arith.mulf %14, %12 : vector<8x256xf32>
    %c9 = arith.constant 9 : index
    %16 = memref.load %arg3[%c9] : memref<72xf32, #tpu.memory_space<smem>>
    %17 = vector.broadcast %16 : f32 to vector<8x256xf32>
    %18 = arith.mulf %17, %12 : vector<8x256xf32>
    %c18 = arith.constant 18 : index
    %19 = memref.load %arg3[%c18] : memref<72xf32, #tpu.memory_space<smem>>
    %20 = vector.broadcast %19 : f32 to vector<8x256xf32>
    %21 = arith.mulf %20, %12 : vector<8x256xf32>
    %c27 = arith.constant 27 : index
    %22 = memref.load %arg3[%c27] : memref<72xf32, #tpu.memory_space<smem>>
    %23 = vector.broadcast %22 : f32 to vector<8x256xf32>
    %24 = arith.mulf %23, %12 : vector<8x256xf32>
    %c36 = arith.constant 36 : index
    %25 = memref.load %arg3[%c36] : memref<72xf32, #tpu.memory_space<smem>>
    %26 = vector.broadcast %25 : f32 to vector<8x256xf32>
    %27 = arith.mulf %26, %12 : vector<8x256xf32>
    %c45 = arith.constant 45 : index
    %28 = memref.load %arg3[%c45] : memref<72xf32, #tpu.memory_space<smem>>
    %29 = vector.broadcast %28 : f32 to vector<8x256xf32>
    %30 = arith.mulf %29, %12 : vector<8x256xf32>
    %c54 = arith.constant 54 : index
    %31 = memref.load %arg3[%c54] : memref<72xf32, #tpu.memory_space<smem>>
    %32 = vector.broadcast %31 : f32 to vector<8x256xf32>
    %33 = arith.mulf %32, %12 : vector<8x256xf32>
    %c63 = arith.constant 63 : index
    %34 = memref.load %arg3[%c63] : memref<72xf32, #tpu.memory_space<smem>>
    %35 = vector.broadcast %34 : f32 to vector<8x256xf32>
    %36 = arith.mulf %35, %12 : vector<8x256xf32>
    %c16_i32 = arith.constant 16 : i32
    %37 = tpu.dynamic_rotate %9 by %c16_i32 dim 1 : vector<8x256xf32>, i32 -> vector<8x256xf32>
    %38 = vector.broadcast %1 : vector<1x256xf32> to vector<8x256xf32>
    %39 = arith.mulf %37, %38 : vector<8x256xf32>
    %c1_12 = arith.constant 1 : index
    %40 = memref.load %arg3[%c1_12] : memref<72xf32, #tpu.memory_space<smem>>
    %41 = vector.broadcast %40 : f32 to vector<8x256xf32>
    %42 = arith.mulf %41, %39 : vector<8x256xf32>
    %43 = arith.addf %15, %42 : vector<8x256xf32>
    %c10 = arith.constant 10 : index
    %44 = memref.load %arg3[%c10] : memref<72xf32, #tpu.memory_space<smem>>
    %45 = vector.broadcast %44 : f32 to vector<8x256xf32>
    %46 = arith.mulf %45, %39 : vector<8x256xf32>
    %47 = arith.addf %18, %46 : vector<8x256xf32>
    %c19 = arith.constant 19 : index
    %48 = memref.load %arg3[%c19] : memref<72xf32, #tpu.memory_space<smem>>
    %49 = vector.broadcast %48 : f32 to vector<8x256xf32>
    %50 = arith.mulf %49, %39 : vector<8x256xf32>
    %51 = arith.addf %21, %50 : vector<8x256xf32>
    %c28 = arith.constant 28 : index
    %52 = memref.load %arg3[%c28] : memref<72xf32, #tpu.memory_space<smem>>
    %53 = vector.broadcast %52 : f32 to vector<8x256xf32>
    %54 = arith.mulf %53, %39 : vector<8x256xf32>
    %55 = arith.addf %24, %54 : vector<8x256xf32>
    %c37 = arith.constant 37 : index
    %56 = memref.load %arg3[%c37] : memref<72xf32, #tpu.memory_space<smem>>
    %57 = vector.broadcast %56 : f32 to vector<8x256xf32>
    %58 = arith.mulf %57, %39 : vector<8x256xf32>
    %59 = arith.addf %27, %58 : vector<8x256xf32>
    %c46 = arith.constant 46 : index
    %60 = memref.load %arg3[%c46] : memref<72xf32, #tpu.memory_space<smem>>
    %61 = vector.broadcast %60 : f32 to vector<8x256xf32>
    %62 = arith.mulf %61, %39 : vector<8x256xf32>
    %63 = arith.addf %30, %62 : vector<8x256xf32>
    %c55 = arith.constant 55 : index
    %64 = memref.load %arg3[%c55] : memref<72xf32, #tpu.memory_space<smem>>
    %65 = vector.broadcast %64 : f32 to vector<8x256xf32>
    %66 = arith.mulf %65, %39 : vector<8x256xf32>
    %67 = arith.addf %33, %66 : vector<8x256xf32>
    %c64 = arith.constant 64 : index
    %68 = memref.load %arg3[%c64] : memref<72xf32, #tpu.memory_space<smem>>
    %69 = vector.broadcast %68 : f32 to vector<8x256xf32>
    %70 = arith.mulf %69, %39 : vector<8x256xf32>
    %71 = arith.addf %36, %70 : vector<8x256xf32>
    %c15_i32 = arith.constant 15 : i32
    %72 = tpu.dynamic_rotate %9 by %c15_i32 dim 1 : vector<8x256xf32>, i32 -> vector<8x256xf32>
    %73 = vector.broadcast %2 : vector<1x256xf32> to vector<8x256xf32>
    %74 = arith.mulf %72, %73 : vector<8x256xf32>
    %c2_13 = arith.constant 2 : index
    %75 = memref.load %arg3[%c2_13] : memref<72xf32, #tpu.memory_space<smem>>
    %76 = vector.broadcast %75 : f32 to vector<8x256xf32>
    %77 = arith.mulf %76, %74 : vector<8x256xf32>
    %78 = arith.addf %43, %77 : vector<8x256xf32>
    %c11 = arith.constant 11 : index
    %79 = memref.load %arg3[%c11] : memref<72xf32, #tpu.memory_space<smem>>
    %80 = vector.broadcast %79 : f32 to vector<8x256xf32>
    %81 = arith.mulf %80, %74 : vector<8x256xf32>
    %82 = arith.addf %47, %81 : vector<8x256xf32>
    %c20 = arith.constant 20 : index
    %83 = memref.load %arg3[%c20] : memref<72xf32, #tpu.memory_space<smem>>
    %84 = vector.broadcast %83 : f32 to vector<8x256xf32>
    %85 = arith.mulf %84, %74 : vector<8x256xf32>
    %86 = arith.addf %51, %85 : vector<8x256xf32>
    %c29 = arith.constant 29 : index
    %87 = memref.load %arg3[%c29] : memref<72xf32, #tpu.memory_space<smem>>
    %88 = vector.broadcast %87 : f32 to vector<8x256xf32>
    %89 = arith.mulf %88, %74 : vector<8x256xf32>
    %90 = arith.addf %55, %89 : vector<8x256xf32>
    %c38 = arith.constant 38 : index
    %91 = memref.load %arg3[%c38] : memref<72xf32, #tpu.memory_space<smem>>
    %92 = vector.broadcast %91 : f32 to vector<8x256xf32>
    %93 = arith.mulf %92, %74 : vector<8x256xf32>
    %94 = arith.addf %59, %93 : vector<8x256xf32>
    %c47 = arith.constant 47 : index
    %95 = memref.load %arg3[%c47] : memref<72xf32, #tpu.memory_space<smem>>
    %96 = vector.broadcast %95 : f32 to vector<8x256xf32>
    %97 = arith.mulf %96, %74 : vector<8x256xf32>
    %98 = arith.addf %63, %97 : vector<8x256xf32>
    %c56 = arith.constant 56 : index
    %99 = memref.load %arg3[%c56] : memref<72xf32, #tpu.memory_space<smem>>
    %100 = vector.broadcast %99 : f32 to vector<8x256xf32>
    %101 = arith.mulf %100, %74 : vector<8x256xf32>
    %102 = arith.addf %67, %101 : vector<8x256xf32>
    %c65 = arith.constant 65 : index
    %103 = memref.load %arg3[%c65] : memref<72xf32, #tpu.memory_space<smem>>
    %104 = vector.broadcast %103 : f32 to vector<8x256xf32>
    %105 = arith.mulf %104, %74 : vector<8x256xf32>
    %106 = arith.addf %71, %105 : vector<8x256xf32>
    %c1_i32 = arith.constant 1 : i32
    %107 = tpu.dynamic_rotate %9 by %c1_i32 dim 1 : vector<8x256xf32>, i32 -> vector<8x256xf32>
    %108 = vector.broadcast %3 : vector<1x256xf32> to vector<8x256xf32>
    %109 = arith.mulf %107, %108 : vector<8x256xf32>
    %c3_14 = arith.constant 3 : index
    %110 = memref.load %arg3[%c3_14] : memref<72xf32, #tpu.memory_space<smem>>
    %111 = vector.broadcast %110 : f32 to vector<8x256xf32>
    %112 = arith.mulf %111, %109 : vector<8x256xf32>
    %113 = arith.addf %78, %112 : vector<8x256xf32>
    %c12 = arith.constant 12 : index
    %114 = memref.load %arg3[%c12] : memref<72xf32, #tpu.memory_space<smem>>
    %115 = vector.broadcast %114 : f32 to vector<8x256xf32>
    %116 = arith.mulf %115, %109 : vector<8x256xf32>
    %117 = arith.addf %82, %116 : vector<8x256xf32>
    %c21 = arith.constant 21 : index
    %118 = memref.load %arg3[%c21] : memref<72xf32, #tpu.memory_space<smem>>
    %119 = vector.broadcast %118 : f32 to vector<8x256xf32>
    %120 = arith.mulf %119, %109 : vector<8x256xf32>
    %121 = arith.addf %86, %120 : vector<8x256xf32>
    %c30 = arith.constant 30 : index
    %122 = memref.load %arg3[%c30] : memref<72xf32, #tpu.memory_space<smem>>
    %123 = vector.broadcast %122 : f32 to vector<8x256xf32>
    %124 = arith.mulf %123, %109 : vector<8x256xf32>
    %125 = arith.addf %90, %124 : vector<8x256xf32>
    %c39 = arith.constant 39 : index
    %126 = memref.load %arg3[%c39] : memref<72xf32, #tpu.memory_space<smem>>
    %127 = vector.broadcast %126 : f32 to vector<8x256xf32>
    %128 = arith.mulf %127, %109 : vector<8x256xf32>
    %129 = arith.addf %94, %128 : vector<8x256xf32>
    %c48 = arith.constant 48 : index
    %130 = memref.load %arg3[%c48] : memref<72xf32, #tpu.memory_space<smem>>
    %131 = vector.broadcast %130 : f32 to vector<8x256xf32>
    %132 = arith.mulf %131, %109 : vector<8x256xf32>
    %133 = arith.addf %98, %132 : vector<8x256xf32>
    %c57 = arith.constant 57 : index
    %134 = memref.load %arg3[%c57] : memref<72xf32, #tpu.memory_space<smem>>
    %135 = vector.broadcast %134 : f32 to vector<8x256xf32>
    %136 = arith.mulf %135, %109 : vector<8x256xf32>
    %137 = arith.addf %102, %136 : vector<8x256xf32>
    %c66 = arith.constant 66 : index
    %138 = memref.load %arg3[%c66] : memref<72xf32, #tpu.memory_space<smem>>
    %139 = vector.broadcast %138 : f32 to vector<8x256xf32>
    %140 = arith.mulf %139, %109 : vector<8x256xf32>
    %141 = arith.addf %106, %140 : vector<8x256xf32>
    %c4_15 = arith.constant 4 : index
    %142 = memref.load %arg3[%c4_15] : memref<72xf32, #tpu.memory_space<smem>>
    %143 = vector.broadcast %142 : f32 to vector<8x256xf32>
    %144 = arith.mulf %143, %9 : vector<8x256xf32>
    %145 = arith.addf %113, %144 : vector<8x256xf32>
    %c13 = arith.constant 13 : index
    %146 = memref.load %arg3[%c13] : memref<72xf32, #tpu.memory_space<smem>>
    %147 = vector.broadcast %146 : f32 to vector<8x256xf32>
    %148 = arith.mulf %147, %9 : vector<8x256xf32>
    %149 = arith.addf %117, %148 : vector<8x256xf32>
    %c22 = arith.constant 22 : index
    %150 = memref.load %arg3[%c22] : memref<72xf32, #tpu.memory_space<smem>>
    %151 = vector.broadcast %150 : f32 to vector<8x256xf32>
    %152 = arith.mulf %151, %9 : vector<8x256xf32>
    %153 = arith.addf %121, %152 : vector<8x256xf32>
    %c31 = arith.constant 31 : index
    %154 = memref.load %arg3[%c31] : memref<72xf32, #tpu.memory_space<smem>>
    %155 = vector.broadcast %154 : f32 to vector<8x256xf32>
    %156 = arith.mulf %155, %9 : vector<8x256xf32>
    %157 = arith.addf %125, %156 : vector<8x256xf32>
    %c40 = arith.constant 40 : index
    %158 = memref.load %arg3[%c40] : memref<72xf32, #tpu.memory_space<smem>>
    %159 = vector.broadcast %158 : f32 to vector<8x256xf32>
    %160 = arith.mulf %159, %9 : vector<8x256xf32>
    %161 = arith.addf %129, %160 : vector<8x256xf32>
    %c49 = arith.constant 49 : index
    %162 = memref.load %arg3[%c49] : memref<72xf32, #tpu.memory_space<smem>>
    %163 = vector.broadcast %162 : f32 to vector<8x256xf32>
    %164 = arith.mulf %163, %9 : vector<8x256xf32>
    %165 = arith.addf %133, %164 : vector<8x256xf32>
    %c58 = arith.constant 58 : index
    %166 = memref.load %arg3[%c58] : memref<72xf32, #tpu.memory_space<smem>>
    %167 = vector.broadcast %166 : f32 to vector<8x256xf32>
    %168 = arith.mulf %167, %9 : vector<8x256xf32>
    %169 = arith.addf %137, %168 : vector<8x256xf32>
    %c67 = arith.constant 67 : index
    %170 = memref.load %arg3[%c67] : memref<72xf32, #tpu.memory_space<smem>>
    %171 = vector.broadcast %170 : f32 to vector<8x256xf32>
    %172 = arith.mulf %171, %9 : vector<8x256xf32>
    %173 = arith.addf %141, %172 : vector<8x256xf32>
    %c255_i32 = arith.constant 255 : i32
    %174 = tpu.dynamic_rotate %9 by %c255_i32 dim 1 : vector<8x256xf32>, i32 -> vector<8x256xf32>
    %175 = vector.broadcast %4 : vector<1x256xf32> to vector<8x256xf32>
    %176 = arith.mulf %174, %175 : vector<8x256xf32>
    %c5_16 = arith.constant 5 : index
    %177 = memref.load %arg3[%c5_16] : memref<72xf32, #tpu.memory_space<smem>>
    %178 = vector.broadcast %177 : f32 to vector<8x256xf32>
    %179 = arith.mulf %178, %176 : vector<8x256xf32>
    %180 = arith.addf %145, %179 : vector<8x256xf32>
    %c14 = arith.constant 14 : index
    %181 = memref.load %arg3[%c14] : memref<72xf32, #tpu.memory_space<smem>>
    %182 = vector.broadcast %181 : f32 to vector<8x256xf32>
    %183 = arith.mulf %182, %176 : vector<8x256xf32>
    %184 = arith.addf %149, %183 : vector<8x256xf32>
    %c23 = arith.constant 23 : index
    %185 = memref.load %arg3[%c23] : memref<72xf32, #tpu.memory_space<smem>>
    %186 = vector.broadcast %185 : f32 to vector<8x256xf32>
    %187 = arith.mulf %186, %176 : vector<8x256xf32>
    %188 = arith.addf %153, %187 : vector<8x256xf32>
    %c32 = arith.constant 32 : index
    %189 = memref.load %arg3[%c32] : memref<72xf32, #tpu.memory_space<smem>>
    %190 = vector.broadcast %189 : f32 to vector<8x256xf32>
    %191 = arith.mulf %190, %176 : vector<8x256xf32>
    %192 = arith.addf %157, %191 : vector<8x256xf32>
    %c41 = arith.constant 41 : index
    %193 = memref.load %arg3[%c41] : memref<72xf32, #tpu.memory_space<smem>>
    %194 = vector.broadcast %193 : f32 to vector<8x256xf32>
    %195 = arith.mulf %194, %176 : vector<8x256xf32>
    %196 = arith.addf %161, %195 : vector<8x256xf32>
    %c50 = arith.constant 50 : index
    %197 = memref.load %arg3[%c50] : memref<72xf32, #tpu.memory_space<smem>>
    %198 = vector.broadcast %197 : f32 to vector<8x256xf32>
    %199 = arith.mulf %198, %176 : vector<8x256xf32>
    %200 = arith.addf %165, %199 : vector<8x256xf32>
    %c59 = arith.constant 59 : index
    %201 = memref.load %arg3[%c59] : memref<72xf32, #tpu.memory_space<smem>>
    %202 = vector.broadcast %201 : f32 to vector<8x256xf32>
    %203 = arith.mulf %202, %176 : vector<8x256xf32>
    %204 = arith.addf %169, %203 : vector<8x256xf32>
    %c68 = arith.constant 68 : index
    %205 = memref.load %arg3[%c68] : memref<72xf32, #tpu.memory_space<smem>>
    %206 = vector.broadcast %205 : f32 to vector<8x256xf32>
    %207 = arith.mulf %206, %176 : vector<8x256xf32>
    %208 = arith.addf %173, %207 : vector<8x256xf32>
    %c241_i32 = arith.constant 241 : i32
    %209 = tpu.dynamic_rotate %9 by %c241_i32 dim 1 : vector<8x256xf32>, i32 -> vector<8x256xf32>
    %210 = vector.broadcast %5 : vector<1x256xf32> to vector<8x256xf32>
    %211 = arith.mulf %209, %210 : vector<8x256xf32>
    %c6_17 = arith.constant 6 : index
    %212 = memref.load %arg3[%c6_17] : memref<72xf32, #tpu.memory_space<smem>>
    %213 = vector.broadcast %212 : f32 to vector<8x256xf32>
    %214 = arith.mulf %213, %211 : vector<8x256xf32>
    %215 = arith.addf %180, %214 : vector<8x256xf32>
    %c15 = arith.constant 15 : index
    %216 = memref.load %arg3[%c15] : memref<72xf32, #tpu.memory_space<smem>>
    %217 = vector.broadcast %216 : f32 to vector<8x256xf32>
    %218 = arith.mulf %217, %211 : vector<8x256xf32>
    %219 = arith.addf %184, %218 : vector<8x256xf32>
    %c24 = arith.constant 24 : index
    %220 = memref.load %arg3[%c24] : memref<72xf32, #tpu.memory_space<smem>>
    %221 = vector.broadcast %220 : f32 to vector<8x256xf32>
    %222 = arith.mulf %221, %211 : vector<8x256xf32>
    %223 = arith.addf %188, %222 : vector<8x256xf32>
    %c33 = arith.constant 33 : index
    %224 = memref.load %arg3[%c33] : memref<72xf32, #tpu.memory_space<smem>>
    %225 = vector.broadcast %224 : f32 to vector<8x256xf32>
    %226 = arith.mulf %225, %211 : vector<8x256xf32>
    %227 = arith.addf %192, %226 : vector<8x256xf32>
    %c42 = arith.constant 42 : index
    %228 = memref.load %arg3[%c42] : memref<72xf32, #tpu.memory_space<smem>>
    %229 = vector.broadcast %228 : f32 to vector<8x256xf32>
    %230 = arith.mulf %229, %211 : vector<8x256xf32>
    %231 = arith.addf %196, %230 : vector<8x256xf32>
    %c51 = arith.constant 51 : index
    %232 = memref.load %arg3[%c51] : memref<72xf32, #tpu.memory_space<smem>>
    %233 = vector.broadcast %232 : f32 to vector<8x256xf32>
    %234 = arith.mulf %233, %211 : vector<8x256xf32>
    %235 = arith.addf %200, %234 : vector<8x256xf32>
    %c60 = arith.constant 60 : index
    %236 = memref.load %arg3[%c60] : memref<72xf32, #tpu.memory_space<smem>>
    %237 = vector.broadcast %236 : f32 to vector<8x256xf32>
    %238 = arith.mulf %237, %211 : vector<8x256xf32>
    %239 = arith.addf %204, %238 : vector<8x256xf32>
    %c69 = arith.constant 69 : index
    %240 = memref.load %arg3[%c69] : memref<72xf32, #tpu.memory_space<smem>>
    %241 = vector.broadcast %240 : f32 to vector<8x256xf32>
    %242 = arith.mulf %241, %211 : vector<8x256xf32>
    %243 = arith.addf %208, %242 : vector<8x256xf32>
    %c240_i32 = arith.constant 240 : i32
    %244 = tpu.dynamic_rotate %9 by %c240_i32 dim 1 : vector<8x256xf32>, i32 -> vector<8x256xf32>
    %245 = vector.broadcast %6 : vector<1x256xf32> to vector<8x256xf32>
    %246 = arith.mulf %244, %245 : vector<8x256xf32>
    %c7_18 = arith.constant 7 : index
    %247 = memref.load %arg3[%c7_18] : memref<72xf32, #tpu.memory_space<smem>>
    %248 = vector.broadcast %247 : f32 to vector<8x256xf32>
    %249 = arith.mulf %248, %246 : vector<8x256xf32>
    %250 = arith.addf %215, %249 : vector<8x256xf32>
    %c16 = arith.constant 16 : index
    %251 = memref.load %arg3[%c16] : memref<72xf32, #tpu.memory_space<smem>>
    %252 = vector.broadcast %251 : f32 to vector<8x256xf32>
    %253 = arith.mulf %252, %246 : vector<8x256xf32>
    %254 = arith.addf %219, %253 : vector<8x256xf32>
    %c25 = arith.constant 25 : index
    %255 = memref.load %arg3[%c25] : memref<72xf32, #tpu.memory_space<smem>>
    %256 = vector.broadcast %255 : f32 to vector<8x256xf32>
    %257 = arith.mulf %256, %246 : vector<8x256xf32>
    %258 = arith.addf %223, %257 : vector<8x256xf32>
    %c34 = arith.constant 34 : index
    %259 = memref.load %arg3[%c34] : memref<72xf32, #tpu.memory_space<smem>>
    %260 = vector.broadcast %259 : f32 to vector<8x256xf32>
    %261 = arith.mulf %260, %246 : vector<8x256xf32>
    %262 = arith.addf %227, %261 : vector<8x256xf32>
    %c43 = arith.constant 43 : index
    %263 = memref.load %arg3[%c43] : memref<72xf32, #tpu.memory_space<smem>>
    %264 = vector.broadcast %263 : f32 to vector<8x256xf32>
    %265 = arith.mulf %264, %246 : vector<8x256xf32>
    %266 = arith.addf %231, %265 : vector<8x256xf32>
    %c52 = arith.constant 52 : index
    %267 = memref.load %arg3[%c52] : memref<72xf32, #tpu.memory_space<smem>>
    %268 = vector.broadcast %267 : f32 to vector<8x256xf32>
    %269 = arith.mulf %268, %246 : vector<8x256xf32>
    %270 = arith.addf %235, %269 : vector<8x256xf32>
    %c61 = arith.constant 61 : index
    %271 = memref.load %arg3[%c61] : memref<72xf32, #tpu.memory_space<smem>>
    %272 = vector.broadcast %271 : f32 to vector<8x256xf32>
    %273 = arith.mulf %272, %246 : vector<8x256xf32>
    %274 = arith.addf %239, %273 : vector<8x256xf32>
    %c70 = arith.constant 70 : index
    %275 = memref.load %arg3[%c70] : memref<72xf32, #tpu.memory_space<smem>>
    %276 = vector.broadcast %275 : f32 to vector<8x256xf32>
    %277 = arith.mulf %276, %246 : vector<8x256xf32>
    %278 = arith.addf %243, %277 : vector<8x256xf32>
    %c239_i32 = arith.constant 239 : i32
    %279 = tpu.dynamic_rotate %9 by %c239_i32 dim 1 : vector<8x256xf32>, i32 -> vector<8x256xf32>
    %280 = vector.broadcast %7 : vector<1x256xf32> to vector<8x256xf32>
    %281 = arith.mulf %279, %280 : vector<8x256xf32>
    %c8 = arith.constant 8 : index
    %282 = memref.load %arg3[%c8] : memref<72xf32, #tpu.memory_space<smem>>
    %283 = vector.broadcast %282 : f32 to vector<8x256xf32>
    %284 = arith.mulf %283, %281 : vector<8x256xf32>
    %285 = arith.addf %250, %284 : vector<8x256xf32>
    %c17 = arith.constant 17 : index
    %286 = memref.load %arg3[%c17] : memref<72xf32, #tpu.memory_space<smem>>
    %287 = vector.broadcast %286 : f32 to vector<8x256xf32>
    %288 = arith.mulf %287, %281 : vector<8x256xf32>
    %289 = arith.addf %254, %288 : vector<8x256xf32>
    %c26 = arith.constant 26 : index
    %290 = memref.load %arg3[%c26] : memref<72xf32, #tpu.memory_space<smem>>
    %291 = vector.broadcast %290 : f32 to vector<8x256xf32>
    %292 = arith.mulf %291, %281 : vector<8x256xf32>
    %293 = arith.addf %258, %292 : vector<8x256xf32>
    %c35 = arith.constant 35 : index
    %294 = memref.load %arg3[%c35] : memref<72xf32, #tpu.memory_space<smem>>
    %295 = vector.broadcast %294 : f32 to vector<8x256xf32>
    %296 = arith.mulf %295, %281 : vector<8x256xf32>
    %297 = arith.addf %262, %296 : vector<8x256xf32>
    %c44 = arith.constant 44 : index
    %298 = memref.load %arg3[%c44] : memref<72xf32, #tpu.memory_space<smem>>
    %299 = vector.broadcast %298 : f32 to vector<8x256xf32>
    %300 = arith.mulf %299, %281 : vector<8x256xf32>
    %301 = arith.addf %266, %300 : vector<8x256xf32>
    %c53 = arith.constant 53 : index
    %302 = memref.load %arg3[%c53] : memref<72xf32, #tpu.memory_space<smem>>
    %303 = vector.broadcast %302 : f32 to vector<8x256xf32>
    %304 = arith.mulf %303, %281 : vector<8x256xf32>
    %305 = arith.addf %270, %304 : vector<8x256xf32>
    %c62 = arith.constant 62 : index
    %306 = memref.load %arg3[%c62] : memref<72xf32, #tpu.memory_space<smem>>
    %307 = vector.broadcast %306 : f32 to vector<8x256xf32>
    %308 = arith.mulf %307, %281 : vector<8x256xf32>
    %309 = arith.addf %274, %308 : vector<8x256xf32>
    %c71 = arith.constant 71 : index
    %310 = memref.load %arg3[%c71] : memref<72xf32, #tpu.memory_space<smem>>
    %311 = vector.broadcast %310 : f32 to vector<8x256xf32>
    %312 = arith.mulf %311, %281 : vector<8x256xf32>
    %313 = arith.addf %278, %312 : vector<8x256xf32>
    %c0_19 = arith.constant 0 : index
    %314 = memref.load %arg4[%c0_19] : memref<8xf32, #tpu.memory_space<smem>>
    %315 = vector.broadcast %314 : f32 to vector<8x256xf32>
    %316 = arith.addf %285, %315 : vector<8x256xf32>
    %cst = arith.constant 0.000000e+00 : f32
    %317 = vector.broadcast %cst : f32 to vector<8x256xf32>
    %318 = arith.maximumf %316, %317 : vector<8x256xf32>
    %c1_20 = arith.constant 1 : index
    %319 = memref.load %arg4[%c1_20] : memref<8xf32, #tpu.memory_space<smem>>
    %320 = vector.broadcast %319 : f32 to vector<8x256xf32>
    %321 = arith.addf %289, %320 : vector<8x256xf32>
    %cst_21 = arith.constant 0.000000e+00 : f32
    %322 = vector.broadcast %cst_21 : f32 to vector<8x256xf32>
    %323 = arith.maximumf %321, %322 : vector<8x256xf32>
    %c2_22 = arith.constant 2 : index
    %324 = memref.load %arg4[%c2_22] : memref<8xf32, #tpu.memory_space<smem>>
    %325 = vector.broadcast %324 : f32 to vector<8x256xf32>
    %326 = arith.addf %293, %325 : vector<8x256xf32>
    %cst_23 = arith.constant 0.000000e+00 : f32
    %327 = vector.broadcast %cst_23 : f32 to vector<8x256xf32>
    %328 = arith.maximumf %326, %327 : vector<8x256xf32>
    %c3_24 = arith.constant 3 : index
    %329 = memref.load %arg4[%c3_24] : memref<8xf32, #tpu.memory_space<smem>>
    %330 = vector.broadcast %329 : f32 to vector<8x256xf32>
    %331 = arith.addf %297, %330 : vector<8x256xf32>
    %cst_25 = arith.constant 0.000000e+00 : f32
    %332 = vector.broadcast %cst_25 : f32 to vector<8x256xf32>
    %333 = arith.maximumf %331, %332 : vector<8x256xf32>
    %c4_26 = arith.constant 4 : index
    %334 = memref.load %arg4[%c4_26] : memref<8xf32, #tpu.memory_space<smem>>
    %335 = vector.broadcast %334 : f32 to vector<8x256xf32>
    %336 = arith.addf %301, %335 : vector<8x256xf32>
    %cst_27 = arith.constant 0.000000e+00 : f32
    %337 = vector.broadcast %cst_27 : f32 to vector<8x256xf32>
    %338 = arith.maximumf %336, %337 : vector<8x256xf32>
    %c5_28 = arith.constant 5 : index
    %339 = memref.load %arg4[%c5_28] : memref<8xf32, #tpu.memory_space<smem>>
    %340 = vector.broadcast %339 : f32 to vector<8x256xf32>
    %341 = arith.addf %305, %340 : vector<8x256xf32>
    %cst_29 = arith.constant 0.000000e+00 : f32
    %342 = vector.broadcast %cst_29 : f32 to vector<8x256xf32>
    %343 = arith.maximumf %341, %342 : vector<8x256xf32>
    %c6_30 = arith.constant 6 : index
    %344 = memref.load %arg4[%c6_30] : memref<8xf32, #tpu.memory_space<smem>>
    %345 = vector.broadcast %344 : f32 to vector<8x256xf32>
    %346 = arith.addf %309, %345 : vector<8x256xf32>
    %cst_31 = arith.constant 0.000000e+00 : f32
    %347 = vector.broadcast %cst_31 : f32 to vector<8x256xf32>
    %348 = arith.maximumf %346, %347 : vector<8x256xf32>
    %c7_32 = arith.constant 7 : index
    %349 = memref.load %arg4[%c7_32] : memref<8xf32, #tpu.memory_space<smem>>
    %350 = vector.broadcast %349 : f32 to vector<8x256xf32>
    %351 = arith.addf %313, %350 : vector<8x256xf32>
    %cst_33 = arith.constant 0.000000e+00 : f32
    %352 = vector.broadcast %cst_33 : f32 to vector<8x256xf32>
    %353 = arith.maximumf %351, %352 : vector<8x256xf32>
    %c17_i32_34 = arith.constant 17 : i32
    %354 = tpu.dynamic_rotate %318 by %c17_i32_34 dim 1 : vector<8x256xf32>, i32 -> vector<8x256xf32>
    %c0_35 = arith.constant 0 : index
    %355 = memref.load %arg5[%c0_35] : memref<72xf32, #tpu.memory_space<smem>>
    %356 = vector.broadcast %355 : f32 to vector<8x256xf32>
    %357 = arith.mulf %356, %354 : vector<8x256xf32>
    %c17_i32_36 = arith.constant 17 : i32
    %358 = tpu.dynamic_rotate %323 by %c17_i32_36 dim 1 : vector<8x256xf32>, i32 -> vector<8x256xf32>
    %c9_37 = arith.constant 9 : index
    %359 = memref.load %arg5[%c9_37] : memref<72xf32, #tpu.memory_space<smem>>
    %360 = vector.broadcast %359 : f32 to vector<8x256xf32>
    %361 = arith.mulf %360, %358 : vector<8x256xf32>
    %362 = arith.addf %357, %361 : vector<8x256xf32>
    %c17_i32_38 = arith.constant 17 : i32
    %363 = tpu.dynamic_rotate %328 by %c17_i32_38 dim 1 : vector<8x256xf32>, i32 -> vector<8x256xf32>
    %c18_39 = arith.constant 18 : index
    %364 = memref.load %arg5[%c18_39] : memref<72xf32, #tpu.memory_space<smem>>
    %365 = vector.broadcast %364 : f32 to vector<8x256xf32>
    %366 = arith.mulf %365, %363 : vector<8x256xf32>
    %367 = arith.addf %362, %366 : vector<8x256xf32>
    %c17_i32_40 = arith.constant 17 : i32
    %368 = tpu.dynamic_rotate %333 by %c17_i32_40 dim 1 : vector<8x256xf32>, i32 -> vector<8x256xf32>
    %c27_41 = arith.constant 27 : index
    %369 = memref.load %arg5[%c27_41] : memref<72xf32, #tpu.memory_space<smem>>
    %370 = vector.broadcast %369 : f32 to vector<8x256xf32>
    %371 = arith.mulf %370, %368 : vector<8x256xf32>
    %372 = arith.addf %367, %371 : vector<8x256xf32>
    %c17_i32_42 = arith.constant 17 : i32
    %373 = tpu.dynamic_rotate %338 by %c17_i32_42 dim 1 : vector<8x256xf32>, i32 -> vector<8x256xf32>
    %c36_43 = arith.constant 36 : index
    %374 = memref.load %arg5[%c36_43] : memref<72xf32, #tpu.memory_space<smem>>
    %375 = vector.broadcast %374 : f32 to vector<8x256xf32>
    %376 = arith.mulf %375, %373 : vector<8x256xf32>
    %377 = arith.addf %372, %376 : vector<8x256xf32>
    %c17_i32_44 = arith.constant 17 : i32
    %378 = tpu.dynamic_rotate %343 by %c17_i32_44 dim 1 : vector<8x256xf32>, i32 -> vector<8x256xf32>
    %c45_45 = arith.constant 45 : index
    %379 = memref.load %arg5[%c45_45] : memref<72xf32, #tpu.memory_space<smem>>
    %380 = vector.broadcast %379 : f32 to vector<8x256xf32>
    %381 = arith.mulf %380, %378 : vector<8x256xf32>
    %382 = arith.addf %377, %381 : vector<8x256xf32>
    %c17_i32_46 = arith.constant 17 : i32
    %383 = tpu.dynamic_rotate %348 by %c17_i32_46 dim 1 : vector<8x256xf32>, i32 -> vector<8x256xf32>
    %c54_47 = arith.constant 54 : index
    %384 = memref.load %arg5[%c54_47] : memref<72xf32, #tpu.memory_space<smem>>
    %385 = vector.broadcast %384 : f32 to vector<8x256xf32>
    %386 = arith.mulf %385, %383 : vector<8x256xf32>
    %387 = arith.addf %382, %386 : vector<8x256xf32>
    %c17_i32_48 = arith.constant 17 : i32
    %388 = tpu.dynamic_rotate %353 by %c17_i32_48 dim 1 : vector<8x256xf32>, i32 -> vector<8x256xf32>
    %c63_49 = arith.constant 63 : index
    %389 = memref.load %arg5[%c63_49] : memref<72xf32, #tpu.memory_space<smem>>
    %390 = vector.broadcast %389 : f32 to vector<8x256xf32>
    %391 = arith.mulf %390, %388 : vector<8x256xf32>
    %392 = arith.addf %387, %391 : vector<8x256xf32>
    %393 = vector.broadcast %0 : vector<1x256xf32> to vector<8x256xf32>
    %394 = arith.mulf %392, %393 : vector<8x256xf32>
    %c16_i32_50 = arith.constant 16 : i32
    %395 = tpu.dynamic_rotate %318 by %c16_i32_50 dim 1 : vector<8x256xf32>, i32 -> vector<8x256xf32>
    %c1_51 = arith.constant 1 : index
    %396 = memref.load %arg5[%c1_51] : memref<72xf32, #tpu.memory_space<smem>>
    %397 = vector.broadcast %396 : f32 to vector<8x256xf32>
    %398 = arith.mulf %397, %395 : vector<8x256xf32>
    %c16_i32_52 = arith.constant 16 : i32
    %399 = tpu.dynamic_rotate %323 by %c16_i32_52 dim 1 : vector<8x256xf32>, i32 -> vector<8x256xf32>
    %c10_53 = arith.constant 10 : index
    %400 = memref.load %arg5[%c10_53] : memref<72xf32, #tpu.memory_space<smem>>
    %401 = vector.broadcast %400 : f32 to vector<8x256xf32>
    %402 = arith.mulf %401, %399 : vector<8x256xf32>
    %403 = arith.addf %398, %402 : vector<8x256xf32>
    %c16_i32_54 = arith.constant 16 : i32
    %404 = tpu.dynamic_rotate %328 by %c16_i32_54 dim 1 : vector<8x256xf32>, i32 -> vector<8x256xf32>
    %c19_55 = arith.constant 19 : index
    %405 = memref.load %arg5[%c19_55] : memref<72xf32, #tpu.memory_space<smem>>
    %406 = vector.broadcast %405 : f32 to vector<8x256xf32>
    %407 = arith.mulf %406, %404 : vector<8x256xf32>
    %408 = arith.addf %403, %407 : vector<8x256xf32>
    %c16_i32_56 = arith.constant 16 : i32
    %409 = tpu.dynamic_rotate %333 by %c16_i32_56 dim 1 : vector<8x256xf32>, i32 -> vector<8x256xf32>
    %c28_57 = arith.constant 28 : index
    %410 = memref.load %arg5[%c28_57] : memref<72xf32, #tpu.memory_space<smem>>
    %411 = vector.broadcast %410 : f32 to vector<8x256xf32>
    %412 = arith.mulf %411, %409 : vector<8x256xf32>
    %413 = arith.addf %408, %412 : vector<8x256xf32>
    %c16_i32_58 = arith.constant 16 : i32
    %414 = tpu.dynamic_rotate %338 by %c16_i32_58 dim 1 : vector<8x256xf32>, i32 -> vector<8x256xf32>
    %c37_59 = arith.constant 37 : index
    %415 = memref.load %arg5[%c37_59] : memref<72xf32, #tpu.memory_space<smem>>
    %416 = vector.broadcast %415 : f32 to vector<8x256xf32>
    %417 = arith.mulf %416, %414 : vector<8x256xf32>
    %418 = arith.addf %413, %417 : vector<8x256xf32>
    %c16_i32_60 = arith.constant 16 : i32
    %419 = tpu.dynamic_rotate %343 by %c16_i32_60 dim 1 : vector<8x256xf32>, i32 -> vector<8x256xf32>
    %c46_61 = arith.constant 46 : index
    %420 = memref.load %arg5[%c46_61] : memref<72xf32, #tpu.memory_space<smem>>
    %421 = vector.broadcast %420 : f32 to vector<8x256xf32>
    %422 = arith.mulf %421, %419 : vector<8x256xf32>
    %423 = arith.addf %418, %422 : vector<8x256xf32>
    %c16_i32_62 = arith.constant 16 : i32
    %424 = tpu.dynamic_rotate %348 by %c16_i32_62 dim 1 : vector<8x256xf32>, i32 -> vector<8x256xf32>
    %c55_63 = arith.constant 55 : index
    %425 = memref.load %arg5[%c55_63] : memref<72xf32, #tpu.memory_space<smem>>
    %426 = vector.broadcast %425 : f32 to vector<8x256xf32>
    %427 = arith.mulf %426, %424 : vector<8x256xf32>
    %428 = arith.addf %423, %427 : vector<8x256xf32>
    %c16_i32_64 = arith.constant 16 : i32
    %429 = tpu.dynamic_rotate %353 by %c16_i32_64 dim 1 : vector<8x256xf32>, i32 -> vector<8x256xf32>
    %c64_65 = arith.constant 64 : index
    %430 = memref.load %arg5[%c64_65] : memref<72xf32, #tpu.memory_space<smem>>
    %431 = vector.broadcast %430 : f32 to vector<8x256xf32>
    %432 = arith.mulf %431, %429 : vector<8x256xf32>
    %433 = arith.addf %428, %432 : vector<8x256xf32>
    %434 = vector.broadcast %1 : vector<1x256xf32> to vector<8x256xf32>
    %435 = arith.mulf %433, %434 : vector<8x256xf32>
    %436 = arith.addf %394, %435 : vector<8x256xf32>
    %c15_i32_66 = arith.constant 15 : i32
    %437 = tpu.dynamic_rotate %318 by %c15_i32_66 dim 1 : vector<8x256xf32>, i32 -> vector<8x256xf32>
    %c2_67 = arith.constant 2 : index
    %438 = memref.load %arg5[%c2_67] : memref<72xf32, #tpu.memory_space<smem>>
    %439 = vector.broadcast %438 : f32 to vector<8x256xf32>
    %440 = arith.mulf %439, %437 : vector<8x256xf32>
    %c15_i32_68 = arith.constant 15 : i32
    %441 = tpu.dynamic_rotate %323 by %c15_i32_68 dim 1 : vector<8x256xf32>, i32 -> vector<8x256xf32>
    %c11_69 = arith.constant 11 : index
    %442 = memref.load %arg5[%c11_69] : memref<72xf32, #tpu.memory_space<smem>>
    %443 = vector.broadcast %442 : f32 to vector<8x256xf32>
    %444 = arith.mulf %443, %441 : vector<8x256xf32>
    %445 = arith.addf %440, %444 : vector<8x256xf32>
    %c15_i32_70 = arith.constant 15 : i32
    %446 = tpu.dynamic_rotate %328 by %c15_i32_70 dim 1 : vector<8x256xf32>, i32 -> vector<8x256xf32>
    %c20_71 = arith.constant 20 : index
    %447 = memref.load %arg5[%c20_71] : memref<72xf32, #tpu.memory_space<smem>>
    %448 = vector.broadcast %447 : f32 to vector<8x256xf32>
    %449 = arith.mulf %448, %446 : vector<8x256xf32>
    %450 = arith.addf %445, %449 : vector<8x256xf32>
    %c15_i32_72 = arith.constant 15 : i32
    %451 = tpu.dynamic_rotate %333 by %c15_i32_72 dim 1 : vector<8x256xf32>, i32 -> vector<8x256xf32>
    %c29_73 = arith.constant 29 : index
    %452 = memref.load %arg5[%c29_73] : memref<72xf32, #tpu.memory_space<smem>>
    %453 = vector.broadcast %452 : f32 to vector<8x256xf32>
    %454 = arith.mulf %453, %451 : vector<8x256xf32>
    %455 = arith.addf %450, %454 : vector<8x256xf32>
    %c15_i32_74 = arith.constant 15 : i32
    %456 = tpu.dynamic_rotate %338 by %c15_i32_74 dim 1 : vector<8x256xf32>, i32 -> vector<8x256xf32>
    %c38_75 = arith.constant 38 : index
    %457 = memref.load %arg5[%c38_75] : memref<72xf32, #tpu.memory_space<smem>>
    %458 = vector.broadcast %457 : f32 to vector<8x256xf32>
    %459 = arith.mulf %458, %456 : vector<8x256xf32>
    %460 = arith.addf %455, %459 : vector<8x256xf32>
    %c15_i32_76 = arith.constant 15 : i32
    %461 = tpu.dynamic_rotate %343 by %c15_i32_76 dim 1 : vector<8x256xf32>, i32 -> vector<8x256xf32>
    %c47_77 = arith.constant 47 : index
    %462 = memref.load %arg5[%c47_77] : memref<72xf32, #tpu.memory_space<smem>>
    %463 = vector.broadcast %462 : f32 to vector<8x256xf32>
    %464 = arith.mulf %463, %461 : vector<8x256xf32>
    %465 = arith.addf %460, %464 : vector<8x256xf32>
    %c15_i32_78 = arith.constant 15 : i32
    %466 = tpu.dynamic_rotate %348 by %c15_i32_78 dim 1 : vector<8x256xf32>, i32 -> vector<8x256xf32>
    %c56_79 = arith.constant 56 : index
    %467 = memref.load %arg5[%c56_79] : memref<72xf32, #tpu.memory_space<smem>>
    %468 = vector.broadcast %467 : f32 to vector<8x256xf32>
    %469 = arith.mulf %468, %466 : vector<8x256xf32>
    %470 = arith.addf %465, %469 : vector<8x256xf32>
    %c15_i32_80 = arith.constant 15 : i32
    %471 = tpu.dynamic_rotate %353 by %c15_i32_80 dim 1 : vector<8x256xf32>, i32 -> vector<8x256xf32>
    %c65_81 = arith.constant 65 : index
    %472 = memref.load %arg5[%c65_81] : memref<72xf32, #tpu.memory_space<smem>>
    %473 = vector.broadcast %472 : f32 to vector<8x256xf32>
    %474 = arith.mulf %473, %471 : vector<8x256xf32>
    %475 = arith.addf %470, %474 : vector<8x256xf32>
    %476 = vector.broadcast %2 : vector<1x256xf32> to vector<8x256xf32>
    %477 = arith.mulf %475, %476 : vector<8x256xf32>
    %478 = arith.addf %436, %477 : vector<8x256xf32>
    %c1_i32_82 = arith.constant 1 : i32
    %479 = tpu.dynamic_rotate %318 by %c1_i32_82 dim 1 : vector<8x256xf32>, i32 -> vector<8x256xf32>
    %c3_83 = arith.constant 3 : index
    %480 = memref.load %arg5[%c3_83] : memref<72xf32, #tpu.memory_space<smem>>
    %481 = vector.broadcast %480 : f32 to vector<8x256xf32>
    %482 = arith.mulf %481, %479 : vector<8x256xf32>
    %c1_i32_84 = arith.constant 1 : i32
    %483 = tpu.dynamic_rotate %323 by %c1_i32_84 dim 1 : vector<8x256xf32>, i32 -> vector<8x256xf32>
    %c12_85 = arith.constant 12 : index
    %484 = memref.load %arg5[%c12_85] : memref<72xf32, #tpu.memory_space<smem>>
    %485 = vector.broadcast %484 : f32 to vector<8x256xf32>
    %486 = arith.mulf %485, %483 : vector<8x256xf32>
    %487 = arith.addf %482, %486 : vector<8x256xf32>
    %c1_i32_86 = arith.constant 1 : i32
    %488 = tpu.dynamic_rotate %328 by %c1_i32_86 dim 1 : vector<8x256xf32>, i32 -> vector<8x256xf32>
    %c21_87 = arith.constant 21 : index
    %489 = memref.load %arg5[%c21_87] : memref<72xf32, #tpu.memory_space<smem>>
    %490 = vector.broadcast %489 : f32 to vector<8x256xf32>
    %491 = arith.mulf %490, %488 : vector<8x256xf32>
    %492 = arith.addf %487, %491 : vector<8x256xf32>
    %c1_i32_88 = arith.constant 1 : i32
    %493 = tpu.dynamic_rotate %333 by %c1_i32_88 dim 1 : vector<8x256xf32>, i32 -> vector<8x256xf32>
    %c30_89 = arith.constant 30 : index
    %494 = memref.load %arg5[%c30_89] : memref<72xf32, #tpu.memory_space<smem>>
    %495 = vector.broadcast %494 : f32 to vector<8x256xf32>
    %496 = arith.mulf %495, %493 : vector<8x256xf32>
    %497 = arith.addf %492, %496 : vector<8x256xf32>
    %c1_i32_90 = arith.constant 1 : i32
    %498 = tpu.dynamic_rotate %338 by %c1_i32_90 dim 1 : vector<8x256xf32>, i32 -> vector<8x256xf32>
    %c39_91 = arith.constant 39 : index
    %499 = memref.load %arg5[%c39_91] : memref<72xf32, #tpu.memory_space<smem>>
    %500 = vector.broadcast %499 : f32 to vector<8x256xf32>
    %501 = arith.mulf %500, %498 : vector<8x256xf32>
    %502 = arith.addf %497, %501 : vector<8x256xf32>
    %c1_i32_92 = arith.constant 1 : i32
    %503 = tpu.dynamic_rotate %343 by %c1_i32_92 dim 1 : vector<8x256xf32>, i32 -> vector<8x256xf32>
    %c48_93 = arith.constant 48 : index
    %504 = memref.load %arg5[%c48_93] : memref<72xf32, #tpu.memory_space<smem>>
    %505 = vector.broadcast %504 : f32 to vector<8x256xf32>
    %506 = arith.mulf %505, %503 : vector<8x256xf32>
    %507 = arith.addf %502, %506 : vector<8x256xf32>
    %c1_i32_94 = arith.constant 1 : i32
    %508 = tpu.dynamic_rotate %348 by %c1_i32_94 dim 1 : vector<8x256xf32>, i32 -> vector<8x256xf32>
    %c57_95 = arith.constant 57 : index
    %509 = memref.load %arg5[%c57_95] : memref<72xf32, #tpu.memory_space<smem>>
    %510 = vector.broadcast %509 : f32 to vector<8x256xf32>
    %511 = arith.mulf %510, %508 : vector<8x256xf32>
    %512 = arith.addf %507, %511 : vector<8x256xf32>
    %c1_i32_96 = arith.constant 1 : i32
    %513 = tpu.dynamic_rotate %353 by %c1_i32_96 dim 1 : vector<8x256xf32>, i32 -> vector<8x256xf32>
    %c66_97 = arith.constant 66 : index
    %514 = memref.load %arg5[%c66_97] : memref<72xf32, #tpu.memory_space<smem>>
    %515 = vector.broadcast %514 : f32 to vector<8x256xf32>
    %516 = arith.mulf %515, %513 : vector<8x256xf32>
    %517 = arith.addf %512, %516 : vector<8x256xf32>
    %518 = vector.broadcast %3 : vector<1x256xf32> to vector<8x256xf32>
    %519 = arith.mulf %517, %518 : vector<8x256xf32>
    %520 = arith.addf %478, %519 : vector<8x256xf32>
    %c4_98 = arith.constant 4 : index
    %521 = memref.load %arg5[%c4_98] : memref<72xf32, #tpu.memory_space<smem>>
    %522 = vector.broadcast %521 : f32 to vector<8x256xf32>
    %523 = arith.mulf %522, %318 : vector<8x256xf32>
    %c13_99 = arith.constant 13 : index
    %524 = memref.load %arg5[%c13_99] : memref<72xf32, #tpu.memory_space<smem>>
    %525 = vector.broadcast %524 : f32 to vector<8x256xf32>
    %526 = arith.mulf %525, %323 : vector<8x256xf32>
    %527 = arith.addf %523, %526 : vector<8x256xf32>
    %c22_100 = arith.constant 22 : index
    %528 = memref.load %arg5[%c22_100] : memref<72xf32, #tpu.memory_space<smem>>
    %529 = vector.broadcast %528 : f32 to vector<8x256xf32>
    %530 = arith.mulf %529, %328 : vector<8x256xf32>
    %531 = arith.addf %527, %530 : vector<8x256xf32>
    %c31_101 = arith.constant 31 : index
    %532 = memref.load %arg5[%c31_101] : memref<72xf32, #tpu.memory_space<smem>>
    %533 = vector.broadcast %532 : f32 to vector<8x256xf32>
    %534 = arith.mulf %533, %333 : vector<8x256xf32>
    %535 = arith.addf %531, %534 : vector<8x256xf32>
    %c40_102 = arith.constant 40 : index
    %536 = memref.load %arg5[%c40_102] : memref<72xf32, #tpu.memory_space<smem>>
    %537 = vector.broadcast %536 : f32 to vector<8x256xf32>
    %538 = arith.mulf %537, %338 : vector<8x256xf32>
    %539 = arith.addf %535, %538 : vector<8x256xf32>
    %c49_103 = arith.constant 49 : index
    %540 = memref.load %arg5[%c49_103] : memref<72xf32, #tpu.memory_space<smem>>
    %541 = vector.broadcast %540 : f32 to vector<8x256xf32>
    %542 = arith.mulf %541, %343 : vector<8x256xf32>
    %543 = arith.addf %539, %542 : vector<8x256xf32>
    %c58_104 = arith.constant 58 : index
    %544 = memref.load %arg5[%c58_104] : memref<72xf32, #tpu.memory_space<smem>>
    %545 = vector.broadcast %544 : f32 to vector<8x256xf32>
    %546 = arith.mulf %545, %348 : vector<8x256xf32>
    %547 = arith.addf %543, %546 : vector<8x256xf32>
    %c67_105 = arith.constant 67 : index
    %548 = memref.load %arg5[%c67_105] : memref<72xf32, #tpu.memory_space<smem>>
    %549 = vector.broadcast %548 : f32 to vector<8x256xf32>
    %550 = arith.mulf %549, %353 : vector<8x256xf32>
    %551 = arith.addf %547, %550 : vector<8x256xf32>
    %552 = arith.addf %520, %551 : vector<8x256xf32>
    %c255_i32_106 = arith.constant 255 : i32
    %553 = tpu.dynamic_rotate %318 by %c255_i32_106 dim 1 : vector<8x256xf32>, i32 -> vector<8x256xf32>
    %c5_107 = arith.constant 5 : index
    %554 = memref.load %arg5[%c5_107] : memref<72xf32, #tpu.memory_space<smem>>
    %555 = vector.broadcast %554 : f32 to vector<8x256xf32>
    %556 = arith.mulf %555, %553 : vector<8x256xf32>
    %c255_i32_108 = arith.constant 255 : i32
    %557 = tpu.dynamic_rotate %323 by %c255_i32_108 dim 1 : vector<8x256xf32>, i32 -> vector<8x256xf32>
    %c14_109 = arith.constant 14 : index
    %558 = memref.load %arg5[%c14_109] : memref<72xf32, #tpu.memory_space<smem>>
    %559 = vector.broadcast %558 : f32 to vector<8x256xf32>
    %560 = arith.mulf %559, %557 : vector<8x256xf32>
    %561 = arith.addf %556, %560 : vector<8x256xf32>
    %c255_i32_110 = arith.constant 255 : i32
    %562 = tpu.dynamic_rotate %328 by %c255_i32_110 dim 1 : vector<8x256xf32>, i32 -> vector<8x256xf32>
    %c23_111 = arith.constant 23 : index
    %563 = memref.load %arg5[%c23_111] : memref<72xf32, #tpu.memory_space<smem>>
    %564 = vector.broadcast %563 : f32 to vector<8x256xf32>
    %565 = arith.mulf %564, %562 : vector<8x256xf32>
    %566 = arith.addf %561, %565 : vector<8x256xf32>
    %c255_i32_112 = arith.constant 255 : i32
    %567 = tpu.dynamic_rotate %333 by %c255_i32_112 dim 1 : vector<8x256xf32>, i32 -> vector<8x256xf32>
    %c32_113 = arith.constant 32 : index
    %568 = memref.load %arg5[%c32_113] : memref<72xf32, #tpu.memory_space<smem>>
    %569 = vector.broadcast %568 : f32 to vector<8x256xf32>
    %570 = arith.mulf %569, %567 : vector<8x256xf32>
    %571 = arith.addf %566, %570 : vector<8x256xf32>
    %c255_i32_114 = arith.constant 255 : i32
    %572 = tpu.dynamic_rotate %338 by %c255_i32_114 dim 1 : vector<8x256xf32>, i32 -> vector<8x256xf32>
    %c41_115 = arith.constant 41 : index
    %573 = memref.load %arg5[%c41_115] : memref<72xf32, #tpu.memory_space<smem>>
    %574 = vector.broadcast %573 : f32 to vector<8x256xf32>
    %575 = arith.mulf %574, %572 : vector<8x256xf32>
    %576 = arith.addf %571, %575 : vector<8x256xf32>
    %c255_i32_116 = arith.constant 255 : i32
    %577 = tpu.dynamic_rotate %343 by %c255_i32_116 dim 1 : vector<8x256xf32>, i32 -> vector<8x256xf32>
    %c50_117 = arith.constant 50 : index
    %578 = memref.load %arg5[%c50_117] : memref<72xf32, #tpu.memory_space<smem>>
    %579 = vector.broadcast %578 : f32 to vector<8x256xf32>
    %580 = arith.mulf %579, %577 : vector<8x256xf32>
    %581 = arith.addf %576, %580 : vector<8x256xf32>
    %c255_i32_118 = arith.constant 255 : i32
    %582 = tpu.dynamic_rotate %348 by %c255_i32_118 dim 1 : vector<8x256xf32>, i32 -> vector<8x256xf32>
    %c59_119 = arith.constant 59 : index
    %583 = memref.load %arg5[%c59_119] : memref<72xf32, #tpu.memory_space<smem>>
    %584 = vector.broadcast %583 : f32 to vector<8x256xf32>
    %585 = arith.mulf %584, %582 : vector<8x256xf32>
    %586 = arith.addf %581, %585 : vector<8x256xf32>
    %c255_i32_120 = arith.constant 255 : i32
    %587 = tpu.dynamic_rotate %353 by %c255_i32_120 dim 1 : vector<8x256xf32>, i32 -> vector<8x256xf32>
    %c68_121 = arith.constant 68 : index
    %588 = memref.load %arg5[%c68_121] : memref<72xf32, #tpu.memory_space<smem>>
    %589 = vector.broadcast %588 : f32 to vector<8x256xf32>
    %590 = arith.mulf %589, %587 : vector<8x256xf32>
    %591 = arith.addf %586, %590 : vector<8x256xf32>
    %592 = vector.broadcast %4 : vector<1x256xf32> to vector<8x256xf32>
    %593 = arith.mulf %591, %592 : vector<8x256xf32>
    %594 = arith.addf %552, %593 : vector<8x256xf32>
    %c241_i32_122 = arith.constant 241 : i32
    %595 = tpu.dynamic_rotate %318 by %c241_i32_122 dim 1 : vector<8x256xf32>, i32 -> vector<8x256xf32>
    %c6_123 = arith.constant 6 : index
    %596 = memref.load %arg5[%c6_123] : memref<72xf32, #tpu.memory_space<smem>>
    %597 = vector.broadcast %596 : f32 to vector<8x256xf32>
    %598 = arith.mulf %597, %595 : vector<8x256xf32>
    %c241_i32_124 = arith.constant 241 : i32
    %599 = tpu.dynamic_rotate %323 by %c241_i32_124 dim 1 : vector<8x256xf32>, i32 -> vector<8x256xf32>
    %c15_125 = arith.constant 15 : index
    %600 = memref.load %arg5[%c15_125] : memref<72xf32, #tpu.memory_space<smem>>
    %601 = vector.broadcast %600 : f32 to vector<8x256xf32>
    %602 = arith.mulf %601, %599 : vector<8x256xf32>
    %603 = arith.addf %598, %602 : vector<8x256xf32>
    %c241_i32_126 = arith.constant 241 : i32
    %604 = tpu.dynamic_rotate %328 by %c241_i32_126 dim 1 : vector<8x256xf32>, i32 -> vector<8x256xf32>
    %c24_127 = arith.constant 24 : index
    %605 = memref.load %arg5[%c24_127] : memref<72xf32, #tpu.memory_space<smem>>
    %606 = vector.broadcast %605 : f32 to vector<8x256xf32>
    %607 = arith.mulf %606, %604 : vector<8x256xf32>
    %608 = arith.addf %603, %607 : vector<8x256xf32>
    %c241_i32_128 = arith.constant 241 : i32
    %609 = tpu.dynamic_rotate %333 by %c241_i32_128 dim 1 : vector<8x256xf32>, i32 -> vector<8x256xf32>
    %c33_129 = arith.constant 33 : index
    %610 = memref.load %arg5[%c33_129] : memref<72xf32, #tpu.memory_space<smem>>
    %611 = vector.broadcast %610 : f32 to vector<8x256xf32>
    %612 = arith.mulf %611, %609 : vector<8x256xf32>
    %613 = arith.addf %608, %612 : vector<8x256xf32>
    %c241_i32_130 = arith.constant 241 : i32
    %614 = tpu.dynamic_rotate %338 by %c241_i32_130 dim 1 : vector<8x256xf32>, i32 -> vector<8x256xf32>
    %c42_131 = arith.constant 42 : index
    %615 = memref.load %arg5[%c42_131] : memref<72xf32, #tpu.memory_space<smem>>
    %616 = vector.broadcast %615 : f32 to vector<8x256xf32>
    %617 = arith.mulf %616, %614 : vector<8x256xf32>
    %618 = arith.addf %613, %617 : vector<8x256xf32>
    %c241_i32_132 = arith.constant 241 : i32
    %619 = tpu.dynamic_rotate %343 by %c241_i32_132 dim 1 : vector<8x256xf32>, i32 -> vector<8x256xf32>
    %c51_133 = arith.constant 51 : index
    %620 = memref.load %arg5[%c51_133] : memref<72xf32, #tpu.memory_space<smem>>
    %621 = vector.broadcast %620 : f32 to vector<8x256xf32>
    %622 = arith.mulf %621, %619 : vector<8x256xf32>
    %623 = arith.addf %618, %622 : vector<8x256xf32>
    %c241_i32_134 = arith.constant 241 : i32
    %624 = tpu.dynamic_rotate %348 by %c241_i32_134 dim 1 : vector<8x256xf32>, i32 -> vector<8x256xf32>
    %c60_135 = arith.constant 60 : index
    %625 = memref.load %arg5[%c60_135] : memref<72xf32, #tpu.memory_space<smem>>
    %626 = vector.broadcast %625 : f32 to vector<8x256xf32>
    %627 = arith.mulf %626, %624 : vector<8x256xf32>
    %628 = arith.addf %623, %627 : vector<8x256xf32>
    %c241_i32_136 = arith.constant 241 : i32
    %629 = tpu.dynamic_rotate %353 by %c241_i32_136 dim 1 : vector<8x256xf32>, i32 -> vector<8x256xf32>
    %c69_137 = arith.constant 69 : index
    %630 = memref.load %arg5[%c69_137] : memref<72xf32, #tpu.memory_space<smem>>
    %631 = vector.broadcast %630 : f32 to vector<8x256xf32>
    %632 = arith.mulf %631, %629 : vector<8x256xf32>
    %633 = arith.addf %628, %632 : vector<8x256xf32>
    %634 = vector.broadcast %5 : vector<1x256xf32> to vector<8x256xf32>
    %635 = arith.mulf %633, %634 : vector<8x256xf32>
    %636 = arith.addf %594, %635 : vector<8x256xf32>
    %c240_i32_138 = arith.constant 240 : i32
    %637 = tpu.dynamic_rotate %318 by %c240_i32_138 dim 1 : vector<8x256xf32>, i32 -> vector<8x256xf32>
    %c7_139 = arith.constant 7 : index
    %638 = memref.load %arg5[%c7_139] : memref<72xf32, #tpu.memory_space<smem>>
    %639 = vector.broadcast %638 : f32 to vector<8x256xf32>
    %640 = arith.mulf %639, %637 : vector<8x256xf32>
    %c240_i32_140 = arith.constant 240 : i32
    %641 = tpu.dynamic_rotate %323 by %c240_i32_140 dim 1 : vector<8x256xf32>, i32 -> vector<8x256xf32>
    %c16_141 = arith.constant 16 : index
    %642 = memref.load %arg5[%c16_141] : memref<72xf32, #tpu.memory_space<smem>>
    %643 = vector.broadcast %642 : f32 to vector<8x256xf32>
    %644 = arith.mulf %643, %641 : vector<8x256xf32>
    %645 = arith.addf %640, %644 : vector<8x256xf32>
    %c240_i32_142 = arith.constant 240 : i32
    %646 = tpu.dynamic_rotate %328 by %c240_i32_142 dim 1 : vector<8x256xf32>, i32 -> vector<8x256xf32>
    %c25_143 = arith.constant 25 : index
    %647 = memref.load %arg5[%c25_143] : memref<72xf32, #tpu.memory_space<smem>>
    %648 = vector.broadcast %647 : f32 to vector<8x256xf32>
    %649 = arith.mulf %648, %646 : vector<8x256xf32>
    %650 = arith.addf %645, %649 : vector<8x256xf32>
    %c240_i32_144 = arith.constant 240 : i32
    %651 = tpu.dynamic_rotate %333 by %c240_i32_144 dim 1 : vector<8x256xf32>, i32 -> vector<8x256xf32>
    %c34_145 = arith.constant 34 : index
    %652 = memref.load %arg5[%c34_145] : memref<72xf32, #tpu.memory_space<smem>>
    %653 = vector.broadcast %652 : f32 to vector<8x256xf32>
    %654 = arith.mulf %653, %651 : vector<8x256xf32>
    %655 = arith.addf %650, %654 : vector<8x256xf32>
    %c240_i32_146 = arith.constant 240 : i32
    %656 = tpu.dynamic_rotate %338 by %c240_i32_146 dim 1 : vector<8x256xf32>, i32 -> vector<8x256xf32>
    %c43_147 = arith.constant 43 : index
    %657 = memref.load %arg5[%c43_147] : memref<72xf32, #tpu.memory_space<smem>>
    %658 = vector.broadcast %657 : f32 to vector<8x256xf32>
    %659 = arith.mulf %658, %656 : vector<8x256xf32>
    %660 = arith.addf %655, %659 : vector<8x256xf32>
    %c240_i32_148 = arith.constant 240 : i32
    %661 = tpu.dynamic_rotate %343 by %c240_i32_148 dim 1 : vector<8x256xf32>, i32 -> vector<8x256xf32>
    %c52_149 = arith.constant 52 : index
    %662 = memref.load %arg5[%c52_149] : memref<72xf32, #tpu.memory_space<smem>>
    %663 = vector.broadcast %662 : f32 to vector<8x256xf32>
    %664 = arith.mulf %663, %661 : vector<8x256xf32>
    %665 = arith.addf %660, %664 : vector<8x256xf32>
    %c240_i32_150 = arith.constant 240 : i32
    %666 = tpu.dynamic_rotate %348 by %c240_i32_150 dim 1 : vector<8x256xf32>, i32 -> vector<8x256xf32>
    %c61_151 = arith.constant 61 : index
    %667 = memref.load %arg5[%c61_151] : memref<72xf32, #tpu.memory_space<smem>>
    %668 = vector.broadcast %667 : f32 to vector<8x256xf32>
    %669 = arith.mulf %668, %666 : vector<8x256xf32>
    %670 = arith.addf %665, %669 : vector<8x256xf32>
    %c240_i32_152 = arith.constant 240 : i32
    %671 = tpu.dynamic_rotate %353 by %c240_i32_152 dim 1 : vector<8x256xf32>, i32 -> vector<8x256xf32>
    %c70_153 = arith.constant 70 : index
    %672 = memref.load %arg5[%c70_153] : memref<72xf32, #tpu.memory_space<smem>>
    %673 = vector.broadcast %672 : f32 to vector<8x256xf32>
    %674 = arith.mulf %673, %671 : vector<8x256xf32>
    %675 = arith.addf %670, %674 : vector<8x256xf32>
    %676 = vector.broadcast %6 : vector<1x256xf32> to vector<8x256xf32>
    %677 = arith.mulf %675, %676 : vector<8x256xf32>
    %678 = arith.addf %636, %677 : vector<8x256xf32>
    %c239_i32_154 = arith.constant 239 : i32
    %679 = tpu.dynamic_rotate %318 by %c239_i32_154 dim 1 : vector<8x256xf32>, i32 -> vector<8x256xf32>
    %c8_155 = arith.constant 8 : index
    %680 = memref.load %arg5[%c8_155] : memref<72xf32, #tpu.memory_space<smem>>
    %681 = vector.broadcast %680 : f32 to vector<8x256xf32>
    %682 = arith.mulf %681, %679 : vector<8x256xf32>
    %c239_i32_156 = arith.constant 239 : i32
    %683 = tpu.dynamic_rotate %323 by %c239_i32_156 dim 1 : vector<8x256xf32>, i32 -> vector<8x256xf32>
    %c17_157 = arith.constant 17 : index
    %684 = memref.load %arg5[%c17_157] : memref<72xf32, #tpu.memory_space<smem>>
    %685 = vector.broadcast %684 : f32 to vector<8x256xf32>
    %686 = arith.mulf %685, %683 : vector<8x256xf32>
    %687 = arith.addf %682, %686 : vector<8x256xf32>
    %c239_i32_158 = arith.constant 239 : i32
    %688 = tpu.dynamic_rotate %328 by %c239_i32_158 dim 1 : vector<8x256xf32>, i32 -> vector<8x256xf32>
    %c26_159 = arith.constant 26 : index
    %689 = memref.load %arg5[%c26_159] : memref<72xf32, #tpu.memory_space<smem>>
    %690 = vector.broadcast %689 : f32 to vector<8x256xf32>
    %691 = arith.mulf %690, %688 : vector<8x256xf32>
    %692 = arith.addf %687, %691 : vector<8x256xf32>
    %c239_i32_160 = arith.constant 239 : i32
    %693 = tpu.dynamic_rotate %333 by %c239_i32_160 dim 1 : vector<8x256xf32>, i32 -> vector<8x256xf32>
    %c35_161 = arith.constant 35 : index
    %694 = memref.load %arg5[%c35_161] : memref<72xf32, #tpu.memory_space<smem>>
    %695 = vector.broadcast %694 : f32 to vector<8x256xf32>
    %696 = arith.mulf %695, %693 : vector<8x256xf32>
    %697 = arith.addf %692, %696 : vector<8x256xf32>
    %c239_i32_162 = arith.constant 239 : i32
    %698 = tpu.dynamic_rotate %338 by %c239_i32_162 dim 1 : vector<8x256xf32>, i32 -> vector<8x256xf32>
    %c44_163 = arith.constant 44 : index
    %699 = memref.load %arg5[%c44_163] : memref<72xf32, #tpu.memory_space<smem>>
    %700 = vector.broadcast %699 : f32 to vector<8x256xf32>
    %701 = arith.mulf %700, %698 : vector<8x256xf32>
    %702 = arith.addf %697, %701 : vector<8x256xf32>
    %c239_i32_164 = arith.constant 239 : i32
    %703 = tpu.dynamic_rotate %343 by %c239_i32_164 dim 1 : vector<8x256xf32>, i32 -> vector<8x256xf32>
    %c53_165 = arith.constant 53 : index
    %704 = memref.load %arg5[%c53_165] : memref<72xf32, #tpu.memory_space<smem>>
    %705 = vector.broadcast %704 : f32 to vector<8x256xf32>
    %706 = arith.mulf %705, %703 : vector<8x256xf32>
    %707 = arith.addf %702, %706 : vector<8x256xf32>
    %c239_i32_166 = arith.constant 239 : i32
    %708 = tpu.dynamic_rotate %348 by %c239_i32_166 dim 1 : vector<8x256xf32>, i32 -> vector<8x256xf32>
    %c62_167 = arith.constant 62 : index
    %709 = memref.load %arg5[%c62_167] : memref<72xf32, #tpu.memory_space<smem>>
    %710 = vector.broadcast %709 : f32 to vector<8x256xf32>
    %711 = arith.mulf %710, %708 : vector<8x256xf32>
    %712 = arith.addf %707, %711 : vector<8x256xf32>
    %c239_i32_168 = arith.constant 239 : i32
    %713 = tpu.dynamic_rotate %353 by %c239_i32_168 dim 1 : vector<8x256xf32>, i32 -> vector<8x256xf32>
    %c71_169 = arith.constant 71 : index
    %714 = memref.load %arg5[%c71_169] : memref<72xf32, #tpu.memory_space<smem>>
    %715 = vector.broadcast %714 : f32 to vector<8x256xf32>
    %716 = arith.mulf %715, %713 : vector<8x256xf32>
    %717 = arith.addf %712, %716 : vector<8x256xf32>
    %718 = vector.broadcast %7 : vector<1x256xf32> to vector<8x256xf32>
    %719 = arith.mulf %717, %718 : vector<8x256xf32>
    %720 = arith.addf %678, %719 : vector<8x256xf32>
    %721 = arith.addf %9, %720 : vector<8x256xf32>
    %c0_170 = arith.constant 0 : index
    %722 = memref.load %arg6[%c0_170] : memref<1xf32, #tpu.memory_space<smem>>
    %723 = vector.broadcast %722 : f32 to vector<8x256xf32>
    %724 = arith.addf %721, %723 : vector<8x256xf32>
    %c0_171 = arith.constant 0 : index
    %c0_172 = arith.constant 0 : index
    %c0_173 = arith.constant 0 : index
    %725 = vector.load %arg7[%c0_171, %c0_172, %c0_173] : memref<1x8x256xf32, #tpu.memory_space<vmem>>, vector<1x8x256xf32>
    %726 = vector.shape_cast %725 : vector<1x8x256xf32> to vector<8x256xf32>
    %727 = vector.shape_cast %724 : vector<8x256xf32> to vector<1x8x256xf32>
    tpu.vector_store %arg7[%c0_171, %c0_172, %c0_173], %727 {strides = array<i32>} : memref<1x8x256xf32, #tpu.memory_space<vmem>>, vector<1x8x256xf32>,
    return
  }
  func.func @transform_0(%arg0: i32) -> (i32, i32, i32) {
    %c0_i32 = arith.constant 0 : i32
    %c0_i32_0 = arith.constant 0 : i32
    %c0_i32_1 = arith.constant 0 : i32
    return %c0_i32, %arg0, %c0_i32_0 : i32, i32, i32
  }
  func.func @transform_1(%arg0: i32) -> (i32, i32) {
    %c0_i32 = arith.constant 0 : i32
    %c0_i32_0 = arith.constant 0 : i32
    %c0_i32_1 = arith.constant 0 : i32
    return %c0_i32, %c0_i32_0 : i32, i32
  }
  func.func @transform_2(%arg0: i32) -> i32 {
    %c0_i32 = arith.constant 0 : i32
    %c0_i32_0 = arith.constant 0 : i32
    return %c0_i32 : i32
  }
  func.func @transform_3(%arg0: i32) -> i32 {
    %c0_i32 = arith.constant 0 : i32
    %c0_i32_0 = arith.constant 0 : i32
    return %c0_i32 : i32
  }
  func.func @transform_4(%arg0: i32) -> i32 {
    %c0_i32 = arith.constant 0 : i32
    %c0_i32_0 = arith.constant 0 : i32
    return %c0_i32 : i32
  }
  func.func @transform_5(%arg0: i32) -> i32 {
    %c0_i32 = arith.constant 0 : i32
    %c0_i32_0 = arith.constant 0 : i32
    return %c0_i32 : i32
  }
  func.func @transform_6(%arg0: i32) -> (i32, i32, i32) {
    %c0_i32 = arith.constant 0 : i32
    %c0_i32_0 = arith.constant 0 : i32
    %c0_i32_1 = arith.constant 0 : i32
    return %c0_i32, %arg0, %c0_i32_0 : i32, i32, i32
  }
}

</mosaic_0001>

<bundles_post_ra>
// kernel: tpu_custom_call.1
= control target key start
LH: loop header
LB: loop body
LE: loop exit
PB: predicated region body
PF: predicated region fallthrough
CT: control target
= control target key end

     0   :  { %s4637_s0 = inlined_call_operand.hbm [shape: f32[1,16,256], index: 0, kind: input, shape index: {}]   ;;  %s4638_s1 = inlined_call_operand.hbm [shape: f32[8,256], index: 1, kind: input, shape index: {}]   ;;  %s4639_s2 = inlined_call_operand.vmem [shape: f32[72], index: 2, kind: input, shape index: {}]   ;;  %s4640_s3 = inlined_call_operand.vmem [shape: f32[8], index: 3, kind: input, shape index: {}]   ;;  %s4641_s4 = inlined_call_operand.vmem [shape: f32[72], index: 4, kind: input, shape index: {}]   ;;  %s4642_s5 = inlined_call_operand.<no memory space> [shape: f32[1], index: 5, kind: input, shape index: {}]   ;;  %s4643_s6 = inlined_call_operand.hbm [shape: f32[1,16,256], index: 6, kind: output, shape index: {}]  }
   0x1   :  { %4785 = sst [smem:[#allocation101_spill]] %s4637_s0 }
   0x2   :  { %4786 = sst [smem:[#allocation102_spill]] %s4638_s1 }
   0x3   :  { %4787 = sst [smem:[#allocation103_spill]] %s4639_s2 }
   0x4   :  { %4788 = sst [smem:[#allocation104_spill]] %s4640_s3 }
   0x5   :  { %4789 = sst [smem:[#allocation105_spill]] %s4641_s4 }
   0x6   :  { %4790 = sst [smem:[#allocation106_spill]] %s4643_s6 }
   0x7   :  { %11 = sst [smem:[#allocation2]] %s4642_s5 }
   0x8   :  { %12 = vsyncpa [#allocation4], 0 }
   0x9   :  { %14 = vsyncpa [#allocation4 + $0x1], 0 }
   0xa   :  { %15 = vsyncpa [#allocation8], 0 }
   0xb   :  { %16 = vsyncpa [#allocation6], 0 }
   0xc   :  { %17 = vsyncpa [#allocation11], 0 }
   0xd   :  { %18 = vsyncpa [#allocation5], 0 }
   0xe   :  { %20 = vsyncpa [#allocation5 + $0x1], 0  ;;  %s2433_s23 = smov 0   ;;  %s2435_s24 = smov 0  }
   0xf   :  { %s2437_s25 = smov 0   ;;  %s2439_s26 = smov 0  }
  0x10 LB: > { %4791 = sst [smem:[#allocation19_spill]] %s2367_s23  ;;  %s4795_s3 = sld [smem:[#allocation104_spill]]  ;;  %s2379_s26 = sphi %s2439_s26, %s5141_s26   ;;  %s2375_s25 = sphi %s2437_s25, %s5144_s25   ;;  %s2371_s24 = sphi %s2435_s24, %s5143_s24   ;;  %s2367_s23 = sphi %s2433_s23, %s5142_s23  }
  0x11   : > { %4792 = sst [smem:[#allocation20_spill]] %s2371_s24  ;;  %s2457_s29 = sadd.s32 4294967295, %s2379_s26  }
  0x12   : > { %4793 = sst [smem:[#allocation21_spill]] %s2375_s25  ;;  %p1929_p0 = scmp.ge.s32.totalorder %s2379_s26, 1 }
  0x13   : > { %4794 = sst [smem:[#allocation22_spill]] %s2379_s26  ;;  %p4644_p1 = scmp.eq.s32.totalorder %s2457_s29, 0 }
  0x14   : > { %4796 = sst [smem:[#allocation23_spill]] %s2457_s29  ;;  %p188_p2 = scmp.lt.s32.totalorder %s2379_s26, 3 }
  0x15   : > { %s4798_s2 = sld [smem:[#allocation103_spill]]  ;;  %s2381_s10 = smov [#allocation7]  }
  0x16   : > { %s223_s28 = sshll.u32 %s4795_s3, 4  ;;  %p2462_p3 = pnand %p1929_p0, %p188_p2  ;;  %s224_s28 = int_to_ptr.vmem [resolvable:$true] %s223_s28 }
  0x17   : > { %s201_s11 = sshll.u32 %s2381_s10, 4  ;;  %s4800_s4 = sld [smem:[#allocation105_spill]]  ;;  %s2472_s11 = int_to_ptr.vmem [resolvable:$true] %s201_s11 }
  0x18   : > { %p2121_p5 = pneg %p2462_p3  ;;  %s2198_s16 = scalar_lea.vmem %s224_s28, 16 }
  0x19   : > { %p2199_p7 = scmp.ne.s32.totalorder %s224_s28, %s2198_s16  ;;  %p2206_p11 = scmp.lt.s32.totalorder %s224_s28, %s224_s28 }
  0x1a   : > { %p2478_p6 = pnand %p2121_p5, %p4644_p1  ;;  %p2207_p12 = scmp.lt.s32.totalorder %s2198_s16, %s2198_s16 }
  0x1b   : > { %s212_s9 = sshll.u32 %s4798_s2, 4  ;;  %s2474_s9 = int_to_ptr.vmem [resolvable:$true] %s212_s9 }
  0x1c   : > { %p2489_p8 = pneg %p2478_p6  ;;  %p2208_p13 = por %p2207_p12, %p2206_p11 }
  0x1d   : > { %s234_s15 = sshll.u32 %s4800_s4, 4  ;;  %s2485_s15 = int_to_ptr.vmem [resolvable:$true] %s234_s15 }
  0x1e   : > { %p2201_p9 = pnand %p2489_p8, %p2199_p7 }
  0x20   : > { %p2202_p10 = pneg %p2201_p9 }
  0x22   : > { %p2209_p0 = pnand %p2208_p13, %p2202_p10 }
  0x24   : > { %2212 = shalt.err (!%p2209_p0)
}
  0x25   : > { %s2382_s18 = smov [#allocation10]   ;;  %s4802_s1 = sld [smem:[#allocation102_spill]] }
  0x26   : > { %2130 = dma.vmem_to_smem (!%p2478_p6), %s224_s28, 16, %s2382_s18, [#allocation11]  }
  0x2b   : > { %s2213_s21 = scalar_lea.hbm %s4802_s1, 256 }
  0x2c   : > { %p2214_p2 = scmp.ne.s32.totalorder %s4802_s1, %s2213_s21  ;;  %p2220_p9 = scmp.lt.u32.totalorder %s2213_s21, %s4802_s1 }
  0x2e   : > { %p2216_p5 = pnand %p2214_p2, %p2489_p8 }
  0x30   : > { %p2217_p7 = pneg %p2216_p5 }
  0x32   : > { %p2222_p10 = pnand %p2220_p9, %p2217_p7 }
  0x34   : > { %2225 = shalt.err (!%p2222_p10)
}
  0x35   : > { %s2226_s28 = scalar_lea.vmem %s2472_s11, 256  ;;  %p2234_p0 = scmp.lt.s32.totalorder %s2472_s11, %s2472_s11 }
  0x36   : > { %p2227_p11 = scmp.ne.s32.totalorder %s2472_s11, %s2226_s28  ;;  %p2235_p4 = scmp.lt.s32.totalorder %s2226_s28, %s2226_s28 }
  0x38   : > { %p2229_p12 = pnand %p2227_p11, %p2489_p8  ;;  %p2236_p2 = por %p2235_p4, %p2234_p0 }
  0x3a   : > { %p2230_p13 = pneg %p2229_p12 }
  0x3c   : > { %p2237_p5 = pnand %p2236_p2, %p2230_p13 }
  0x3e   : > { %2240 = shalt.err (!%p2237_p5)
}
  0x3f   : > { %2124 = dma.hbm_to_vmem [thread:$0]  (!%p2478_p6), %s4802_s1, 256, %s2472_s11, [#allocation8]  }
  0x40   : > { %s2241_s13 = scalar_lea.vmem %s2474_s9, 16  ;;  %p2249_p4 = scmp.lt.s32.totalorder %s2474_s9, %s2474_s9 }
  0x41   : > { %p2242_p7 = scmp.ne.s32.totalorder %s2474_s9, %s2241_s13  ;;  %p2250_p11 = scmp.lt.s32.totalorder %s2241_s13, %s2241_s13 }
  0x43   : > { %p2244_p9 = pnand %p2242_p7, %p2489_p8  ;;  %p2251_p12 = por %p2250_p11, %p2249_p4 }
  0x45   : > { %p2245_p10 = pneg %p2244_p9 }
  0x47   : > { %p2252_p13 = pnand %p2251_p12, %p2245_p10 }
  0x49   : > { %2255 = shalt.err (!%p2252_p13)
}
  0x4a   : > { %s2383_s14 = smov [#allocation9]   ;;  %s2256_s11 = scalar_lea.vmem %s2485_s15, 16 }
  0x4b   : > { %2127 = dma.vmem_to_smem (!%p2478_p6), %s2474_s9, 16, %s2383_s14, [#allocation6]  }
  0x4c   : > { %p2257_p0 = scmp.ne.s32.totalorder %s2485_s15, %s2256_s11  ;;  %p2264_p7 = scmp.lt.s32.totalorder %s2485_s15, %s2485_s15 }
  0x4d   : > { %p2265_p9 = scmp.lt.s32.totalorder %s2256_s11, %s2256_s11 }
  0x4e   : > { %p2259_p2 = pnand %p2257_p0, %p2489_p8 }
  0x4f   : > { %p2266_p4 = por %p2265_p9, %p2264_p7 }
  0x50   : > { %p2260_p5 = pneg %p2259_p2 }
  0x52   : > { %p2267_p10 = pnand %p2266_p4, %p2260_p5 }
  0x54   : > { %2270 = shalt.err (!%p2267_p10)
}
  0x55   : > { %s2384_s16 = smov [#allocation12]   ;;  %s1928_s9 = sadd.s32 4294967294, %s2379_s26  }
  0x56   : > { %2133 = dma.vmem_to_smem (!%p2478_p6), %s2485_s15, 16, %s2384_s16, [#allocation11]  }
  0x57   : > { %s2540_s17 = sadd.s32 1, %s2379_s26   ;;  %s33_s18 = sadd.s32 1, %s2375_s25 }
  0x58   : > { %4803 = sst [smem:[#allocation24_spill]] %s2540_s17  ;;  %s30_s12 = ssub.s32 %s2379_s26, %s2540_s17 }
  0x59   : > { %p31_p8 = scmp.eq.s32.totalorder %s30_s12, 0  ;;  %p40_p11 = scmp.ne.s32.totalorder %s2375_s25, %s2371_s24 }
  0x5a   : > { %p41_p12 = scmp.eq.s32.totalorder %s2379_s26, 0  ;;  %p46_p13 = scmp.ne.s32.totalorder %s2371_s24, %s2367_s23 }
  0x5b   : > { %s2551_s19 = scalar_select %p31_p8, %s2375_s25, %s33_s18  }
  0x5c   : > { %p2553_p0 = por %p41_p12, %p40_p11  ;;  %p2559_p6 = por %p4644_p1, %p46_p13 }
  0x5d   : > { %4804 = sst [smem:[#allocation25_spill]] %s2551_s19  ;;  %p175_p2 = scmp.eq.s32.totalorder %s2457_s29, 1 }
  0x5e   : > { %s4806_s15 = scalar_select %p2559_p6, 1, 0 }
  0x5f   : > { %p181_p5 = scmp.eq.s32.totalorder %s1928_s9, 1  ;;  %p2146_p7 = scmp.lt.s32.totalorder %s2379_s26, 2 }
  0x60   : > { %s248_s21 = sand.u32 1, %s2375_s25   ;;  %p2566_p9 = por %p175_p2, %p40_p11 }
  0x61   : > { %p2570_p4 = por %p181_p5, %p46_p13  ;;  %s1935_s27 = sshll.u32 %s248_s21, 4 }
  0x62   : > { %s4807_s22 = scalar_select %p2566_p9, 1, 0 }
  0x63   : > { %s4809_s5 = scalar_select %p2570_p4, 1, 0 }
  0x64   : > { %4808 = sst [smem:[#allocation26_spill]] %s4807_s22  ;;  %s2099_s7 = sshll.u32 %s2379_s26, 8 }
  0x65   : > { %4810 = sst [smem:[#allocation27_spill]] %s4809_s5  ;;  %s4811_s0 = sld [smem:[#allocation101_spill]] }
  0x66   : > { %s252_s13 = scalar_lea.vmem [#allocation3], %s1935_s27  ;;  %p2584_p10 = pnand %p2146_p7, %p2553_p0 }
  0x67   : > { %s260_s14 = sshll.u32 %s252_s13, 4  ;;  %s249_s16 = scalar_lea.sflag [#allocation4], %s248_s21  ;;  %s2580_s14 = int_to_ptr.vmem [resolvable:$true] %s260_s14 }
  0x68   : > { %p2273_p11 = pneg %p2584_p10 }
  0x6b   : > { %s2578_s10 = scalar_lea.hbm %s4811_s0, %s2099_s7  ;;  %s2276_s27 = scalar_lea.hbm %s4811_s0, 512 }
  0x6c   : > { %s2271_s9 = scalar_lea.hbm %s2578_s10, 256  ;;  %p2277_p0 = scmp.lt.u32.totalorder %s2578_s10, %s4811_s0 }
  0x6d   : > { %p2272_p8 = scmp.ne.s32.totalorder %s2578_s10, %s2271_s9  ;;  %p2278_p2 = scmp.lt.u32.totalorder %s2276_s27, %s2271_s9 }
  0x6e   : > { %p2280_p7 = scmp.lt.u32.totalorder %s2271_s9, %s2578_s10 }
  0x6f   : > { %p2274_p12 = pnand %p2273_p11, %p2272_p8  ;;  %p2279_p5 = por %p2278_p2, %p2277_p0 }
  0x71   : > { %p2275_p13 = pneg %p2274_p12  ;;  %p2281_p1 = por %p2280_p7, %p2279_p5 }
  0x73   : > { %p2282_p4 = pnand %p2281_p1, %p2275_p13 }
  0x75   : > { %2285 = shalt.err (!%p2282_p4)
}
  0x76   : > { %s2286_s21 = scalar_lea.vmem %s2580_s14, 256  ;;  %s2385_s28 = smov [#allocation3]  }
  0x77   : > { %p2287_p8 = scmp.ne.s32.totalorder %s2580_s14, %s2286_s21  ;;  %s2291_s8 = sshll.u32 %s2385_s28, 4  ;;  %s2292_s8 = int_to_ptr.vmem [resolvable:$false] %s2291_s8 }
  0x78   : > { %s2293_s13 = scalar_lea.vmem %s2292_s8, 512  ;;  %p2294_p6 = scmp.lt.s32.totalorder %s2580_s14, %s2292_s8 }
  0x79   : > { %p2289_p12 = pnand %p2287_p8, %p2273_p11  ;;  %p2295_p0 = scmp.lt.s32.totalorder %s2293_s13, %s2286_s21 }
  0x7b   : > { %p2290_p9 = pneg %p2289_p12  ;;  %p2296_p2 = por %p2295_p0, %p2294_p6 }
  0x7d   : > { %p2297_p5 = pnand %p2296_p2, %p2290_p9 }
  0x7f   : > { %2300 = shalt.err (!%p2297_p5)
}
  0x80   : > { %2137 = dma.hbm_to_vmem [thread:$0]  (!%p2584_p10), %s2578_s10, 256, %s2580_s14, %s249_s16  }
  0x81   : > { %269 = sbr.rel (%p2462_p3) target bundleno = 757 (0x2f5), region = 44 }
  0x88   : > { %s2616_s9 = sand.u32 1, %s2371_s24   ;;  %p4815_p1 = scmp.ne.s32.totalorder %s4806_s15, 0 }
  0x89   : > { %4813 = sst [smem:[#allocation28_spill]] %s2616_s9  ;;  %s4647_s12 = sshll.u32 %s2616_s9, 4 }
  0x8a   : > { %s272_s18 = scalar_lea.sflag [#allocation4], %s2616_s9  ;;  %s2622_s27 = scalar_lea.vmem [#allocation3], %s4647_s12 }
  0x8b   : > { %4814 = sst [smem:[#allocation29_spill]] %s2622_s27 }
  0x8c   : > { %2346 = dma.done.wait (%p4815_p1), %s272_s18, 256  }
  0x8d   : > { %2348 = vsyncadd (%p4815_p1), %s272_s18, 4294967040  ;;  %p4816_p6 = scmp.eq.s32.totalorder %s2457_s29, 0 }
  0x8f   : > { %2350 = dma.done.wait (%p4816_p6), [#allocation8], 256   ;;  %p4817_p3 = pmov %p4816_p6 }
  0x91   : > { %2352 = vsyncadd (%p4817_p3), [#allocation8], 4294967040  ;;  %p4818_p9 = pmov %p4817_p3 }
  0x92   : > { %p4819_p4 = pmov %p4817_p3 }
  0x93   : > { %2354 = dma.done.wait (%p4818_p9), [#allocation6], 16  }
  0x94   : > { %2356 = vsyncadd (%p4819_p4), [#allocation6], 4294967280  ;;  %p4820_p10 = pmov %p4817_p3 }
  0x95   : > { %p4821_p11 = pmov %p4817_p3 }
  0x96   : > { %2358 = dma.done.wait (%p4820_p10), [#allocation11], 32  }
  0x97   : > { %2360 = vsyncadd (%p4821_p11), [#allocation11], 4294967264 }
  0x98   : > { %296 = sfence }
  0x99   : > { %v2641_v0 = vld [vmem:[%s2622_s27] sm:$0xff]  ;;  %s4660_s30 = smov 16   ;;  %s4662_s15 = smov 17   ;;  %v2648_v1 = vld [vmem:[%s2622_s27 + $0x8] sm:$0xff]  ;;  %v342_v2 = vlaneseq }
  0x9a   : > { %392 = vrot.lane.b32.xlu1 %v2641_v0, %s4660_s30  ;;  %338 = vrot.lane.b32.xlu0 %v2641_v0, %s4662_s15  ;;  %s4658_s10 = smov 15   ;;  %s4656_s14 = smov 1   ;;  %v323_v4 = vld [vmem:[#allocation7 + $0x1] ss:$8 sm:$0x3] }
  0x9b   : > { %s4652_s11 = smov 127   ;;  %s4650_s16 = smov 113   ;;  %v349_v3 = vshrl.u32 %v342_v2, 7  ;;  %v321_v7 = vld [vmem:[#allocation7] ss:$8 sm:$0x3] }
  0x9c   : > { %s4648_s20 = smov 112   ;;  %s4654_s7 = smov 111   ;;  %v2748_v8 = vand.u32 127, %v342_v2  ;;  %v325_v11 = vld [vmem:[#allocation7 + $0x2] ss:$8 sm:$0x3] }
  0x9d   : > { %s2678_s21 = sld [smem:[#allocation9 + $0x1]]  ;;  %s2680_s28 = sld [smem:[#allocation9 + $0xa]]  ;;  %v2728_v5 = vsub.s32 0, %v349_v3  ;;  %v2730_v6 = vsub.s32 1, %v349_v3 }
  0x9e   : > { %394 = vrot.lane.b32.xlu1 %v2648_v1, %s4660_s30  ;;  %340 = vrot.lane.b32.xlu0 %v2648_v1, %s4662_s15  ;;  %s2682_s8 = sld [smem:[#allocation9 + $0x13]]  ;;  %s2684_s13 = sld [smem:[#allocation9 + $0x1c]]  ;;  %4851 = vst [vmem:[#allocation59_spill] sm:$0xff] %v2748_v8  ;;  %v327_v24 = vld [vmem:[#allocation7 + $0x3] ss:$8 sm:$0x3] }
  0x9f   : > { %s2686_s18 = sld [smem:[#allocation9 + $0x25]]  ;;  %s2688_s12 = sld [smem:[#allocation9 + $0x2e]]  ;;  %v2751_v9 = vrot.slane %v323_v4, %v2728_v5  ;;  %v2754_v10 = vrot.slane %v323_v4, %v2730_v6  ;;  %v2763_v14 = vrot.slane %v321_v7, %v2728_v5  ;;  %v2766_v15 = vrot.slane %v321_v7, %v2730_v6  ;;  %v329_v7 = vld [vmem:[#allocation7 + $0x4] ss:$8 sm:$0x3] }
  0xa0   : > { %s2702_s30 = sld [smem:[#allocation9 + $0x24]]  ;;  %s2704_s15 = sld [smem:[#allocation9 + $0x2d]]  ;;  %v2799_v31 = vrot.slane %v325_v11, %v2728_v5  ;;  %v2802_v32 = vrot.slane %v325_v11, %v2730_v6  ;;  %v2827_v43 = vrot.slane %v327_v24, %v2728_v5  ;;  %v2830_v44 = vrot.slane %v327_v24, %v2730_v6  ;;  %v331_v59 = vld [vmem:[#allocation7 + $0x5] ss:$8 sm:$0x3] }
  0xa1   : > { %s2706_s0 = sld [smem:[#allocation9 + $0x36]]  ;;  %s2708_s1 = sld [smem:[#allocation9 + $0x3f]]  ;;  %4852 = vst [vmem:[#allocation60_spill] sm:$0xff] %v2751_v9  ;;  %4853 = vst [vmem:[#allocation61_spill] sm:$0xff] %v2754_v10  ;;  %vm396_vm0 = vcmp.lt.s32.totalorder %v2748_v8, 16  ;;  %vm344_vm1 = vcmp.lt.s32.totalorder %v2748_v8, 17 }
  0xa2   : > { %462 = vrot.lane.b32.xlu1 %v2648_v1, %s4658_s10  ;;  %460 = vrot.lane.b32.xlu0 %v2641_v0, %s4658_s10  ;;  %s2700_s10 = sld [smem:[#allocation9 + $0x1b]]  ;;  %s2710_s2 = sld [smem:[#allocation9 + $0x2]]  ;;  %4854 = vst [vmem:[#allocation62_spill] sm:$0xff] %v2763_v14  ;;  %4855 = vst [vmem:[#allocation63_spill] sm:$0xff] %v2766_v15  ;;  %vm464_vm2 = vcmp.lt.s32.totalorder %v2748_v8, 15  ;;  %vm532_vm3 = vcmp.lt.s32.totalorder %v2748_v8, 1 }
  0xa3   : > { %4822 = sst [smem:[#allocation30_spill]] %s2678_s21  ;;  %s2714_s4 = sld [smem:[#allocation9 + $0x14]]  ;;  %v413_v12 = vstv %s2678_s21  ;;  %v419_v13 = vstv %s2680_s28  ;;  %4861 = vst [vmem:[#allocation68_spill] sm:$0xff] %v2799_v31  ;;  %4863 = vst [vmem:[#allocation69_spill] sm:$0xff] %v2802_v32  ;;  %vm648_vm4 = vcmp.lt.s32.totalorder %v2748_v8, 127  ;;  %vm716_vm5 = vcmp.lt.s32.totalorder %v2748_v8, 113 }
  0xa4   : > { %4823 = sst [smem:[#allocation31_spill]] %s2680_s28  ;;  %s2712_s3 = sld [smem:[#allocation9 + $0xb]]  ;;  %v425_v16 = vstv %s2682_s8  ;;  %v431_v17 = vstv %s2684_s13  ;;  %4872 = vst [vmem:[#allocation75_spill] sm:$0xff] %v2827_v43  ;;  %4873 = vst [vmem:[#allocation76_spill] sm:$0xff] %v2830_v44  ;;  %vm784_vm6 = vcmp.lt.s32.totalorder %v2748_v8, 112  ;;  %vm852_vm7 = vcmp.lt.s32.totalorder %v2748_v8, 111 }
  0xa5   : > { %4824 = sst [smem:[#allocation32_spill]] %s2682_s8  ;;  %s2718_s25 = sld [smem:[#allocation9 + $0x26]]  ;;  %v437_v18 = vstv %s2686_s18  ;;  %v443_v19 = vstv %s2688_s12  ;;  %v333_v47 = vld [vmem:[#allocation7 + $0x6] ss:$8 sm:$0x3] }
  0xa6   : > { %530 = vrot.lane.b32.xlu1 %v2648_v1, %s4656_s14  ;;  %528 = vrot.lane.b32.xlu0 %v2641_v0, %s4656_s14  ;;  %4825 = sst [smem:[#allocation33_spill]] %s2688_s12  ;;  %s2698_s14 = sld [smem:[#allocation9 + $0x12]]  ;;  %v2981_v46 = vrot.slane %v333_v47, %v2728_v5 }
  0xa7   : > { %4832 = sst [smem:[#allocation40_spill]] %s2702_s30  ;;  %s2720_s24 = sld [smem:[#allocation9 + $0x2f]] }
  0xa8   : > { %4831 = sst [smem:[#allocation39_spill]] %s2700_s10  ;;  %s2716_s19 = sld [smem:[#allocation9 + $0x1d]]  ;;  %4900 = vst [vmem:[#allocation97_spill] sm:$0xff] %v2981_v46 }
  0xa9   : > { %4833 = sst [smem:[#allocation41_spill]] %s2704_s15  ;;  %s2722_s17 = sld [smem:[#allocation9 + $0x38]] }
  0xaa   : > { %646 = vrot.lane.b32.xlu1 %v2648_v1, %s4652_s11  ;;  %644 = vrot.lane.b32.xlu0 %v2641_v0, %s4652_s11  ;;  %s2694_s11 = sld [smem:[#allocation9]]  ;;  %4834 = sst [smem:[#allocation42_spill]] %s2706_s0 }
  0xab   : > { %4835 = sst [smem:[#allocation43_spill]] %s2708_s1  ;;  %s2724_s26 = sld [smem:[#allocation9 + $0x41]] }
  0xac   : > { %4830 = sst [smem:[#allocation38_spill]] %s2698_s14  ;;  %s2732_s23 = sld [smem:[#allocation9 + $0xc]] }
  0xad   : > { %4836 = sst [smem:[#allocation44_spill]] %s2714_s4  ;;  %s2726_s5 = sld [smem:[#allocation9 + $0x3]] }
  0xae   : > { %714 = vrot.lane.b32.xlu1 %v2648_v1, %s4650_s16  ;;  %712 = vrot.lane.b32.xlu0 %v2641_v0, %s4650_s16  ;;  %s2692_s16 = sld [smem:[#allocation9 + $0x40]]  ;;  %4837 = sst [smem:[#allocation45_spill]] %s2716_s19 }
  0xaf   : > { %4838 = sst [smem:[#allocation46_spill]] %s2718_s25  ;;  %s2734_s6 = sld [smem:[#allocation9 + $0x15]] }
  0xb0   : > { %4828 = sst [smem:[#allocation36_spill]] %s2694_s11  ;;  %s2736_s22 = sld [smem:[#allocation9 + $0x1e]]  ;;  %v361_v22 = vstv %s2694_s11 }
  0xb1   : > { %4839 = sst [smem:[#allocation47_spill]] %s2720_s24  ;;  %s2738_s27 = sld [smem:[#allocation9 + $0x27]] }
  0xb2   : > { %782 = vrot.lane.b32.xlu1 %v2648_v1, %s4648_s20  ;;  %780 = vrot.lane.b32.xlu0 %v2641_v0, %s4648_s20  ;;  %s2690_s20 = sld [smem:[#allocation9 + $0x37]]  ;;  %4840 = sst [smem:[#allocation48_spill]] %s2722_s17 }
  0xb3   : > { %4841 = sst [smem:[#allocation49_spill]] %s2724_s26  ;;  %s2740_s9 = sld [smem:[#allocation9 + $0x30]] }
  0xb4   : > { %4827 = sst [smem:[#allocation35_spill]] %s2692_s16  ;;  %s2742_s29 = sld [smem:[#allocation9 + $0x39]]  ;;  %v455_v21 = vstv %s2692_s16 }
  0xb5   : > { %4842 = sst [smem:[#allocation50_spill]] %s2726_s5  ;;  %s2744_s5 = sld [smem:[#allocation9 + $0x42]] }
  0xb6   : > { %850 = vrot.lane.b32.xlu1 %v2648_v1, %s4654_s7  ;;  %848 = vrot.lane.b32.xlu0 %v2641_v0, %s4654_s7  ;;  %s2696_s7 = sld [smem:[#allocation9 + $0x9]]  ;;  %4843 = sst [smem:[#allocation51_spill]] %s2732_s23 }
  0xb7   : > { %4844 = sst [smem:[#allocation52_spill]] %s2734_s6  ;;  %s2746_s26 = sld [smem:[#allocation9 + $0x4]] }
  0xb8   : > { %4826 = sst [smem:[#allocation34_spill]] %s2690_s20  ;;  %s2776_s28 = sld [smem:[#allocation9 + $0x31]]  ;;  %v449_v20 = vstv %s2690_s20 }
  0xb9   : > { %4845 = sst [smem:[#allocation53_spill]] %s2736_s22  ;;  %s2786_s8 = sld [smem:[#allocation9 + $0x5]] }
  0xba   : > { %4846 = sst [smem:[#allocation54_spill]] %s2738_s27  ;;  %s2778_s21 = sld [smem:[#allocation9 + $0x3a]] }
  0xbb   : > { %4847 = sst [smem:[#allocation55_spill]] %s2740_s9  ;;  %s2756_s9 = sld [smem:[#allocation9 + $0xd]] }
  0xbc   : > { %4829 = sst [smem:[#allocation37_spill]] %s2696_s7  ;;  %v365_v23 = vstv %s2696_s7  ;;  %s2792_s12 = sld [smem:[#allocation9 + $0xe]] }
  0xbd   : > { %4848 = sst [smem:[#allocation56_spill]] %s2742_s29  ;;  %s2758_s29 = sld [smem:[#allocation9 + $0x16]] }
  0xbe   : > { %4849 = sst [smem:[#allocation57_spill]] %s2744_s5  ;;  %s2768_s5 = sld [smem:[#allocation9 + $0x1f]]  ;;  %v627_v56 = vstv %s2776_s28 }
  0xbf   : > { %4850 = sst [smem:[#allocation58_spill]] %s2746_s26  ;;  %s2770_s26 = sld [smem:[#allocation9 + $0x28]]  ;;  %v2895_v11 = vmul.f32 %v627_v56, %v2648_v1  ;;  %v2936_v41 = vmul.f32 %v627_v56, %v2641_v0  ;;  %v2952_v56 = vrot.slane %v329_v7, %v2730_v6 }
  0xc0   : > { %4857 = sst [smem:[#allocation65_spill]] %s2786_s8  ;;  %s2794_s11 = sld [smem:[#allocation9 + $0x17]]  ;;  %v633_v57 = vstv %s2778_s21 }
  0xc1   : > { %s2804_s30 = sld [smem:[#allocation9 + $0x20]]  ;;  %s2806_s15 = sld [smem:[#allocation9 + $0x29]]  ;;  %v603_v51 = vstv %s2756_s9  ;;  %4881 = vst [vmem:[#allocation79_spill] sm:$0xff] %v2895_v11  ;;  %v2898_v24 = vmul.f32 %v633_v57, %v2648_v1  ;;  %4889 = vst [vmem:[#allocation86_spill] sm:$0xff] %v2936_v41 }
  0xc2   : > { %4858 = sst [smem:[#allocation66_spill]] %s2792_s12  ;;  %s2814_s1 = sld [smem:[#allocation9 + $0x3b]]  ;;  %v2878_v63 = vmul.f32 %v603_v51, %v2648_v1  ;;  %v2912_v45 = vmul.f32 %v603_v51, %v2641_v0  ;;  %4893 = vst [vmem:[#allocation90_spill] sm:$0xff] %v2952_v56 }
  0xc3   : > { %s2812_s0 = sld [smem:[#allocation9 + $0x32]]  ;;  %s4868_s10 = sld [smem:[#allocation58_spill]]  ;;  %v609_v52 = vstv %s2758_s29  ;;  %4882 = vst [vmem:[#allocation80_spill] sm:$0xff] %v2898_v24 }
  0xc4   : > { %s2820_s14 = sld [smem:[#allocation9 + $0x44]]  ;;  %s2822_s20 = sld [smem:[#allocation9 + $0x6]]  ;;  %v615_v53 = vstv %s2768_s5  ;;  %v2881_v2 = vmul.f32 %v609_v52, %v2648_v1  ;;  %v2921_v40 = vmul.f32 %v609_v52, %v2641_v0  ;;  %v2943_v52 = vmul.f32 %v633_v57, %v2641_v0 }
  0xc5   : > { %4856 = sst [smem:[#allocation64_spill]] %s2770_s26  ;;  %s2784_s26 = sld [smem:[#allocation9 + $0x43]]  ;;  %v2884_v3 = vmul.f32 %v615_v53, %v2648_v1  ;;  %v2924_v39 = vmul.f32 %v615_v53, %v2641_v0  ;;  %v2961_v57 = vrot.slane %v331_v59, %v2728_v5 }
  0xc6   : > { %4859 = sst [smem:[#allocation67_spill]] %s2794_s11  ;;  %s4871_s19 = sld [smem:[#allocation64_spill]]  ;;  %4891 = vst [vmem:[#allocation88_spill] sm:$0xff] %v2943_v52 }
  0xc7   : > { %4864 = sst [smem:[#allocation70_spill]] %s2804_s30  ;;  %s2832_s25 = sld [smem:[#allocation9 + $0xf]]  ;;  %4879 = vst [vmem:[#allocation77_spill] sm:$0xff] %v2884_v3  ;;  %4887 = vst [vmem:[#allocation84_spill] sm:$0xff] %v2924_v39 }
  0xc8   : > { %4865 = sst [smem:[#allocation71_spill]] %s2806_s15  ;;  %s2834_s17 = sld [smem:[#allocation9 + $0x18]]  ;;  %4896 = vst [vmem:[#allocation93_spill] sm:$0xff] %v2961_v57 }
  0xc9   : > { %4866 = sst [smem:[#allocation72_spill]] %s2812_s0  ;;  %s4875_s7 = sld [smem:[#allocation55_spill]]  ;;  %v597_v48 = vstv %s4868_s10 }
  0xca   : > { %4867 = sst [smem:[#allocation73_spill]] %s2814_s1  ;;  %s2840_s23 = sld [smem:[#allocation9 + $0x21]]  ;;  %v2868_v61 = vmul.f32 %v597_v48, %v2648_v1  ;;  %v2871_v62 = vmul.f32 %v597_v48, %v2641_v0 }
  0xcb   : > { %4869 = sst [smem:[#allocation58_spill]] %s2820_s14  ;;  %s2842_s16 = sld [smem:[#allocation9 + $0x2a]]  ;;  %v639_v58 = vstv %s2784_s26 }
  0xcc   : > { %4870 = sst [smem:[#allocation74_spill]] %s2822_s20  ;;  %s4876_s24 = sld [smem:[#allocation56_spill]]  ;;  %v621_v54 = vstv %s4871_s19  ;;  %v2901_v48 = vmul.f32 %v639_v58, %v2648_v1  ;;  %v2946_v53 = vmul.f32 %v639_v58, %v2641_v0  ;;  %v2984_v58 = vrot.slane %v333_v47, %v2730_v6 }
  0xcd   : > { %4874 = sst [smem:[#allocation64_spill]] %s2832_s25  ;;  %s2852_s6 = sld [smem:[#allocation9 + $0x33]]  ;;  %v2887_v4 = vmul.f32 %v621_v54, %v2648_v1  ;;  %v2933_v55 = vmul.f32 %v621_v54, %v2641_v0  ;;  %v2949_v54 = vrot.slane %v329_v7, %v2728_v5  ;;  %v2964_v0 = vrot.slane %v331_v59, %v2730_v6  ;;  %v335_v7 = vld [vmem:[#allocation7 + $0x7] ss:$8 sm:$0x3] }
  0xce   : > { %s2854_s22 = sld [smem:[#allocation9 + $0x3c]]  ;;  %s2861_s10 = sld [smem:[#allocation9 + $0x45]]  ;;  %4883 = vst [vmem:[#allocation81_spill] sm:$0xff] %v2901_v48  ;;  %4892 = vst [vmem:[#allocation89_spill] sm:$0xff] %v2946_v53  ;;  %v3008_v29 = vrot.slane %v335_v7, %v2730_v6 }
  0xcf   : > { %s2863_s27 = sld [smem:[#allocation9 + $0x7]]  ;;  %s2873_s29 = sld [smem:[#allocation9 + $0x10]]  ;;  %4880 = vst [vmem:[#allocation78_spill] sm:$0xff] %v2887_v4  ;;  %4888 = vst [vmem:[#allocation85_spill] sm:$0xff] %v2933_v55 }
  0xd0   : > { %s2875_s19 = sld [smem:[#allocation9 + $0x19]]  ;;  %s2889_s26 = sld [smem:[#allocation9 + $0x22]]  ;;  %4897 = vst [vmem:[#allocation94_spill] sm:$0xff] %v2964_v0  ;;  %4901 = vst [vmem:[#allocation98_spill] sm:$0xff] %v2984_v58 }
  0xd1   : > { %s2891_s5 = sld [smem:[#allocation9 + $0x2b]]  ;;  %s2904_s9 = sld [smem:[#allocation9 + $0x34]]  ;;  %4903 = vst [vmem:[#allocation100_spill] sm:$0xff] %v3008_v29 }
  0xd2   : > { %s2906_s21 = sld [smem:[#allocation9 + $0x3d]]  ;;  %s2914_s28 = sld [smem:[#allocation9 + $0x46]] }
  0xd3   : > { %s2916_s4 = sld [smem:[#allocation9 + $0x8]]  ;;  %s2926_s30 = sld [smem:[#allocation9 + $0x11]] }
  0xd4   : > { %4878 = sst [smem:[#allocation55_spill]] %s2861_s10  ;;  %s2928_s11 = sld [smem:[#allocation9 + $0x1a]] }
  0xd5   : > { %s2938_s0 = sld [smem:[#allocation9 + $0x23]]  ;;  %s2940_s15 = sld [smem:[#allocation9 + $0x2c]] }
  0xd6   : > { %s2954_s14 = sld [smem:[#allocation9 + $0x35]]  ;;  %s2956_s1 = sld [smem:[#allocation9 + $0x3e]] }
  0xd7   : > { %4884 = sst [smem:[#allocation56_spill]] %s2904_s9  ;;  %s2966_s12 = sld [smem:[#allocation9 + $0x47]] }
  0xd8   : > { %4885 = sst [smem:[#allocation82_spill]] %s2906_s21  ;;  %s2968_s8 = sld [smem:[#allocation10]] }
  0xd9   : > { %4886 = sst [smem:[#allocation83_spill]] %s2914_s28  ;;  %s2974_s25 = sld [smem:[#allocation10 + $0x1]] }
  0xda   : > { %s2976_s20 = sld [smem:[#allocation10 + $0x2]]  ;;  %s4912_s28 = sld [smem:[#allocation38_spill]] }
  0xdb   : > { %4890 = sst [smem:[#allocation87_spill]] %s2940_s15  ;;  %s4913_s15 = sld [smem:[#allocation39_spill]] }
  0xdc   : > { %4894 = sst [smem:[#allocation91_spill]] %s2954_s14  ;;  %s4914_s10 = sld [smem:[#allocation40_spill]] }
  0xdd   : > { %4895 = sst [smem:[#allocation92_spill]] %s2956_s1  ;;  %s4915_s13 = sld [smem:[#allocation41_spill]] }
  0xde   : > { %4898 = sst [smem:[#allocation95_spill]] %s2966_s12  ;;  %s4916_s18 = sld [smem:[#allocation42_spill]] }
  0xdf   : > { %s4917_s21 = sld [smem:[#allocation43_spill]]  ;;  %s4930_s1 = sld [smem:[#allocation44_spill]] }
  0xe0   : > { %4899 = sst [smem:[#allocation96_spill]] %s2976_s20  ;;  %s4931_s12 = sld [smem:[#allocation45_spill]] }
  0xe1   : > { %v4920_v29 = vstv %s4913_s15  ;;  %s4932_s15 = sld [smem:[#allocation46_spill]]  ;;  %s4933_s14 = sld [smem:[#allocation47_spill]] }
  0xe2   : > { %v4922_v46 = vstv %s4914_s10  ;;  %s4934_s20 = sld [smem:[#allocation48_spill]]  ;;  %s4936_s9 = sld [smem:[#allocation49_spill]] }
  0xe3   : > { %v4923_v57 = vmov %v4922_v46  ;;  %s4955_s10 = sld [smem:[#allocation53_spill]] }
  0xe4   : > { %v4926_v11 = vstv %s4916_s18  ;;  %s4958_s18 = sld [smem:[#allocation57_spill]] }
  0xe5   : > { %v4927_v41 = vmov %v4926_v11  ;;  %v4928_v4 = vstv %s4917_s21  ;;  %s4979_s21 = sld [smem:[#allocation67_spill]] }
  0xe6   : > { %v4929_v55 = vmov %v4928_v4 }
 0x10c   : > { %v2844_v49 = vpop.permute.xlu1 %392  ;;  %v2846_v50 = vpop.permute.xlu0 %338 }
 0x110   : > { %v395_v1 = vpop.permute.xlu1 %394  ;;  %v341_v42 = vpop.permute.xlu0 %340 }
 0x111   : > { %v397_v38 = vsel %vm396_vm0, %v2844_v49, %v395_v1  ;;  %v398_v60 = vsel %vm396_vm0, %v395_v1, %v2844_v49  ;;  %v3005_v1 = vrot.slane %v335_v7, %v2728_v5  ;;  %v346_v34 = vsel %vm344_vm1, %v341_v42, %v2846_v50 }
 0x112   : > { %v410_v36 = vmul.f32 %v2751_v9, %v398_v60  ;;  %v411_v47 = vmul.f32 %v2754_v10, %v397_v38  ;;  %v345_v5 = vsel %vm344_vm1, %v2846_v50, %v341_v42  ;;  %v358_v33 = vmul.f32 %v2763_v14, %v346_v34 }
 0x113   : > { %4902 = vst [vmem:[#allocation99_spill] sm:$0xff] %v3005_v1  ;;  %v359_v34 = vmul.f32 %v2766_v15, %v345_v5  ;;  %v4918_v14 = vstv %s4912_s28  ;;  %s4954_s28 = sld [smem:[#allocation52_spill]] }
 0x114   : > { %v2992_v37 = vpop.permute.xlu1 %462  ;;  %v2994_v59 = vpop.permute.xlu0 %460  ;;  %v414_v49 = vmul.f32 %v413_v12, %v410_v36  ;;  %v415_v35 = vmul.f32 %v413_v12, %v411_v47  ;;  %v420_v30 = vmul.f32 %v419_v13, %v410_v36  ;;  %v421_v6 = vmul.f32 %v419_v13, %v411_v47 }
 0x115   : > { %v426_v38 = vmul.f32 %v425_v16, %v410_v36  ;;  %v427_v7 = vmul.f32 %v425_v16, %v411_v47  ;;  %v432_v60 = vmul.f32 %v431_v17, %v410_v36  ;;  %v433_v12 = vmul.f32 %v431_v17, %v411_v47 }
 0x116   : > { %v438_v51 = vmul.f32 %v437_v18, %v410_v36  ;;  %v439_v5 = vmul.f32 %v437_v18, %v411_v47  ;;  %v444_v13 = vmul.f32 %v443_v19, %v410_v36  ;;  %v445_v16 = vmul.f32 %v443_v19, %v411_v47 }
 0x117   : > { %v450_v28 = vmul.f32 %v449_v20, %v410_v36  ;;  %v451_v17 = vmul.f32 %v449_v20, %v411_v47  ;;  %v456_v27 = vmul.f32 %v455_v21, %v410_v36  ;;  %v457_v18 = vmul.f32 %v455_v21, %v411_v47 }
 0x118   : > { %v531_v42 = vpop.permute.xlu1 %530  ;;  %v529_v50 = vpop.permute.xlu0 %528  ;;  %v362_v26 = vmul.f32 %v361_v22, %v358_v33  ;;  %v363_v25 = vmul.f32 %v361_v22, %v359_v34  ;;  %v366_v19 = vmul.f32 %v365_v23, %v358_v33  ;;  %v367_v15 = vmul.f32 %v365_v23, %v359_v34 }
 0x119   : > { %v370_v10 = vmul.f32 %v4918_v14, %v358_v33  ;;  %v4919_v20 = vmov %v4918_v14  ;;  %v374_v36 = vmul.f32 %v4920_v29, %v358_v33  ;;  %v4921_v21 = vmov %v4920_v29 }
 0x11a   : > { %v371_v9 = vmul.f32 %v4919_v20, %v359_v34  ;;  %v375_v47 = vmul.f32 %v4921_v21, %v359_v34  ;;  %v378_v0 = vmul.f32 %v4922_v46, %v358_v33  ;;  %v379_v48 = vmul.f32 %v4923_v57, %v359_v34 }
 0x11b   : > { %v4924_v22 = vstv %s4915_s13  ;;  %v386_v23 = vmul.f32 %v4926_v11, %v358_v33  ;;  %v387_v14 = vmul.f32 %v4927_v41, %v359_v34  ;;  %v390_v20 = vmul.f32 %v4928_v4, %v358_v33  ;;  %s4956_s13 = sld [smem:[#allocation54_spill]] }
 0x11c   : > { %v647_v1 = vpop.permute.xlu1 %646  ;;  %v645_v58 = vpop.permute.xlu0 %644  ;;  %v382_v53 = vmul.f32 %v4924_v22, %v358_v33  ;;  %v4925_v24 = vmov %v4924_v22  ;;  %v391_v29 = vmul.f32 %v4929_v55, %v359_v34  ;;  %v416_v3 = vadd.f32 %v414_v49, %v362_v26 }
 0x11d   : > { %v383_v52 = vmul.f32 %v4925_v24, %v359_v34  ;;  %v465_v46 = vsel %vm464_vm2, %v2994_v59, %v2992_v37  ;;  %v466_v57 = vsel %vm464_vm2, %v2992_v37, %v2994_v59  ;;  %v417_v24 = vadd.f32 %v415_v35, %v363_v25 }
 0x11e   : > { %v422_v21 = vadd.f32 %v420_v30, %v366_v19  ;;  %v423_v11 = vadd.f32 %v421_v6, %v367_v15  ;;  %v428_v22 = vadd.f32 %v426_v38, %v370_v10  ;;  %v429_v41 = vadd.f32 %v427_v7, %v371_v9 }
 0x11f   : > { %v434_v39 = vadd.f32 %v432_v60, %v374_v36  ;;  %v435_v33 = vadd.f32 %v433_v12, %v375_v47  ;;  %v534_v26 = vsel %vm532_vm3, %v531_v42, %v529_v50  ;;  %v440_v55 = vadd.f32 %v438_v51, %v378_v0 }
 0x120   : > { %v478_v4 = vmul.f32 %v2799_v31, %v466_v57  ;;  %v479_v49 = vmul.f32 %v2802_v32, %v465_v46  ;;  %v533_v34 = vsel %vm532_vm3, %v529_v50, %v531_v42  ;;  %v715_v25 = vpop.permute.xlu1 %714  ;;  %v713_v15 = vpop.permute.xlu0 %712  ;;  %v441_v10 = vadd.f32 %v439_v5, %v379_v48 }
 0x121   : > { %v446_v9 = vadd.f32 %v444_v13, %v382_v53  ;;  %v447_v30 = vadd.f32 %v445_v16, %v383_v52  ;;  %v452_v35 = vadd.f32 %v450_v28, %v386_v23  ;;  %v453_v37 = vadd.f32 %v451_v17, %v387_v14 }
 0x122   : > { %v458_v51 = vadd.f32 %v456_v27, %v390_v20  ;;  %v459_v0 = vadd.f32 %v457_v18, %v391_v29  ;;  %v546_v59 = vmul.f32 %v2827_v43, %v534_v26  ;;  %v547_v6 = vmul.f32 %v2830_v44, %v533_v34 }
 0x123   : > { %v3117_v48 = vsel %vm648_vm4, %v645_v58, %v647_v1  ;;  %v3121_v28 = vsel %vm648_vm4, %v647_v1, %v645_v58  ;;  %v3125_v27 = vsel %vm716_vm5, %v713_v15, %v715_v25  ;;  %v4935_v52 = vstv %s2710_s2  ;;  %s4951_s2 = sld [smem:[#allocation50_spill]] }
 0x124   : > { %v482_v53 = vmul.f32 %v4935_v52, %v478_v4  ;;  %v4937_v60 = vmov %v4935_v52  ;;  %v4938_v7 = vstv %s2712_s3  ;;  %v3135_v50 = vsel %vm716_vm5, %v715_v25, %v713_v15  ;;  %s4953_s3 = sld [smem:[#allocation51_spill]]  ;;  %v781_v32 = vpop.permute.xlu0 %780 }
 0x125   : > { %v483_v38 = vmul.f32 %v4937_v60, %v479_v49  ;;  %v488_v42 = vmul.f32 %v4938_v7, %v478_v4  ;;  %v4939_v12 = vmov %v4938_v7  ;;  %v4940_v1 = vstv %s4930_s1  ;;  %s4984_s1 = sld [smem:[#allocation70_spill]] }
 0x126   : > { %v489_v58 = vmul.f32 %v4939_v12, %v479_v49  ;;  %v494_v5 = vmul.f32 %v4940_v1, %v478_v4  ;;  %v4941_v13 = vmov %v4940_v1  ;;  %v4942_v17 = vstv %s4931_s12  ;;  %s4989_s12 = sld [smem:[#allocation71_spill]] }
 0x127   : > { %v495_v16 = vmul.f32 %v4941_v13, %v479_v49  ;;  %v500_v18 = vmul.f32 %v4942_v17, %v478_v4  ;;  %v4943_v19 = vmov %v4942_v17  ;;  %v4944_v47 = vstv %s4932_s15  ;;  %s4995_s15 = sld [smem:[#allocation72_spill]] }
 0x128   : > { %v501_v36 = vmul.f32 %v4943_v19, %v479_v49  ;;  %v506_v23 = vmul.f32 %v4944_v47, %v478_v4  ;;  %v4945_v14 = vmov %v4944_v47  ;;  %v4946_v29 = vstv %s4933_s14  ;;  %s5000_s14 = sld [smem:[#allocation73_spill]] }
 0x129   : > { %v507_v20 = vmul.f32 %v4945_v14, %v479_v49  ;;  %v512_v46 = vmul.f32 %v4946_v29, %v478_v4  ;;  %v4947_v57 = vmov %v4946_v29  ;;  %v4948_v34 = vstv %s4934_s20  ;;  %s5002_s20 = sld [smem:[#allocation58_spill]] }
 0x12a   : > { %v513_v26 = vmul.f32 %v4947_v57, %v479_v49  ;;  %v518_v25 = vmul.f32 %v4948_v34, %v478_v4  ;;  %v4949_v15 = vmov %v4948_v34  ;;  %v4950_v60 = vstv %s4936_s9  ;;  %s5006_s9 = sld [smem:[#allocation74_spill]] }
 0x12b   : > { %v519_v52 = vmul.f32 %v4949_v15, %v479_v49  ;;  %v524_v7 = vmul.f32 %v4950_v60, %v478_v4  ;;  %v484_v12 = vadd.f32 %v482_v53, %v416_v3  ;;  %v485_v1 = vadd.f32 %v483_v38, %v417_v24 }
 0x12c   : > { %v490_v13 = vadd.f32 %v488_v42, %v422_v21  ;;  %v4952_v17 = vmov %v4950_v60  ;;  %v491_v47 = vadd.f32 %v489_v58, %v423_v11  ;;  %v496_v14 = vadd.f32 %v494_v5, %v428_v22 }
 0x12d   : > { %v525_v19 = vmul.f32 %v4952_v17, %v479_v49  ;;  %v497_v29 = vadd.f32 %v495_v16, %v429_v41  ;;  %v502_v57 = vadd.f32 %v500_v18, %v434_v39  ;;  %v503_v34 = vadd.f32 %v501_v36, %v435_v33 }
 0x12e   : > { %v508_v15 = vadd.f32 %v506_v23, %v440_v55  ;;  %v509_v3 = vadd.f32 %v507_v20, %v441_v10  ;;  %v514_v24 = vadd.f32 %v512_v46, %v446_v9  ;;  %v515_v21 = vadd.f32 %v513_v26, %v447_v30 }
 0x12f   : > { %v520_v4 = vadd.f32 %v518_v25, %v452_v35  ;;  %v521_v49 = vadd.f32 %v519_v52, %v453_v37  ;;  %v526_v11 = vadd.f32 %v524_v7, %v458_v51  ;;  %v527_v22 = vadd.f32 %v525_v19, %v459_v0 }
 0x130   : > { %v4957_v41 = vstv %s4951_s2  ;;  %v4960_v38 = vstv %s4953_s3  ;;  %v4962_v58 = vstv %s4954_s28  ;;  %v4964_v35 = vstv %s4955_s10  ;;  %s5010_s2 = sld [smem:[#allocation64_spill]]  ;;  %s5082_s3 = smov 15  }
 0x131   : > { %v550_v39 = vmul.f32 %v4957_v41, %v546_v59  ;;  %v4959_v53 = vmov %v4957_v41  ;;  %v556_v55 = vmul.f32 %v4960_v38, %v546_v59  ;;  %v4961_v42 = vmov %v4960_v38  ;;  %s5083_s28 = smov 1   ;;  %s5084_s10 = smov 127  }
 0x132   : > { %v551_v33 = vmul.f32 %v4959_v53, %v547_v6  ;;  %v557_v10 = vmul.f32 %v4961_v42, %v547_v6  ;;  %v562_v9 = vmul.f32 %v4962_v58, %v546_v59  ;;  %v4963_v5 = vmov %v4962_v58 }
 0x133   : > { %v563_v30 = vmul.f32 %v4963_v5, %v547_v6  ;;  %v568_v37 = vmul.f32 %v4964_v35, %v546_v59  ;;  %v4965_v16 = vmov %v4964_v35  ;;  %v4966_v18 = vstv %s4956_s13  ;;  %s3705_s13 = sld [smem:[#allocation12]] }
 0x134   : > { %v569_v51 = vmul.f32 %v4965_v16, %v547_v6  ;;  %v574_v0 = vmul.f32 %v4966_v18, %v546_v59  ;;  %v4967_v36 = vmov %v4966_v18  ;;  %v4968_v20 = vstv %s4875_s7  ;;  %s4975_s7 = sld [smem:[#allocation66_spill]] }
 0x135   : > { %v575_v23 = vmul.f32 %v4967_v36, %v547_v6  ;;  %v580_v46 = vmul.f32 %v4968_v20, %v546_v59  ;;  %v4969_v26 = vmov %v4968_v20  ;;  %v4970_v52 = vstv %s4876_s24  ;;  %s4974_s24 = sld [smem:[#allocation65_spill]] }
 0x136   : > { %v581_v25 = vmul.f32 %v4969_v26, %v547_v6  ;;  %v586_v60 = vmul.f32 %v4970_v52, %v546_v59  ;;  %v4971_v7 = vmov %v4970_v52  ;;  %v4972_v19 = vstv %s4958_s18  ;;  %v783_v52 = vpop.permute.xlu1 %782  ;;  %s3707_s18 = sld [smem:[#allocation12 + $0x9]] }
 0x137   : > { %v587_v17 = vmul.f32 %v4971_v7, %v547_v6  ;;  %v592_v41 = vmul.f32 %v4972_v19, %v546_v59  ;;  %v552_v53 = vadd.f32 %v550_v39, %v484_v12  ;;  %v553_v38 = vadd.f32 %v551_v33, %v485_v1 }
 0x138   : > { %v558_v42 = vadd.f32 %v556_v55, %v490_v13  ;;  %v4973_v58 = vmov %v4972_v19  ;;  %v559_v35 = vadd.f32 %v557_v10, %v491_v47  ;;  %v564_v16 = vadd.f32 %v562_v9, %v496_v14 }
 0x139   : > { %v593_v5 = vmul.f32 %v4973_v58, %v547_v6  ;;  %v565_v18 = vadd.f32 %v563_v30, %v497_v29  ;;  %v570_v36 = vadd.f32 %v568_v37, %v502_v57  ;;  %v571_v20 = vadd.f32 %v569_v51, %v503_v34  ;;  %v849_v30 = vpop.permute.xlu0 %848  ;;  %v4990_v37 = vld [vmem:[#allocation81_spill] sm:$0xff] }
 0x13a   : > { %v576_v44 = vadd.f32 %v574_v0, %v508_v15  ;;  %v577_v26 = vadd.f32 %v575_v23, %v509_v3  ;;  %v582_v43 = vadd.f32 %v580_v46, %v514_v24  ;;  %v583_v7 = vadd.f32 %v581_v25, %v515_v21  ;;  %v4978_v3 = vld [vmem:[#allocation85_spill] sm:$0xff]  ;;  %v4980_v24 = vld [vmem:[#allocation78_spill] sm:$0xff]  ;;  %v4981_v21 = vld [vmem:[#allocation86_spill] sm:$0xff] }
 0x13b   : > { %v588_v31 = vadd.f32 %v586_v60, %v520_v4  ;;  %v589_v59 = vadd.f32 %v587_v17, %v521_v49  ;;  %v594_v19 = vadd.f32 %v592_v41, %v526_v11  ;;  %v595_v8 = vadd.f32 %v593_v5, %v527_v22  ;;  %v4982_v4 = vld [vmem:[#allocation79_spill] sm:$0xff]  ;;  %v4983_v49 = vld [vmem:[#allocation88_spill] sm:$0xff]  ;;  %v4985_v11 = vld [vmem:[#allocation80_spill] sm:$0xff] }
 0x13c   : > { %v600_v12 = vadd.f32 %v2871_v62, %v552_v53  ;;  %v662_v6 = vmul.f32 %v2949_v54, %v3117_v48  ;;  %v663_v1 = vmul.f32 %v2952_v56, %v3121_v28  ;;  %v601_v13 = vadd.f32 %v2868_v61, %v553_v38  ;;  %v4976_v62 = vld [vmem:[#allocation84_spill] sm:$0xff]  ;;  %v4977_v48 = vld [vmem:[#allocation77_spill] sm:$0xff] }
 0x13d   : > { %v606_v47 = vadd.f32 %v2912_v45, %v558_v42  ;;  %v607_v14 = vadd.f32 %v2878_v63, %v559_v35  ;;  %v612_v29 = vadd.f32 %v2921_v40, %v564_v16  ;;  %v613_v57 = vadd.f32 %v2881_v2, %v565_v18  ;;  %v4986_v22 = vld [vmem:[#allocation89_spill] sm:$0xff]  ;;  %v4997_v38 = vld [vmem:[#allocation94_spill] sm:$0xff] }
 0x13e   : > { %v618_v34 = vadd.f32 %v4976_v62, %v570_v36  ;;  %v619_v15 = vadd.f32 %v4977_v48, %v571_v20  ;;  %v624_v28 = vadd.f32 %v4978_v3, %v576_v44  ;;  %v625_v61 = vadd.f32 %v4980_v24, %v577_v26  ;;  %v851_v44 = vpop.permute.xlu1 %850 }
 0x13f   : > { %v630_v45 = vadd.f32 %v4981_v21, %v582_v43  ;;  %v631_v63 = vadd.f32 %v4982_v4, %v583_v7  ;;  %v636_v40 = vadd.f32 %v4983_v49, %v588_v31  ;;  %v637_v2 = vadd.f32 %v4985_v11, %v589_v59  ;;  %v4993_v31 = vld [vmem:[#allocation93_spill] sm:$0xff] }
 0x140   : > { %v642_v39 = vadd.f32 %v4986_v22, %v594_v19  ;;  %v4987_v33 = vstv %s4974_s24  ;;  %v643_v51 = vadd.f32 %v4990_v37, %v595_v8  ;;  %v4991_v43 = vstv %s4975_s7  ;;  %s3713_s24 = sld [smem:[#allocation12 + $0x12]]  ;;  %s3715_s7 = sld [smem:[#allocation12 + $0x1b]] }
 0x141   : > { %v666_v55 = vmul.f32 %v4987_v33, %v662_v6  ;;  %v4988_v10 = vmov %v4987_v33  ;;  %v672_v0 = vmul.f32 %v4991_v43, %v662_v6  ;;  %v4992_v23 = vmov %v4991_v43 }
 0x142   : > { %v667_v9 = vmul.f32 %v4988_v10, %v663_v1  ;;  %v673_v46 = vmul.f32 %v4992_v23, %v663_v1  ;;  %v3227_v25 = vmul.f32 %v4993_v31, %v3125_v27  ;;  %v4994_v60 = vstv %s4979_s21  ;;  %s3717_s21 = sld [smem:[#allocation12 + $0x24]] }
 0x143   : > { %v678_v17 = vmul.f32 %v4994_v60, %v662_v6  ;;  %v4996_v41 = vmov %v4994_v60  ;;  %v3235_v42 = vmul.f32 %v4997_v38, %v3135_v50  ;;  %v785_v8 = vsel %vm784_vm6, %v781_v32, %v783_v52 }
 0x144   : > { %v679_v53 = vmul.f32 %v4996_v41, %v663_v1  ;;  %v4999_v5 = vstv %s4984_s1  ;;  %v786_v27 = vsel %vm784_vm6, %v783_v52, %v781_v32  ;;  %v853_v36 = vsel %vm852_vm7, %v849_v30, %v851_v44  ;;  %s3719_s1 = sld [smem:[#allocation12 + $0x2d]] }
 0x145   : > { %v684_v35 = vmul.f32 %v4999_v5, %v662_v6  ;;  %v5001_v16 = vmov %v4999_v5  ;;  %v668_v20 = vadd.f32 %v666_v55, %v600_v12  ;;  %v669_v50 = vadd.f32 %v667_v9, %v601_v13 }
 0x146   : > { %v685_v18 = vmul.f32 %v5001_v16, %v663_v1  ;;  %v5003_v26 = vstv %s4989_s12  ;;  %v854_v59 = vsel %vm852_vm7, %v851_v44, %v849_v30  ;;  %v674_v19 = vadd.f32 %v672_v0, %v606_v47  ;;  %v5013_v30 = vld [vmem:[#allocation97_spill] sm:$0xff]  ;;  %s5085_s12 = smov 113  }
 0x147   : > { %v690_v7 = vmul.f32 %v5003_v26, %v662_v6  ;;  %v675_v62 = vadd.f32 %v673_v46, %v607_v14  ;;  %v5004_v48 = vmov %v5003_v26  ;;  %v5005_v24 = vstv %s4995_s15  ;;  %v5017_v46 = vld [vmem:[#allocation99_spill] sm:$0xff]  ;;  %s3723_s15 = sld [smem:[#allocation12 + $0x36]] }
 0x148   : > { %v691_v3 = vmul.f32 %v5004_v48, %v663_v1  ;;  %v696_v32 = vmul.f32 %v5005_v24, %v662_v6  ;;  %v680_v52 = vadd.f32 %v678_v17, %v612_v29  ;;  %v681_v21 = vadd.f32 %v679_v53, %v613_v57  ;;  %v5014_v57 = vld [vmem:[#allocation98_spill] sm:$0xff] }
 0x149   : > { %v5007_v4 = vmov %v5005_v24  ;;  %v5008_v12 = vstv %s5000_s14  ;;  %v686_v11 = vadd.f32 %v684_v35, %v618_v34  ;;  %v687_v22 = vadd.f32 %v685_v18, %v619_v15  ;;  %s3725_s14 = sld [smem:[#allocation12 + $0x3f]] }
 0x14a   : > { %v697_v49 = vmul.f32 %v5007_v4, %v663_v1  ;;  %v702_v13 = vmul.f32 %v5008_v12, %v662_v6  ;;  %v5009_v33 = vmov %v5008_v12  ;;  %v5011_v10 = vstv %s5002_s20  ;;  %s3729_s20 = sld [smem:[#allocation12 + $0x1]] }
 0x14b   : > { %v703_v55 = vmul.f32 %v5009_v33, %v663_v1  ;;  %v708_v47 = vmul.f32 %v5011_v10, %v662_v6  ;;  %v3263_v14 = vadd.f32 %v690_v7, %v624_v28  ;;  %v5012_v9 = vmov %v5011_v10 }
 0x14c   : > { %v709_v44 = vmul.f32 %v5012_v9, %v663_v1  ;;  %v3268_v29 = vmul.f32 %v5013_v30, %v785_v8  ;;  %v3271_v37 = vmul.f32 %v5014_v57, %v786_v27  ;;  %v3273_v34 = vadd.f32 %v691_v3, %v625_v61  ;;  %v5018_v61 = vld [vmem:[#allocation100_spill] sm:$0xff] }
 0x14d   : > { %v3275_v15 = vadd.f32 %v696_v32, %v630_v45  ;;  %v5015_v43 = vstv %s5006_s9  ;;  %v3283_v1 = vadd.f32 %v697_v49, %v631_v63  ;;  %v3285_v23 = vadd.f32 %v702_v13, %v636_v40  ;;  %s3731_s9 = sld [smem:[#allocation12 + $0xa]] }
 0x14e   : > { %v734_v6 = vmul.f32 %v5015_v43, %v3227_v25  ;;  %v5016_v28 = vmov %v5015_v43  ;;  %v3288_v60 = vmul.f32 %v5017_v46, %v853_v36  ;;  %v3291_v45 = vmul.f32 %v5018_v61, %v854_v59 }
 0x14f   : > { %v735_v0 = vmul.f32 %v5016_v28, %v3235_v42  ;;  %v3293_v17 = vadd.f32 %v703_v55, %v637_v2  ;;  %v5019_v41 = vstv %s5010_s2  ;;  %v5021_v40 = vstv %s2834_s17  ;;  %s5052_s17 = sld [smem:[#allocation96_spill]]  ;;  %s3737_s2 = sld [smem:[#allocation12 + $0x13]] }
 0x150   : > { %v740_v53 = vmul.f32 %v5019_v41, %v3227_v25  ;;  %v5020_v63 = vmov %v5019_v41  ;;  %v746_v5 = vmul.f32 %v5021_v40, %v3227_v25  ;;  %v3304_v35 = vadd.f32 %v708_v47, %v642_v39 }
 0x151   : > { %v741_v8 = vmul.f32 %v5020_v63, %v3235_v42  ;;  %v3306_v16 = vadd.f32 %v709_v44, %v643_v51  ;;  %v5022_v18 = vstv %s2863_s27  ;;  %v736_v26 = vadd.f32 %v734_v6, %v668_v20  ;;  %s5057_s27 = sld [smem:[#allocation55_spill]] }
 0x152   : > { %v802_v27 = vmul.f32 %v5022_v18, %v3268_v29  ;;  %v5023_v2 = vmov %v5022_v18  ;;  %v737_v7 = vadd.f32 %v735_v0, %v669_v50  ;;  %v5024_v59 = vmov %v5021_v40 }
 0x153   : > { %v803_v36 = vmul.f32 %v5023_v2, %v3271_v37  ;;  %v747_v48 = vmul.f32 %v5024_v59, %v3235_v42  ;;  %v5025_v3 = vstv %s2840_s23  ;;  %v5026_v51 = vstv %s2873_s29  ;;  %s3380_s23 = sld [smem:[#allocation10 + $0x4]]  ;;  %s5072_s29 = sld [smem:[#allocation83_spill]] }
 0x154   : > { %v752_v39 = vmul.f32 %v5025_v3, %v3227_v25  ;;  %v808_v24 = vmul.f32 %v5026_v51, %v3268_v29  ;;  %v5027_v32 = vmov %v5026_v51  ;;  %v5028_v49 = vstv %s2916_s4  ;;  %s3347_s4 = sld [smem:[#allocation10 + $0x3]] }
 0x155   : > { %v809_v4 = vmul.f32 %v5027_v32, %v3271_v37  ;;  %v870_v12 = vmul.f32 %v5028_v49, %v3288_v60  ;;  %v5029_v20 = vmov %v5028_v49  ;;  %v742_v13 = vadd.f32 %v740_v53, %v674_v19 }
 0x156   : > { %v871_v50 = vmul.f32 %v5029_v20, %v3291_v45  ;;  %v743_v33 = vadd.f32 %v741_v8, %v675_v62  ;;  %v748_v55 = vadd.f32 %v746_v5, %v680_v52  ;;  %v5030_v10 = vmov %v5025_v3 }
 0x157   : > { %v753_v47 = vmul.f32 %v5030_v10, %v3235_v42  ;;  %v804_v9 = vadd.f32 %v802_v27, %v736_v26  ;;  %v805_v44 = vadd.f32 %v803_v36, %v737_v7  ;;  %v5031_v43 = vstv %s2926_s30  ;;  %s3412_s30 = sld [smem:[#allocation10 + $0x5]] }
 0x158   : > { %v876_v6 = vmul.f32 %v5031_v43, %v3288_v60  ;;  %v5032_v28 = vmov %v5031_v43  ;;  %v749_v41 = vadd.f32 %v747_v48, %v681_v21  ;;  %v754_v19 = vadd.f32 %v752_v39, %v686_v11 }
 0x159   : > { %v877_v0 = vmul.f32 %v5032_v28, %v3291_v45  ;;  %v5033_v62 = vstv %s2875_s19  ;;  %v810_v8 = vadd.f32 %v808_v24, %v742_v13  ;;  %v811_v40 = vadd.f32 %v809_v4, %v743_v33  ;;  %s5076_s19 = sld [smem:[#allocation95_spill]] }
 0x15a   : > { %v814_v52 = vmul.f32 %v5033_v62, %v3268_v29  ;;  %v5034_v53 = vmov %v5033_v62  ;;  %v872_v5 = vadd.f32 %v870_v12, %v804_v9  ;;  %v873_v18 = vadd.f32 %v871_v50, %v805_v44 }
 0x15b   : > { %v815_v63 = vmul.f32 %v5034_v53, %v3271_v37  ;;  %v755_v21 = vadd.f32 %v753_v47, %v687_v22  ;;  %v5035_v11 = vstv %s2842_s16  ;;  %v5036_v2 = vstv %s2928_s11  ;;  %s5065_s11 = sld [smem:[#allocation82_spill]]  ;;  %s5069_s16 = sld [smem:[#allocation92_spill]] }
 0x15c   : > { %v758_v27 = vmul.f32 %v5035_v11, %v3227_v25  ;;  %v882_v36 = vmul.f32 %v5036_v2, %v3288_v60  ;;  %v5037_v26 = vmov %v5036_v2  ;;  %v5038_v59 = vmov %v5035_v11 }
 0x15d   : > { %v883_v7 = vmul.f32 %v5037_v26, %v3291_v45  ;;  %v759_v48 = vmul.f32 %v5038_v59, %v3235_v42  ;;  %v5039_v3 = vstv %s2852_s6  ;;  %v878_v51 = vadd.f32 %v876_v6, %v810_v8  ;;  %s5049_s6 = sld [smem:[#allocation87_spill]] }
 0x15e   : > { %v764_v39 = vmul.f32 %v5039_v3, %v3227_v25  ;;  %v879_v24 = vadd.f32 %v877_v0, %v811_v40  ;;  %v816_v22 = vadd.f32 %v814_v52, %v748_v55  ;;  %v817_v32 = vadd.f32 %v815_v63, %v749_v41 }
 0x15f   : > { %v5040_v4 = vstv %s2889_s26  ;;  %v5042_v50 = vmov %v5039_v3  ;;  %v5043_v33 = vstv %s2854_s22  ;;  %v5044_v47 = vstv %s2968_s8  ;;  %s5060_s22 = sld [smem:[#allocation91_spill]]  ;;  %s3460_s8 = sld [smem:[#allocation10 + $0x6]] }
 0x160   : > { %v820_v49 = vmul.f32 %v5040_v4, %v3268_v29  ;;  %v5041_v12 = vmov %v5040_v4  ;;  %v765_v13 = vmul.f32 %v5042_v50, %v3235_v42  ;;  %v770_v10 = vmul.f32 %v5043_v33, %v3227_v25  ;;  %s2022_s26 = sld [smem:[#allocation10 + $0x7]] }
 0x161   : > { %v821_v20 = vmul.f32 %v5041_v12, %v3271_v37  ;;  %v919_v9 = vadd.f32 %v5044_v47, %v873_v18  ;;  %v5045_v44 = vmov %v5044_v47  ;;  %v884_v43 = vadd.f32 %v882_v36, %v816_v22 }
 0x162   : > { %v918_v55 = vadd.f32 %v5045_v44, %v872_v5  ;;  %v885_v6 = vadd.f32 %v883_v7, %v817_v32  ;;  %v5046_v28 = vstv %s2938_s0  ;;  %v5048_v63 = vstv %s2974_s25  ;;  %s5055_s0 = sld [smem:[#allocation56_spill]]  ;;  %s5056_s25 = smov 17  }
 0x163   : > { %v888_v0 = vmul.f32 %v5046_v28, %v3288_v60  ;;  %v5047_v41 = vmov %v5046_v28  ;;  %v3388_v52 = vmax.f32 %v919_v9, 0.0  ;;  %v925_v8 = vadd.f32 %v5048_v63, %v879_v24 }
 0x164   : > { %v889_v62 = vmul.f32 %v5047_v41, %v3291_v45  ;;  %v3390_v53 = vmax.f32 %v918_v55, 0.0  ;;  %v5050_v40 = vmov %v5048_v63  ;;  %v822_v18 = vadd.f32 %v820_v49, %v754_v19 }
 0x165   : > { %v924_v5 = vadd.f32 %v5050_v40, %v878_v51  ;;  %v823_v11 = vadd.f32 %v821_v20, %v755_v21  ;;  %v5051_v2 = vstv %s2891_s5  ;;  %v760_v59 = vadd.f32 %v758_v27, %v3263_v14  ;;  %966 = vrot.lane.b32.xlu1 %v3388_v52, %s5056_s25  ;;  %s5081_s5 = smov 16  }
 0x166   : > { %v826_v36 = vmul.f32 %v5051_v2, %v3268_v29  ;;  %v5053_v26 = vmov %v5051_v2  ;;  %v761_v3 = vadd.f32 %v759_v48, %v3273_v34  ;;  %v5054_v22 = vmov %v5043_v33  ;;  %964 = vrot.lane.b32.xlu0 %v3390_v53, %s5056_s25 }
 0x167   : > { %v827_v7 = vmul.f32 %v5053_v26, %v3271_v37  ;;  %v771_v24 = vmul.f32 %v5054_v22, %v3235_v42  ;;  %v935_v19 = vstv %s3347_s4  ;;  %v890_v21 = vadd.f32 %v888_v0, %v822_v18  ;;  %s3739_s4 = sld [smem:[#allocation12 + $0x1c]] }
 0x168   : > { %v891_v51 = vadd.f32 %v889_v62, %v823_v11  ;;  %v5058_v14 = vstv %s5049_s6  ;;  %v3420_v32 = vmax.f32 %v925_v8, 0.0  ;;  %v3422_v4 = vmax.f32 %v924_v5, 0.0  ;;  %s3747_s6 = sld [smem:[#allocation12 + $0x2e]] }
 0x169   : > { %v894_v34 = vmul.f32 %v5058_v14, %v3288_v60  ;;  %v5059_v27 = vmov %v5058_v14  ;;  %v5061_v49 = vstv %s5052_s17  ;;  %v828_v33 = vadd.f32 %v826_v36, %v760_v59  ;;  %s3764_s17 = sld [smem:[#allocation12 + $0x37]] }
 0x16a   : > { %v895_v48 = vmul.f32 %v5059_v27, %v3291_v45  ;;  %v931_v12 = vadd.f32 %v5061_v49, %v885_v6  ;;  %v5062_v20 = vmov %v5061_v49  ;;  %v829_v47 = vadd.f32 %v827_v7, %v761_v3  ;;  %976 = vrot.lane.b32.xlu1 %v3420_v32, %s5056_s25  ;;  %974 = vrot.lane.b32.xlu0 %v3422_v4, %s5056_s25 }
 0x16b   : > { %v930_v50 = vadd.f32 %v5062_v20, %v884_v43  ;;  %v5063_v9 = vstv %s5055_s0  ;;  %v766_v0 = vadd.f32 %v764_v39, %v3275_v15  ;;  %v767_v41 = vadd.f32 %v765_v13, %v3283_v1  ;;  %s3771_s0 = sld [smem:[#allocation12 + $0x40]] }
 0x16c   : > { %v832_v44 = vmul.f32 %v5063_v9, %v3268_v29  ;;  %v5064_v55 = vmov %v5063_v9  ;;  %v5066_v62 = vstv %s5057_s27  ;;  %v941_v43 = vstv %s3380_s23  ;;  %s3743_s23 = sld [smem:[#allocation12 + $0x25]]  ;;  %s3787_s27 = sld [smem:[#allocation12 + $0xb]] }
 0x16d   : > { %v833_v28 = vmul.f32 %v5064_v55, %v3271_v37  ;;  %v776_v63 = vmul.f32 %v5066_v62, %v3227_v25  ;;  %v896_v6 = vadd.f32 %v894_v34, %v828_v33  ;;  %v897_v8 = vadd.f32 %v895_v48, %v829_v47 }
 0x16e   : > { %v5067_v40 = vstv %s5060_s22  ;;  %v3450_v13 = vmax.f32 %v931_v12, 0.0  ;;  %v3452_v25 = vmax.f32 %v930_v50, 0.0  ;;  %v937_v5 = vadd.f32 %v935_v19, %v891_v51  ;;  %s3803_s22 = sld [smem:[#allocation12 + $0x1d]] }
 0x16f   : > { %v900_v15 = vmul.f32 %v5067_v40, %v3288_v60  ;;  %v5068_v39 = vmov %v5067_v40  ;;  %v936_v18 = vadd.f32 %v935_v19, %v890_v21  ;;  %v834_v11 = vadd.f32 %v832_v44, %v766_v0 }
 0x170   : > { %v901_v1 = vmul.f32 %v5068_v39, %v3291_v45  ;;  %v835_v2 = vadd.f32 %v833_v28, %v767_v41  ;;  %v5070_v36 = vstv %s5065_s11  ;;  %v772_v3 = vadd.f32 %v770_v10, %v3285_v23  ;;  %988 = vrot.lane.b32.xlu1 %v3450_v13, %s5056_s25  ;;  %986 = vrot.lane.b32.xlu0 %v3452_v25, %s5056_s25  ;;  %s3805_s11 = sld [smem:[#allocation12 + $0x26]] }
 0x171   : > { %v838_v26 = vmul.f32 %v5070_v36, %v3268_v29  ;;  %v5071_v7 = vmov %v5070_v36  ;;  %v773_v22 = vadd.f32 %v771_v24, %v3293_v17  ;;  %v5073_v14 = vmov %v5066_v62 }
 0x172   : > { %v839_v59 = vmul.f32 %v5071_v7, %v3271_v37  ;;  %v777_v51 = vmul.f32 %v5073_v14, %v3235_v42  ;;  %v947_v19 = vstv %s3412_s30  ;;  %v902_v21 = vadd.f32 %v900_v15, %v834_v11  ;;  %s3789_s30 = sld [smem:[#allocation12 + $0x14]] }
 0x173   : > { %v903_v34 = vadd.f32 %v901_v1, %v835_v2  ;;  %v5074_v27 = vstv %s5069_s16  ;;  %v3478_v17 = vmax.f32 %v937_v5, 0.0  ;;  %v3480_v42 = vmax.f32 %v936_v18, 0.0  ;;  %s5086_s16 = smov 112  }
 0x174   : > { %v906_v48 = vmul.f32 %v5074_v27, %v3288_v60  ;;  %v5075_v23 = vmov %v5074_v27  ;;  %v943_v24 = vadd.f32 %v941_v43, %v897_v8  ;;  %v942_v49 = vadd.f32 %v941_v43, %v896_v6 }
 0x175   : > { %v907_v10 = vmul.f32 %v5075_v23, %v3291_v45  ;;  %v840_v12 = vadd.f32 %v838_v26, %v772_v3  ;;  %v841_v20 = vadd.f32 %v839_v59, %v773_v22  ;;  %v5077_v50 = vstv %s5072_s29  ;;  %1000 = vrot.lane.b32.xlu1 %v3478_v17, %s5056_s25  ;;  %998 = vrot.lane.b32.xlu0 %v3480_v42, %s5056_s25  ;;  %s3823_s29 = sld [smem:[#allocation12 + $0x38]] }
 0x176   : > { %v844_v33 = vmul.f32 %v5077_v50, %v3268_v29  ;;  %v5078_v47 = vmov %v5077_v50  ;;  %v778_v44 = vadd.f32 %v776_v63, %v3304_v35  ;;  %v779_v55 = vadd.f32 %v777_v51, %v3306_v16 }
 0x177   : > { %v845_v9 = vmul.f32 %v5078_v47, %v3271_v37  ;;  %v908_v28 = vadd.f32 %v906_v48, %v840_v12  ;;  %v909_v0 = vadd.f32 %v907_v10, %v841_v20  ;;  %v5079_v41 = vstv %s5076_s19  ;;  %s5093_s19 = smov 111  }
 0x178   : > { %v912_v29 = vmul.f32 %v5079_v41, %v3288_v60  ;;  %v5080_v62 = vmov %v5079_v41  ;;  %v3500_v43 = vmax.f32 %v943_v24, 0.0  ;;  %v3502_v6 = vmax.f32 %v942_v49, 0.0 }
 0x179   : > { %v913_v37 = vmul.f32 %v5080_v62, %v3291_v45  ;;  %v949_v35 = vadd.f32 %v947_v19, %v903_v34  ;;  %v948_v16 = vadd.f32 %v947_v19, %v902_v21  ;;  %v846_v63 = vadd.f32 %v844_v33, %v778_v44 }
 0x17a   : > { %v847_v8 = vadd.f32 %v845_v9, %v779_v55  ;;  %v953_v40 = vstv %s3460_s8  ;;  %1012 = vrot.lane.b32.xlu1 %v3500_v43, %s5056_s25  ;;  %1010 = vrot.lane.b32.xlu0 %v3502_v6, %s5056_s25  ;;  %v959_v18 = vstv %s2022_s26  ;;  %s3821_s8 = sld [smem:[#allocation12 + $0x2f]]  ;;  %s4022_s26 = sld [smem:[#allocation12 + $0x41]] }
 0x17b   : > { %v914_v15 = vadd.f32 %v912_v29, %v846_v63  ;;  %v3509_v39 = vmax.f32 %v949_v35, 0.0  ;;  %v3511_v45 = vmax.f32 %v948_v16, 0.0  ;;  %v955_v1 = vadd.f32 %v953_v40, %v909_v0 }
 0x17c   : > { %v915_v60 = vadd.f32 %v913_v37, %v847_v8  ;;  %v954_v5 = vadd.f32 %v953_v40, %v908_v28  ;;  %v971_v37 = vstv %s3705_s13  ;;  %v981_v63 = vstv %s3707_s18  ;;  %s4112_s13 = sld [smem:[#allocation12 + $0x27]]  ;;  %s4123_s18 = sld [smem:[#allocation12 + $0x30]] }
 0x17d   : > { %v3517_v11 = vmax.f32 %v955_v1, 0.0  ;;  %v960_v26 = vadd.f32 %v959_v18, %v914_v15  ;;  %v993_v15 = vstv %s3713_s24  ;;  %v1017_v1 = vstv %s3717_s21  ;;  %s4134_s24 = sld [smem:[#allocation12 + $0x39]]  ;;  %s4160_s21 = sld [smem:[#allocation12 + $0x4]] }
 0x17e   : > { %1024 = vrot.lane.b32.xlu1 %v3509_v39, %s5056_s25  ;;  %1022 = vrot.lane.b32.xlu0 %v3511_v45, %s5056_s25  ;;  %v3519_v2 = vmax.f32 %v954_v5, 0.0  ;;  %v961_v36 = vadd.f32 %v959_v18, %v915_v60  ;;  %v1005_v60 = vstv %s3715_s7  ;;  %v1175_v38 = vstv %s3787_s27  ;;  %s4145_s7 = sld [smem:[#allocation12 + $0x42]]  ;;  %s4263_s27 = sld [smem:[#allocation12 + $0x43]] }
 0x17f   : > { %v3527_v59 = vmax.f32 %v960_v26, 0.0 }
 0x180   : > { %v3525_v7 = vmax.f32 %v961_v36, 0.0 }
 0x182   : > { %1036 = vrot.lane.b32.xlu1 %v3517_v11, %s5056_s25  ;;  %1034 = vrot.lane.b32.xlu0 %v3519_v2, %s5056_s25 }
 0x186   : > { %1048 = vrot.lane.b32.xlu1 %v3525_v7, %s5056_s25  ;;  %1046 = vrot.lane.b32.xlu0 %v3527_v59, %s5056_s25  ;;  %s3773_s25 = sld [smem:[#allocation12 + $0x2]] }
 0x18a   : > { %1062 = vrot.lane.b32.xlu1 %v3388_v52, %s5081_s5  ;;  %1060 = vrot.lane.b32.xlu0 %v3390_v53, %s5081_s5 }
 0x18e   : > { %1072 = vrot.lane.b32.xlu1 %v3420_v32, %s5081_s5  ;;  %1070 = vrot.lane.b32.xlu0 %v3422_v4, %s5081_s5 }
 0x192   : > { %1084 = vrot.lane.b32.xlu1 %v3450_v13, %s5081_s5  ;;  %1082 = vrot.lane.b32.xlu0 %v3452_v25, %s5081_s5 }
 0x196   : > { %1096 = vrot.lane.b32.xlu1 %v3478_v17, %s5081_s5  ;;  %1094 = vrot.lane.b32.xlu0 %v3480_v42, %s5081_s5 }
 0x19a   : > { %1108 = vrot.lane.b32.xlu1 %v3500_v43, %s5081_s5  ;;  %1106 = vrot.lane.b32.xlu0 %v3502_v6, %s5081_s5 }
 0x19e   : > { %1120 = vrot.lane.b32.xlu1 %v3509_v39, %s5081_s5  ;;  %1118 = vrot.lane.b32.xlu0 %v3511_v45, %s5081_s5 }
 0x1a2   : > { %1132 = vrot.lane.b32.xlu1 %v3517_v11, %s5081_s5  ;;  %1130 = vrot.lane.b32.xlu0 %v3519_v2, %s5081_s5 }
 0x1a6   : > { %1144 = vrot.lane.b32.xlu1 %v3525_v7, %s5081_s5  ;;  %1142 = vrot.lane.b32.xlu0 %v3527_v59, %s5081_s5  ;;  %s4067_s5 = sld [smem:[#allocation12 + $0x3]] }
 0x1aa   : > { %1160 = vrot.lane.b32.xlu1 %v3388_v52, %s5082_s3  ;;  %1158 = vrot.lane.b32.xlu0 %v3390_v53, %s5082_s3 }
 0x1ae   : > { %1170 = vrot.lane.b32.xlu1 %v3420_v32, %s5082_s3  ;;  %1168 = vrot.lane.b32.xlu0 %v3422_v4, %s5082_s3 }
 0x1b2   : > { %1182 = vrot.lane.b32.xlu1 %v3450_v13, %s5082_s3  ;;  %1180 = vrot.lane.b32.xlu0 %v3452_v25, %s5082_s3 }
 0x1b6   : > { %1194 = vrot.lane.b32.xlu1 %v3478_v17, %s5082_s3  ;;  %1192 = vrot.lane.b32.xlu0 %v3480_v42, %s5082_s3 }
 0x1ba   : > { %1206 = vrot.lane.b32.xlu1 %v3500_v43, %s5082_s3  ;;  %1204 = vrot.lane.b32.xlu0 %v3502_v6, %s5082_s3 }
 0x1be   : > { %1218 = vrot.lane.b32.xlu1 %v3509_v39, %s5082_s3  ;;  %1216 = vrot.lane.b32.xlu0 %v3511_v45, %s5082_s3 }
 0x1c2   : > { %1230 = vrot.lane.b32.xlu1 %v3517_v11, %s5082_s3  ;;  %1228 = vrot.lane.b32.xlu0 %v3519_v2, %s5082_s3 }
 0x1c6   : > { %1242 = vrot.lane.b32.xlu1 %v3525_v7, %s5082_s3  ;;  %1240 = vrot.lane.b32.xlu0 %v3527_v59, %s5082_s3  ;;  %s4069_s3 = sld [smem:[#allocation12 + $0xc]] }
 0x1ca   : > { %1258 = vrot.lane.b32.xlu1 %v3388_v52, %s5083_s28  ;;  %1256 = vrot.lane.b32.xlu0 %v3390_v53, %s5083_s28 }
 0x1ce   : > { %1268 = vrot.lane.b32.xlu1 %v3420_v32, %s5083_s28  ;;  %1266 = vrot.lane.b32.xlu0 %v3422_v4, %s5083_s28 }
 0x1d2   : > { %1280 = vrot.lane.b32.xlu1 %v3450_v13, %s5083_s28  ;;  %1278 = vrot.lane.b32.xlu0 %v3452_v25, %s5083_s28 }
 0x1d6   : > { %1292 = vrot.lane.b32.xlu1 %v3478_v17, %s5083_s28  ;;  %1290 = vrot.lane.b32.xlu0 %v3480_v42, %s5083_s28 }
 0x1d7   : > { %v3617_v3 = vpop.permute.xlu1 %966 }
 0x1d8   : > { %v3619_v22 = vpop.permute.xlu0 %964 }
 0x1d9   : > { %v968_v18 = vsel %vm344_vm1, %v3619_v22, %v3617_v3  ;;  %v969_v36 = vsel %vm344_vm1, %v3617_v3, %v3619_v22 }
 0x1da   : > { %1304 = vrot.lane.b32.xlu1 %v3500_v43, %s5083_s28  ;;  %1302 = vrot.lane.b32.xlu0 %v3502_v6, %s5083_s28  ;;  %v972_v46 = vmul.f32 %v971_v37, %v969_v36  ;;  %v973_v57 = vmul.f32 %v971_v37, %v968_v18 }
 0x1dc   : > { %v3625_v14 = vpop.permute.xlu1 %976  ;;  %v3627_v51 = vpop.permute.xlu0 %974 }
 0x1dd   : > { %v978_v8 = vsel %vm344_vm1, %v3627_v51, %v3625_v14  ;;  %v979_v40 = vsel %vm344_vm1, %v3625_v14, %v3627_v51 }
 0x1de   : > { %1316 = vrot.lane.b32.xlu1 %v3509_v39, %s5083_s28  ;;  %1314 = vrot.lane.b32.xlu0 %v3511_v45, %s5083_s28  ;;  %v982_v51 = vmul.f32 %v981_v63, %v979_v40  ;;  %v983_v5 = vmul.f32 %v981_v63, %v978_v8  ;;  %v1077_v8 = vstv %s3731_s9  ;;  %s4199_s9 = sld [smem:[#allocation12 + $0x20]] }
 0x1e0   : > { %v984_v40 = vadd.f32 %v982_v51, %v972_v46  ;;  %v985_v63 = vadd.f32 %v983_v5, %v973_v57 }
 0x1e2   : > { %1328 = vrot.lane.b32.xlu1 %v3517_v11, %s5083_s28  ;;  %1326 = vrot.lane.b32.xlu0 %v3519_v2, %s5083_s28  ;;  %v3633_v19 = vpop.permute.xlu1 %988  ;;  %v3635_v21 = vpop.permute.xlu0 %986 }
 0x1e3   : > { %v990_v61 = vsel %vm344_vm1, %v3635_v21, %v3633_v19  ;;  %v991_v3 = vsel %vm344_vm1, %v3633_v19, %v3635_v21 }
 0x1e4   : > { %v994_v36 = vmul.f32 %v993_v15, %v991_v3  ;;  %v995_v37 = vmul.f32 %v993_v15, %v990_v61 }
 0x1e6   : > { %1340 = vrot.lane.b32.xlu1 %v3525_v7, %s5083_s28  ;;  %1338 = vrot.lane.b32.xlu0 %v3527_v59, %s5083_s28  ;;  %s4081_s28 = sld [smem:[#allocation12 + $0x15]] }
 0x1e7   : > { %v3641_v34 = vpop.permute.xlu1 %1000  ;;  %v3643_v27 = vpop.permute.xlu0 %998 }
 0x1e8   : > { %v1002_v19 = vsel %vm344_vm1, %v3643_v27, %v3641_v34  ;;  %v1003_v21 = vsel %vm344_vm1, %v3641_v34, %v3643_v27 }
 0x1e9   : > { %v1006_v15 = vmul.f32 %v1005_v60, %v1003_v21  ;;  %v1007_v26 = vmul.f32 %v1005_v60, %v1002_v19  ;;  %v997_v21 = vadd.f32 %v995_v37, %v985_v63 }
 0x1ea   : > { %1404 = vrot.lane.b32.xlu1 %v3388_v52, %s5084_s10  ;;  %1402 = vrot.lane.b32.xlu0 %v3390_v53, %s5084_s10 }
 0x1eb   : > { %v1009_v31 = vadd.f32 %v1007_v26, %v997_v21 }
 0x1ec   : > { %v3649_v48 = vpop.permute.xlu1 %1012  ;;  %v3651_v23 = vpop.permute.xlu0 %1010 }
 0x1ed   : > { %v1014_v34 = vsel %vm344_vm1, %v3651_v23, %v3649_v48  ;;  %v1015_v27 = vsel %vm344_vm1, %v3649_v48, %v3651_v23  ;;  %v1165_v48 = vstv %s3773_s25  ;;  %v996_v23 = vadd.f32 %v994_v36, %v984_v40  ;;  %s4253_s25 = sld [smem:[#allocation12 + $0x3a]] }
 0x1ee   : > { %1414 = vrot.lane.b32.xlu1 %v3420_v32, %s5084_s10  ;;  %1412 = vrot.lane.b32.xlu0 %v3422_v4, %s5084_s10  ;;  %v1018_v18 = vmul.f32 %v1017_v1, %v1015_v27  ;;  %v1019_v60 = vmul.f32 %v1017_v1, %v1014_v34  ;;  %v5087_v36 = vstv %s3729_s20  ;;  %s4183_s20 = sld [smem:[#allocation12 + $0x16]] }
 0x1ef   : > { %v1008_v51 = vadd.f32 %v1006_v15, %v996_v23 }
 0x1f0   : > { %v3657_v10 = vpop.permute.xlu1 %1024  ;;  %v3659_v24 = vpop.permute.xlu0 %1022  ;;  %v3874_v34 = vadd.f32 %v1019_v60, %v1009_v31 }
 0x1f1   : > { %v3872_v37 = vadd.f32 %v1018_v18, %v1008_v51  ;;  %v1027_v27 = vsel %vm344_vm1, %v3657_v10, %v3659_v24 }
 0x1f2   : > { %1426 = vrot.lane.b32.xlu1 %v3450_v13, %s5084_s10  ;;  %1424 = vrot.lane.b32.xlu0 %v3452_v25, %s5084_s10 }
 0x1f4   : > { %v3665_v49 = vpop.permute.xlu1 %1036  ;;  %v3667_v12 = vpop.permute.xlu0 %1034 }
 0x1f6   : > { %1438 = vrot.lane.b32.xlu1 %v3478_v17, %s5084_s10  ;;  %1436 = vrot.lane.b32.xlu0 %v3480_v42, %s5084_s10 }
 0x1f8   : > { %v3673_v20 = vpop.permute.xlu1 %1048  ;;  %v3675_v50 = vpop.permute.xlu0 %1046 }
 0x1fa   : > { %1450 = vrot.lane.b32.xlu1 %v3500_v43, %s5084_s10  ;;  %1448 = vrot.lane.b32.xlu0 %v3502_v6, %s5084_s10 }
 0x1fc   : > { %v3681_v33 = vpop.permute.xlu1 %1062  ;;  %v3683_v47 = vpop.permute.xlu0 %1060 }
 0x1fd   : > { %v1064_v31 = vsel %vm396_vm0, %v3683_v47, %v3681_v33 }
 0x1fe   : > { %1462 = vrot.lane.b32.xlu1 %v3509_v39, %s5084_s10  ;;  %1460 = vrot.lane.b32.xlu0 %v3511_v45, %s5084_s10 }
 0x200   : > { %v3689_v9 = vpop.permute.xlu1 %1072  ;;  %v3691_v44 = vpop.permute.xlu0 %1070 }
 0x201   : > { %v1074_v1 = vsel %vm396_vm0, %v3691_v44, %v3689_v9  ;;  %v1075_v40 = vsel %vm396_vm0, %v3689_v9, %v3691_v44  ;;  %v1065_v9 = vsel %vm396_vm0, %v3681_v33, %v3683_v47 }
 0x202   : > { %1474 = vrot.lane.b32.xlu1 %v3517_v11, %s5084_s10  ;;  %1472 = vrot.lane.b32.xlu0 %v3519_v2, %s5084_s10  ;;  %v1078_v15 = vmul.f32 %v1077_v8, %v1075_v40  ;;  %v1079_v51 = vmul.f32 %v1077_v8, %v1074_v1  ;;  %v5089_v8 = vstv %s3737_s2  ;;  %s4209_s2 = sld [smem:[#allocation12 + $0x1f]] }
 0x203   : > { %v5090_v26 = vmov %v5089_v8 }
 0x204   : > { %v3697_v55 = vpop.permute.xlu1 %1084  ;;  %v3699_v28 = vpop.permute.xlu0 %1082 }
 0x206   : > { %1486 = vrot.lane.b32.xlu1 %v3525_v7, %s5084_s10  ;;  %1484 = vrot.lane.b32.xlu0 %v3527_v59, %s5084_s10  ;;  %s4097_s10 = sld [smem:[#allocation12 + $0x1e]] }
 0x208   : > { %v3709_v0 = vpop.permute.xlu1 %1096  ;;  %v3711_v41 = vpop.permute.xlu0 %1094 }
 0x20a   : > { %1502 = vrot.lane.b32.xlu1 %v3388_v52, %s5085_s12  ;;  %1500 = vrot.lane.b32.xlu0 %v3390_v53, %s5085_s12 }
 0x20c   : > { %v3733_v29 = vpop.permute.xlu1 %1108  ;;  %v3735_v62 = vpop.permute.xlu0 %1106 }
 0x20e   : > { %1512 = vrot.lane.b32.xlu1 %v3420_v32, %s5085_s12  ;;  %1510 = vrot.lane.b32.xlu0 %v3422_v4, %s5085_s12 }
 0x210   : > { %v3750_v35 = vpop.permute.xlu1 %1120  ;;  %v3752_v16 = vpop.permute.xlu0 %1118 }
 0x212   : > { %1524 = vrot.lane.b32.xlu1 %v3450_v13, %s5085_s12  ;;  %1522 = vrot.lane.b32.xlu0 %v3452_v25, %s5085_s12 }
 0x214   : > { %v3799_v22 = vpop.permute.xlu1 %1132  ;;  %v3801_v14 = vpop.permute.xlu0 %1130 }
 0x216   : > { %1600 = vrot.lane.b32.xlu1 %v3388_v52, %s5086_s16  ;;  %1598 = vrot.lane.b32.xlu0 %v3390_v53, %s5086_s16 }
 0x218   : > { %v1145_v3 = vpop.permute.xlu1 %1144  ;;  %v1143_v61 = vpop.permute.xlu0 %1142 }
 0x219   : > { %v3839_v57 = vsel %vm396_vm0, %v1143_v61, %v1145_v3  ;;  %v3843_v46 = vsel %vm396_vm0, %v1145_v3, %v1143_v61  ;;  %v1187_v3 = vstv %s3789_s30  ;;  %v1199_v61 = vstv %s3803_s22  ;;  %s4265_s30 = sld [smem:[#allocation12 + $0x44]]  ;;  %s4283_s22 = sld [smem:[#allocation12 + $0x6]] }
 0x21a   : > { %1610 = vrot.lane.b32.xlu1 %v3420_v32, %s5086_s16  ;;  %1608 = vrot.lane.b32.xlu0 %v3422_v4, %s5086_s16 }
 0x21c   : > { %v1161_v19 = vpop.permute.xlu1 %1160  ;;  %v1159_v30 = vpop.permute.xlu0 %1158 }
 0x21d   : > { %v1162_v56 = vsel %vm464_vm2, %v1159_v30, %v1161_v19  ;;  %v1163_v63 = vsel %vm464_vm2, %v1161_v19, %v1159_v30  ;;  %v1026_v30 = vsel %vm344_vm1, %v3659_v24, %v3657_v10  ;;  %v1086_v10 = vsel %vm396_vm0, %v3699_v28, %v3697_v55 }
 0x21e   : > { %1536 = vrot.lane.b32.xlu1 %v3478_v17, %s5085_s12  ;;  %1534 = vrot.lane.b32.xlu0 %v3480_v42, %s5085_s12  ;;  %v1087_v24 = vsel %vm396_vm0, %v3697_v55, %v3699_v28  ;;  %v1166_v47 = vmul.f32 %v1165_v48, %v1163_v63  ;;  %v1167_v21 = vmul.f32 %v1165_v48, %v1162_v56 }
 0x21f   : > { %v1068_v55 = vmul.f32 %v5087_v36, %v1065_v9  ;;  %v5088_v28 = vmov %v5087_v36  ;;  %v1090_v1 = vmul.f32 %v5089_v8, %v1087_v24  ;;  %v1091_v5 = vmul.f32 %v5090_v26, %v1086_v10 }
 0x220   : > { %v1171_v44 = vpop.permute.xlu1 %1170  ;;  %v1169_v18 = vpop.permute.xlu0 %1168  ;;  %v1069_v40 = vmul.f32 %v5088_v28, %v1064_v31  ;;  %v1098_v56 = vsel %vm396_vm0, %v3711_v41, %v3709_v0  ;;  %v1123_v8 = vsel %vm396_vm0, %v3750_v35, %v3752_v16 }
 0x221   : > { %v1172_v23 = vsel %vm464_vm2, %v1169_v18, %v1171_v44  ;;  %v1173_v33 = vsel %vm464_vm2, %v1171_v44, %v1169_v18  ;;  %v1080_v26 = vadd.f32 %v1078_v15, %v1068_v55  ;;  %v5091_v44 = vstv %s3719_s1  ;;  %s4162_s1 = sld [smem:[#allocation12 + $0xd]] }
 0x222   : > { %v1176_v60 = vmul.f32 %v1175_v38, %v1173_v33  ;;  %v1177_v19 = vmul.f32 %v1175_v38, %v1172_v23  ;;  %1622 = vrot.lane.b32.xlu1 %v3450_v13, %s5086_s16  ;;  %1620 = vrot.lane.b32.xlu0 %v3452_v25, %s5086_s16  ;;  %v1099_v38 = vsel %vm396_vm0, %v3709_v0, %v3711_v41 }
 0x223   : > { %v1081_v9 = vadd.f32 %v1079_v51, %v1069_v40  ;;  %v3932_v18 = vmul.f32 %v5091_v44, %v1027_v27  ;;  %v5092_v23 = vmov %v5091_v44  ;;  %v5094_v51 = vstv %s3739_s4  ;;  %s4222_s4 = sld [smem:[#allocation12 + $0x29]] }
 0x224   : > { %v1178_v48 = vadd.f32 %v1176_v60, %v1166_v47  ;;  %v1179_v63 = vadd.f32 %v1177_v19, %v1167_v21  ;;  %v1183_v36 = vpop.permute.xlu1 %1182  ;;  %v1181_v31 = vpop.permute.xlu0 %1180  ;;  %v3936_v33 = vmul.f32 %v5092_v23, %v1026_v30  ;;  %v1092_v47 = vadd.f32 %v1090_v1, %v1080_v26 }
 0x225   : > { %v1184_v10 = vsel %vm464_vm2, %v1181_v31, %v1183_v36  ;;  %v1185_v24 = vsel %vm464_vm2, %v1183_v36, %v1181_v31  ;;  %v1093_v15 = vadd.f32 %v1091_v5, %v1081_v9  ;;  %v1102_v21 = vmul.f32 %v5094_v51, %v1099_v38 }
 0x226   : > { %v1188_v0 = vmul.f32 %v1187_v3, %v1185_v24  ;;  %v1189_v41 = vmul.f32 %v1187_v3, %v1184_v10  ;;  %1698 = vrot.lane.b32.xlu1 %v3388_v52, %s5093_s19  ;;  %v5095_v60 = vmov %v5094_v51  ;;  %1696 = vrot.lane.b32.xlu0 %v3390_v53, %s5093_s19  ;;  %v1110_v30 = vsel %vm396_vm0, %v3735_v62, %v3733_v29 }
 0x227   : > { %v1103_v19 = vmul.f32 %v5095_v60, %v1098_v56  ;;  %v1111_v3 = vsel %vm396_vm0, %v3733_v29, %v3735_v62  ;;  %v1122_v40 = vsel %vm396_vm0, %v3752_v16, %v3750_v35  ;;  %v1038_v1 = vsel %vm344_vm1, %v3667_v12, %v3665_v49 }
 0x228   : > { %v1190_v5 = vadd.f32 %v1188_v0, %v1178_v48  ;;  %v1191_v27 = vadd.f32 %v1189_v41, %v1179_v63  ;;  %v1195_v55 = vpop.permute.xlu1 %1194  ;;  %v1193_v28 = vpop.permute.xlu0 %1192  ;;  %v1039_v56 = vsel %vm344_vm1, %v3665_v49, %v3667_v12  ;;  %v1104_v16 = vadd.f32 %v1102_v21, %v1092_v47 }
 0x229   : > { %v1196_v29 = vsel %vm464_vm2, %v1193_v28, %v1195_v55  ;;  %v1197_v62 = vsel %vm464_vm2, %v1195_v55, %v1193_v28  ;;  %v1105_v48 = vadd.f32 %v1103_v19, %v1093_v15  ;;  %v5096_v63 = vstv %s3743_s23  ;;  %s4225_s23 = sld [smem:[#allocation12 + $0x28]] }
 0x22a   : > { %v1200_v38 = vmul.f32 %v1199_v61, %v1197_v62  ;;  %v1201_v35 = vmul.f32 %v1199_v61, %v1196_v29  ;;  %1708 = vrot.lane.b32.xlu1 %v3420_v32, %s5093_s19  ;;  %v1114_v36 = vmul.f32 %v5096_v63, %v1111_v3  ;;  %v5097_v31 = vmov %v5096_v63 }
 0x22b   : > { %v1115_v26 = vmul.f32 %v5097_v31, %v1110_v30  ;;  %1706 = vrot.lane.b32.xlu0 %v3422_v4, %s5093_s19  ;;  %v5098_v49 = vstv %s3747_s6  ;;  %v1134_v0 = vsel %vm396_vm0, %v3801_v14, %v3799_v22  ;;  %v1135_v41 = vsel %vm396_vm0, %v3799_v22, %v3801_v14  ;;  %s4238_s6 = sld [smem:[#allocation12 + $0x32]] }
 0x22c   : > { %v1126_v12 = vmul.f32 %v5098_v49, %v1123_v8  ;;  %v5099_v9 = vmov %v5098_v49  ;;  %v1202_v10 = vadd.f32 %v1200_v38, %v1190_v5  ;;  %v1203_v24 = vadd.f32 %v1201_v35, %v1191_v27  ;;  %v1207_v44 = vpop.permute.xlu1 %1206  ;;  %v1205_v23 = vpop.permute.xlu0 %1204 }
 0x22d   : > { %v1127_v61 = vmul.f32 %v5099_v9, %v1122_v40  ;;  %v1208_v47 = vsel %vm464_vm2, %v1205_v23, %v1207_v44  ;;  %v1209_v15 = vsel %vm464_vm2, %v1207_v44, %v1205_v23  ;;  %v5100_v51 = vstv %s3723_s15  ;;  %s4171_s15 = sld [smem:[#allocation12 + $0xe]] }
 0x22e   : > { %v1042_v21 = vmul.f32 %v5100_v51, %v1039_v56  ;;  %v5101_v60 = vmov %v5100_v51  ;;  %v5102_v30 = vstv %s3805_s11  ;;  %1548 = vrot.lane.b32.xlu1 %v3500_v43, %s5085_s12  ;;  %v1050_v14 = vsel %vm344_vm1, %v3675_v50, %v3673_v20  ;;  %s4285_s11 = sld [smem:[#allocation12 + $0xf]] }
 0x22f   : > { %v1043_v19 = vmul.f32 %v5101_v60, %v1038_v1  ;;  %v1212_v3 = vmul.f32 %v5102_v30, %v1209_v15  ;;  %v5103_v5 = vmov %v5102_v30  ;;  %v1051_v22 = vsel %vm344_vm1, %v3673_v20, %v3675_v50  ;;  %1546 = vrot.lane.b32.xlu0 %v3502_v6, %s5085_s12 }
 0x230   : > { %v1213_v27 = vmul.f32 %v5103_v5, %v1208_v47  ;;  %v1116_v55 = vadd.f32 %v1114_v36, %v1104_v16  ;;  %v1117_v28 = vadd.f32 %v1115_v26, %v1105_v48  ;;  %v5104_v40 = vstv %s3764_s17  ;;  %v1219_v38 = vpop.permute.xlu1 %1218  ;;  %v1217_v20 = vpop.permute.xlu0 %1216  ;;  %s4241_s17 = sld [smem:[#allocation12 + $0x31]] }
 0x231   : > { %v1138_v8 = vmul.f32 %v5104_v40, %v1135_v41  ;;  %v5105_v29 = vmov %v5104_v40  ;;  %v1214_v1 = vadd.f32 %v1212_v3, %v1202_v10  ;;  %v1220_v16 = vsel %vm464_vm2, %v1217_v20, %v1219_v38 }
 0x232   : > { %v1139_v62 = vmul.f32 %v5105_v29, %v1134_v0  ;;  %v1215_v56 = vadd.f32 %v1213_v27, %v1203_v24  ;;  %v1128_v50 = vadd.f32 %v1126_v12, %v1116_v55  ;;  %v1129_v35 = vadd.f32 %v1127_v61, %v1117_v28  ;;  %1634 = vrot.lane.b32.xlu1 %v3478_v17, %s5086_s16 }
 0x233   : > { %v1221_v48 = vsel %vm464_vm2, %v1219_v38, %v1217_v20  ;;  %v5106_v63 = vstv %s3771_s0  ;;  %v5108_v49 = vstv %s3821_s8  ;;  %v1032_v12 = vadd.f32 %v3932_v18, %v3872_v37  ;;  %1632 = vrot.lane.b32.xlu0 %v3480_v42, %s5086_s16  ;;  %v5115_v20 = vld [vmem:[#allocation61_spill] sm:$0xff]  ;;  %s4250_s0 = sld [smem:[#allocation12 + $0x3b]]  ;;  %s4350_s8 = sld [smem:[#allocation12 + $0x7]] }
 0x234   : > { %v1150_v36 = vmul.f32 %v5106_v63, %v3843_v46  ;;  %v5107_v31 = vmov %v5106_v63  ;;  %v1224_v9 = vmul.f32 %v5108_v49, %v1221_v48  ;;  %v5109_v10 = vmov %v5108_v49  ;;  %v1231_v51 = vpop.permute.xlu1 %1230  ;;  %v1229_v60 = vpop.permute.xlu0 %1228  ;;  %v5116_v48 = vld [vmem:[#allocation62_spill] sm:$0xff] }
 0x235   : > { %v1151_v26 = vmul.f32 %v5107_v31, %v3839_v57  ;;  %v1225_v24 = vmul.f32 %v5109_v10, %v1220_v16  ;;  %v1033_v61 = vadd.f32 %v3936_v33, %v3874_v34  ;;  %v5110_v44 = vstv %s3725_s14  ;;  %s4181_s14 = sld [smem:[#allocation12 + $0x17]] }
 0x236   : > { %v1054_v23 = vmul.f32 %v5110_v44, %v1051_v22  ;;  %v5111_v46 = vmov %v5110_v44  ;;  %v1140_v57 = vadd.f32 %v1138_v8, %v1128_v50  ;;  %v1141_v41 = vadd.f32 %v1139_v62, %v1129_v35  ;;  %1720 = vrot.lane.b32.xlu1 %v3450_v13, %s5093_s19 }
 0x237   : > { %v1055_v0 = vmul.f32 %v5111_v46, %v1050_v14  ;;  %v1226_v47 = vadd.f32 %v1224_v9, %v1214_v1  ;;  %v1227_v15 = vadd.f32 %v1225_v24, %v1215_v56  ;;  %v1044_v37 = vadd.f32 %v1042_v21, %v1032_v12  ;;  %1718 = vrot.lane.b32.xlu0 %v3452_v25, %s5093_s19  ;;  %v5114_v56 = vld [vmem:[#allocation60_spill] sm:$0xff] }
 0x238   : > { %v1045_v18 = vadd.f32 %v1043_v19, %v1033_v61  ;;  %v1232_v34 = vsel %vm464_vm2, %v1229_v60, %v1231_v51  ;;  %v1233_v33 = vsel %vm464_vm2, %v1231_v51, %v1229_v60  ;;  %v1152_v30 = vadd.f32 %v1150_v36, %v1140_v57  ;;  %v1243_v8 = vpop.permute.xlu1 %1242  ;;  %v1241_v29 = vpop.permute.xlu0 %1240  ;;  %v5117_v36 = vld [vmem:[#allocation63_spill] sm:$0xff] }
 0x239   : > { %v1153_v3 = vadd.f32 %v1151_v26, %v1141_v41  ;;  %v5112_v5 = vstv %s3823_s29  ;;  %v1247_v21 = vstv %s4022_s26  ;;  %v1056_v19 = vadd.f32 %v1054_v23, %v1044_v37  ;;  %v5118_v23 = vld [vmem:[#allocation68_spill] sm:$0xff]  ;;  %s4352_s29 = sld [smem:[#allocation12 + $0x10]]  ;;  %s4356_s26 = sld [smem:[#allocation12 + $0x19]] }
 0x23a   : > { %v1236_v27 = vmul.f32 %v5112_v5, %v1233_v33  ;;  %v5113_v14 = vmov %v5112_v5  ;;  %v1057_v55 = vadd.f32 %v1055_v0, %v1045_v18  ;;  %v1244_v62 = vsel %vm464_vm2, %v1241_v29, %v1243_v8  ;;  %1560 = vrot.lane.b32.xlu1 %v3509_v39, %s5085_s12  ;;  %v5119_v0 = vld [vmem:[#allocation69_spill] sm:$0xff] }
 0x23b   : > { %v1237_v22 = vmul.f32 %v5113_v14, %v1232_v34  ;;  %v1245_v1 = vsel %vm464_vm2, %v1243_v8, %v1241_v29  ;;  %v1154_v38 = vmul.f32 %v1152_v30, %v5114_v56  ;;  %v1155_v50 = vmul.f32 %v1153_v3, %v5115_v20  ;;  %1558 = vrot.lane.b32.xlu0 %v3511_v45, %s5085_s12 }
 0x23c   : > { %v1238_v28 = vadd.f32 %v1236_v27, %v1226_v47  ;;  %v1248_v35 = vmul.f32 %v1247_v21, %v1245_v1  ;;  %v1249_v16 = vmul.f32 %v1247_v21, %v1244_v62  ;;  %v1058_v63 = vmul.f32 %v1056_v19, %v5116_v48  ;;  %v1259_v9 = vpop.permute.xlu1 %1258  ;;  %v1257_v10 = vpop.permute.xlu0 %1256 }
 0x23d   : > { %v1239_v40 = vadd.f32 %v1237_v22, %v1227_v15  ;;  %v1059_v31 = vmul.f32 %v1057_v55, %v5117_v36  ;;  %v1260_v24 = vsel %vm532_vm3, %v1257_v10, %v1259_v9  ;;  %v1261_v12 = vsel %vm532_vm3, %v1259_v9, %v1257_v10 }
 0x23e   : > { %v1250_v26 = vadd.f32 %v1248_v35, %v1238_v28  ;;  %v1156_v61 = vadd.f32 %v1154_v38, %v1058_v63  ;;  %1646 = vrot.lane.b32.xlu1 %v3500_v43, %s5086_s16  ;;  %v1263_v41 = vstv %s4067_s5  ;;  %v1273_v47 = vstv %s4069_s3  ;;  %s4358_s5 = sld [smem:[#allocation12 + $0x8]]  ;;  %s4360_s3 = sld [smem:[#allocation12 + $0x11]] }
 0x23f   : > { %v1251_v49 = vadd.f32 %v1249_v16, %v1239_v40  ;;  %v1157_v44 = vadd.f32 %v1155_v50, %v1059_v31  ;;  %1644 = vrot.lane.b32.xlu0 %v3502_v6, %s5086_s16  ;;  %v1264_v33 = vmul.f32 %v1263_v41, %v1261_v12  ;;  %v1265_v30 = vmul.f32 %v1263_v41, %v1260_v24 }
 0x240   : > { %v1252_v46 = vmul.f32 %v1250_v26, %v5118_v23  ;;  %v1269_v60 = vpop.permute.xlu1 %1268  ;;  %v1267_v37 = vpop.permute.xlu0 %1266  ;;  %v1285_v27 = vstv %s4081_s28  ;;  %v1297_v29 = vstv %s4097_s10  ;;  %v1309_v48 = vstv %s4112_s13  ;;  %s4362_s28 = sld [smem:[#allocation12 + $0x2a]] }
 0x241   : > { %v1253_v57 = vmul.f32 %v1251_v49, %v5119_v0  ;;  %v1270_v18 = vsel %vm532_vm3, %v1267_v37, %v1269_v60  ;;  %v1271_v34 = vsel %vm532_vm3, %v1269_v60, %v1267_v37  ;;  %v1321_v12 = vstv %s4123_s18  ;;  %s4364_s10 = sld [smem:[#allocation12 + $0x22]]  ;;  %s4368_s18 = sld [smem:[#allocation12 + $0x33]] }
 0x242   : > { %v4099_v15 = vadd.f32 %v1252_v46, %v1156_v61  ;;  %v1274_v3 = vmul.f32 %v1273_v47, %v1271_v34  ;;  %v1275_v5 = vmul.f32 %v1273_v47, %v1270_v18  ;;  %1732 = vrot.lane.b32.xlu1 %v3478_v17, %s5093_s19  ;;  %v1333_v60 = vstv %s4134_s24  ;;  %s4366_s13 = sld [smem:[#allocation12 + $0x1a]]  ;;  %s4370_s24 = sld [smem:[#allocation12 + $0x2b]] }
 0x243   : > { %v4101_v51 = vadd.f32 %v1253_v57, %v1157_v44  ;;  %1730 = vrot.lane.b32.xlu0 %v3480_v42, %s5093_s19 }
 0x244   : > { %v1276_v14 = vadd.f32 %v1274_v3, %v1264_v33  ;;  %v1277_v22 = vadd.f32 %v1275_v5, %v1265_v30  ;;  %v1281_v21 = vpop.permute.xlu1 %1280  ;;  %v1279_v19 = vpop.permute.xlu0 %1278 }
 0x245   : > { %v1282_v55 = vsel %vm532_vm3, %v1279_v19, %v1281_v21  ;;  %v1283_v28 = vsel %vm532_vm3, %v1281_v21, %v1279_v19 }
 0x246   : > { %v1286_v40 = vmul.f32 %v1285_v27, %v1283_v28  ;;  %v1287_v8 = vmul.f32 %v1285_v27, %v1282_v55  ;;  %1572 = vrot.lane.b32.xlu1 %v3517_v11, %s5085_s12 }
 0x247   : > { %1570 = vrot.lane.b32.xlu0 %v3519_v2, %s5085_s12 }
 0x248   : > { %v1288_v62 = vadd.f32 %v1286_v40, %v1276_v14  ;;  %v1289_v1 = vadd.f32 %v1287_v8, %v1277_v22  ;;  %v1293_v56 = vpop.permute.xlu1 %1292  ;;  %v1291_v38 = vpop.permute.xlu0 %1290  ;;  %v1345_v14 = vstv %s4145_s7  ;;  %s4374_s7 = sld [smem:[#allocation12 + $0x23]] }
 0x249   : > { %v1294_v20 = vsel %vm532_vm3, %v1291_v38, %v1293_v56  ;;  %v1295_v50 = vsel %vm532_vm3, %v1293_v56, %v1291_v38 }
 0x24a   : > { %v1298_v35 = vmul.f32 %v1297_v29, %v1295_v50  ;;  %v1299_v16 = vmul.f32 %v1297_v29, %v1294_v20  ;;  %1658 = vrot.lane.b32.xlu1 %v3509_v39, %s5086_s16 }
 0x24b   : > { %1656 = vrot.lane.b32.xlu0 %v3511_v45, %s5086_s16 }
 0x24c   : > { %v1300_v63 = vadd.f32 %v1298_v35, %v1288_v62  ;;  %v1301_v36 = vadd.f32 %v1299_v16, %v1289_v1  ;;  %v1305_v31 = vpop.permute.xlu1 %1304  ;;  %v1303_v26 = vpop.permute.xlu0 %1302  ;;  %v1355_v35 = vstv %s4160_s21  ;;  %v1359_v16 = vstv %s4162_s1  ;;  %s4376_s21 = sld [smem:[#allocation12 + $0x3c]] }
 0x24d   : > { %v1306_v49 = vsel %vm532_vm3, %v1303_v26, %v1305_v31  ;;  %v1307_v9 = vsel %vm532_vm3, %v1305_v31, %v1303_v26  ;;  %s4380_s1 = sld [smem:[#allocation12 + $0x34]] }
 0x24e   : > { %v1310_v10 = vmul.f32 %v1309_v48, %v1307_v9  ;;  %v1311_v24 = vmul.f32 %v1309_v48, %v1306_v49  ;;  %1744 = vrot.lane.b32.xlu1 %v3500_v43, %s5093_s19  ;;  %v5120_v48 = vld [vmem:[#allocation75_spill] sm:$0xff]  ;;  %v1419_v49 = vstv %s4171_s15  ;;  %s4384_s15 = sld [smem:[#allocation12 + $0x45]] }
 0x24f   : > { %1742 = vrot.lane.b32.xlu0 %v3502_v6, %s5093_s19 }
 0x250   : > { %v1312_v61 = vadd.f32 %v1310_v10, %v1300_v63  ;;  %v1313_v44 = vadd.f32 %v1311_v24, %v1301_v36  ;;  %v1317_v23 = vpop.permute.xlu1 %1316  ;;  %v1315_v46 = vpop.permute.xlu0 %1314  ;;  %v5121_v36 = vld [vmem:[#allocation76_spill] sm:$0xff] }
 0x251   : > { %v1318_v0 = vsel %vm532_vm3, %v1315_v46, %v1317_v23  ;;  %v1319_v57 = vsel %vm532_vm3, %v1317_v23, %v1315_v46  ;;  %v1361_v46 = vmul.f32 %v1359_v16, %v3420_v32 }
 0x252   : > { %v1322_v41 = vmul.f32 %v1321_v12, %v1319_v57  ;;  %v1323_v47 = vmul.f32 %v1321_v12, %v1318_v0  ;;  %1584 = vrot.lane.b32.xlu1 %v3525_v7, %s5085_s12 }
 0x253   : > { %1582 = vrot.lane.b32.xlu0 %v3527_v59, %s5085_s12  ;;  %s4169_s12 = sld [smem:[#allocation12 + $0x5]] }
 0x254   : > { %v1324_v37 = vadd.f32 %v1322_v41, %v1312_v61  ;;  %v1325_v18 = vadd.f32 %v1323_v47, %v1313_v44  ;;  %v1329_v34 = vpop.permute.xlu1 %1328  ;;  %v1327_v33 = vpop.permute.xlu0 %1326  ;;  %v1357_v61 = vmul.f32 %v1355_v35, %v3388_v52  ;;  %v1360_v44 = vmul.f32 %v1359_v16, %v3422_v4 }
 0x255   : > { %v1330_v30 = vsel %vm532_vm3, %v1327_v33, %v1329_v34  ;;  %v1331_v3 = vsel %vm532_vm3, %v1329_v34, %v1327_v33  ;;  %v1431_v52 = vstv %s4181_s14  ;;  %s4386_s14 = sld [smem:[#allocation12 + $0x3d]] }
 0x256   : > { %v1334_v5 = vmul.f32 %v1333_v60, %v1331_v3  ;;  %v1335_v27 = vmul.f32 %v1333_v60, %v1330_v30  ;;  %1670 = vrot.lane.b32.xlu1 %v3517_v11, %s5086_s16  ;;  %v1363_v33 = vadd.f32 %v1361_v46, %v1357_v61  ;;  %v1383_v46 = vstv %s4241_s17  ;;  %s5129_s17 = sld [smem:[#allocation29_spill]] }
 0x257   : > { %1668 = vrot.lane.b32.xlu0 %v3519_v2, %s5086_s16 }
 0x258   : > { %v1336_v22 = vadd.f32 %v1334_v5, %v1324_v37  ;;  %v1337_v21 = vadd.f32 %v1335_v27, %v1325_v18  ;;  %v1341_v19 = vpop.permute.xlu1 %1340  ;;  %v1339_v55 = vpop.permute.xlu0 %1338  ;;  %v1365_v18 = vstv %s4183_s20  ;;  %v1443_v27 = vstv %s4199_s9  ;;  %s4393_s20 = sld [smem:[#allocation12 + $0x35]]  ;;  %s4395_s9 = sld [smem:[#allocation12 + $0x46]] }
 0x259   : > { %v1342_v28 = vsel %vm532_vm3, %v1339_v55, %v1341_v19  ;;  %v1343_v40 = vsel %vm532_vm3, %v1341_v19, %v1339_v55  ;;  %v1409_v26 = vstv %s4169_s12  ;;  %s4382_s12 = sld [smem:[#allocation12 + $0x2c]] }
 0x25a   : > { %v1346_v8 = vmul.f32 %v1345_v14, %v1343_v40  ;;  %v1347_v29 = vmul.f32 %v1345_v14, %v1342_v28  ;;  %1756 = vrot.lane.b32.xlu1 %v3509_v39, %s5093_s19  ;;  %v1366_v14 = vmul.f32 %v1365_v18, %v3452_v25  ;;  %v1371_v40 = vstv %s4209_s2  ;;  %s4527_s2 = sld [smem:[#allocation12 + $0x3e]] }
 0x25b   : > { %1754 = vrot.lane.b32.xlu0 %v3511_v45, %s5093_s19 }
 0x25c   : > { %v1348_v62 = vadd.f32 %v1346_v8, %v1336_v22  ;;  %v1349_v1 = vadd.f32 %v1347_v29, %v1337_v21  ;;  %v1405_v56 = vpop.permute.xlu1 %1404  ;;  %v1403_v38 = vpop.permute.xlu0 %1402  ;;  %v1367_v22 = vmul.f32 %v1365_v18, %v3450_v13  ;;  %v2196_v58 = vld [vmem:[%s5129_s17] sm:$0xff] }
 0x25d   : > { %v1406_v20 = vsel %vm648_vm4, %v1403_v38, %v1405_v56  ;;  %v1407_v50 = vsel %vm648_vm4, %v1405_v56, %v1403_v38  ;;  %v1455_v56 = vstv %s4222_s4  ;;  %v1372_v38 = vmul.f32 %v1371_v40, %v3480_v42  ;;  %s4549_s4 = sld [smem:[#allocation12 + $0x47]] }
 0x25e   : > { %v1350_v63 = vmul.f32 %v1348_v62, %v5120_v48  ;;  %v1351_v31 = vmul.f32 %v1349_v1, %v5121_v36  ;;  %1682 = vrot.lane.b32.xlu1 %v3525_v7, %s5086_s16  ;;  %v1410_v0 = vmul.f32 %v1409_v26, %v1406_v20  ;;  %v1411_v57 = vmul.f32 %v1409_v26, %v1407_v50 }
 0x25f   : > { %1680 = vrot.lane.b32.xlu0 %v3527_v59, %s5086_s16  ;;  %v1369_v62 = vadd.f32 %v1367_v22, %v1363_v33  ;;  %v1373_v20 = vmul.f32 %v1371_v40, %v3478_v17  ;;  %s4293_s16 = sld [smem:[#allocation12 + $0x18]] }
 0x260   : > { %v4202_v9 = vadd.f32 %v1350_v63, %v4099_v15  ;;  %v4205_v10 = vadd.f32 %v1351_v31, %v4101_v51  ;;  %v1415_v24 = vpop.permute.xlu1 %1414  ;;  %v1413_v12 = vpop.permute.xlu0 %1412  ;;  %v1356_v51 = vmul.f32 %v1355_v35, %v3390_v53  ;;  %v1377_v63 = vstv %s4225_s23  ;;  %s5127_s23 = sld [smem:[#allocation23_spill]] }
 0x261   : > { %v1416_v23 = vsel %vm648_vm4, %v1413_v12, %v1415_v24  ;;  %v1417_v15 = vsel %vm648_vm4, %v1415_v24, %v1413_v12  ;;  %v1375_v42 = vadd.f32 %v1373_v20, %v1369_v62  ;;  %v1378_v24 = vmul.f32 %v1377_v63, %v3502_v6 }
 0x262   : > { %v1420_v41 = vmul.f32 %v1419_v49, %v1416_v23  ;;  %v1421_v47 = vmul.f32 %v1419_v49, %v1417_v15  ;;  %1768 = vrot.lane.b32.xlu1 %v3517_v11, %s5093_s19  ;;  %v1362_v30 = vadd.f32 %v1360_v44, %v1356_v51  ;;  %v1379_v12 = vmul.f32 %v1377_v63, %v3500_v43 }
 0x263   : > { %1766 = vrot.lane.b32.xlu0 %v3519_v2, %s5093_s19  ;;  %v1467_v15 = vstv %s4238_s6  ;;  %s5128_s6 = sld [smem:[#allocation28_spill]] }
 0x264   : > { %v1422_v4 = vadd.f32 %v1420_v41, %v1410_v0  ;;  %v1423_v60 = vadd.f32 %v1421_v47, %v1411_v57  ;;  %v1427_v37 = vpop.permute.xlu1 %1426  ;;  %v1425_v32 = vpop.permute.xlu0 %1424  ;;  %v1368_v25 = vadd.f32 %v1366_v14, %v1362_v30  ;;  %v1381_v0 = vadd.f32 %v1379_v12, %v1375_v42 }
 0x265   : > { %v1428_v53 = vsel %vm648_vm4, %v1425_v32, %v1427_v37  ;;  %v1429_v34 = vsel %vm648_vm4, %v1427_v37, %v1425_v32  ;;  %v1479_v37 = vstv %s4250_s0  ;;  %v1389_v32 = vstv %s4253_s25  ;;  %s1796_s0 = sld [smem:[#allocation2]] }
 0x266   : > { %v1432_v3 = vmul.f32 %v1431_v52, %v1428_v53  ;;  %v1433_v5 = vmul.f32 %v1431_v52, %v1429_v34  ;;  %1780 = vrot.lane.b32.xlu1 %v3525_v7, %s5093_s19  ;;  %v1374_v26 = vadd.f32 %v1372_v38, %v1368_v25  ;;  %v1384_v52 = vmul.f32 %v1383_v46, %v3511_v45  ;;  %s2100_s25 = sshll.u32 %s5127_s23, 8 }
 0x267   : > { %1778 = vrot.lane.b32.xlu0 %v3527_v59, %s5093_s19  ;;  %v1391_v14 = vmul.f32 %v1389_v32, %v3517_v11  ;;  %s4354_s19 = sld [smem:[#allocation12 + $0x21]] }
 0x268   : > { %v1434_v21 = vadd.f32 %v1432_v3, %v1422_v4  ;;  %v1435_v19 = vadd.f32 %v1433_v5, %v1423_v60  ;;  %v1439_v55 = vpop.permute.xlu1 %1438  ;;  %v1437_v28 = vpop.permute.xlu0 %1436  ;;  %v1380_v57 = vadd.f32 %v1378_v24, %v1374_v26  ;;  %v1385_v4 = vmul.f32 %v1383_v46, %v3509_v39 }
 0x269   : > { %v1440_v8 = vsel %vm648_vm4, %v1437_v28, %v1439_v55  ;;  %v1441_v29 = vsel %vm648_vm4, %v1439_v55, %v1437_v28  ;;  %v1390_v39 = vmul.f32 %v1389_v32, %v3519_v2  ;;  %v1507_v26 = vstv %s4283_s22 }
 0x26a   : > { %v1444_v1 = vmul.f32 %v1443_v27, %v1440_v8  ;;  %v1445_v13 = vmul.f32 %v1443_v27, %v1441_v29  ;;  %v1387_v33 = vadd.f32 %v1385_v4, %v1381_v0  ;;  %v1386_v30 = vadd.f32 %v1384_v52, %v1380_v57 }
 0x26c   : > { %v1446_v50 = vadd.f32 %v1444_v1, %v1434_v21  ;;  %v1447_v35 = vadd.f32 %v1445_v13, %v1435_v19  ;;  %v1451_v16 = vpop.permute.xlu1 %1450  ;;  %v1449_v48 = vpop.permute.xlu0 %1448  ;;  %v1395_v21 = vstv %s4263_s27  ;;  %v1491_v19 = vstv %s4265_s30  ;;  %s5132_s27 = sshll.u32 %s5128_s6, 4  ;;  %s5133_s30 = sld [smem:[#allocation26_spill]] }
 0x26d   : > { %v1452_v36 = vsel %vm648_vm4, %v1449_v48, %v1451_v16  ;;  %v1453_v31 = vsel %vm648_vm4, %v1451_v16, %v1449_v48  ;;  %v1393_v40 = vadd.f32 %v1391_v14, %v1387_v33  ;;  %v1392_v29 = vadd.f32 %v1390_v39, %v1386_v30  ;;  %s320_s22 = scalar_lea.vmem [#allocation13], %s5132_s27 }
 0x26e   : > { %v1456_v17 = vmul.f32 %v1455_v56, %v1452_v36  ;;  %v1457_v49 = vmul.f32 %v1455_v56, %v1453_v31  ;;  %v1396_v11 = vmul.f32 %v1395_v21, %v3527_v59  ;;  %v1397_v25 = vmul.f32 %v1395_v21, %v3525_v7  ;;  %v5122_v31 = vld [vmem:[#allocation90_spill] sm:$0xff] }
 0x270   : > { %v1458_v61 = vadd.f32 %v1456_v17, %v1446_v50  ;;  %v1459_v44 = vadd.f32 %v1457_v49, %v1447_v35  ;;  %v1463_v23 = vpop.permute.xlu1 %1462  ;;  %v1461_v51 = vpop.permute.xlu0 %1460  ;;  %v1399_v38 = vadd.f32 %v1397_v25, %v1393_v40  ;;  %v1398_v20 = vadd.f32 %v1396_v11, %v1392_v29 }
 0x271   : > { %v1464_v41 = vsel %vm648_vm4, %v1461_v51, %v1463_v23  ;;  %v1465_v43 = vsel %vm648_vm4, %v1463_v23, %v1461_v51  ;;  %v1517_v49 = vstv %s4285_s11  ;;  %v1529_v51 = vstv %s4293_s16  ;;  %s1817_s11 = sshll.u32 %s320_s22, 4  ;;  %s4595_s11 = int_to_ptr.vmem [resolvable:$true] %s1817_s11 }
 0x272   : > { %v1468_v6 = vmul.f32 %v1467_v15, %v1464_v41  ;;  %v1469_v47 = vmul.f32 %v1467_v15, %v1465_v43  ;;  %v1401_v7 = vadd.f32 %v1399_v38, %v4205_v10  ;;  %v1400_v63 = vadd.f32 %v1398_v20, %v4202_v9  ;;  %p5135_p7 = scmp.ne.s32.totalorder %s5133_s30, 0 }
 0x273   : > { %v1541_v38 = vstv %s4354_s19  ;;  %v1627_v20 = vstv %s4356_s26  ;;  %s1803_s26 = scalar_lea.sflag [#allocation5], %s5128_s6 }
 0x274   : > { %v1475_v60 = vpop.permute.xlu1 %1474  ;;  %v1470_v18 = vadd.f32 %v1468_v6, %v1458_v61  ;;  %v1471_v53 = vadd.f32 %v1469_v47, %v1459_v44  ;;  %v1473_v34 = vpop.permute.xlu0 %1472 }
 0x275   : > { %v1476_v3 = vsel %vm648_vm4, %v1473_v34, %v1475_v60  ;;  %v1477_v5 = vsel %vm648_vm4, %v1475_v60, %v1473_v34 }
 0x276   : > { %v1480_v27 = vmul.f32 %v1479_v37, %v1476_v3  ;;  %v1481_v45 = vmul.f32 %v1479_v37, %v1477_v5 }
 0x278   : > { %v1487_v22 = vpop.permute.xlu1 %1486  ;;  %v1482_v55 = vadd.f32 %v1480_v27, %v1470_v18  ;;  %v1483_v28 = vadd.f32 %v1481_v45, %v1471_v53  ;;  %v1485_v8 = vpop.permute.xlu0 %1484 }
 0x279   : > { %v1488_v62 = vsel %vm648_vm4, %v1485_v8, %v1487_v22  ;;  %v1489_v2 = vsel %vm648_vm4, %v1487_v22, %v1485_v8 }
 0x27a   : > { %v1492_v1 = vmul.f32 %v1491_v19, %v1488_v62  ;;  %v1493_v13 = vmul.f32 %v1491_v19, %v1489_v2 }
 0x27c   : > { %v1503_v56 = vpop.permute.xlu1 %1502  ;;  %v1494_v50 = vadd.f32 %v1492_v1, %v1482_v55  ;;  %v1495_v35 = vadd.f32 %v1493_v13, %v1483_v28  ;;  %v1501_v16 = vpop.permute.xlu0 %1500  ;;  %v1605_v1 = vstv %s4350_s8 }
 0x27d   : > { %v1504_v48 = vsel %vm716_vm5, %v1501_v16, %v1503_v56  ;;  %v1505_v59 = vsel %vm716_vm5, %v1503_v56, %v1501_v16  ;;  %v1615_v56 = vstv %s4352_s29  ;;  %v1553_v16 = vstv %s4362_s28  ;;  %s5134_s29 = sld [smem:[#allocation106_spill]] }
 0x27e   : > { %v1496_v36 = vmul.f32 %v1494_v50, %v2949_v54  ;;  %v1497_v42 = vmul.f32 %v1495_v35, %v5122_v31  ;;  %v1508_v9 = vmul.f32 %v1507_v26, %v1504_v48  ;;  %v1509_v23 = vmul.f32 %v1507_v26, %v1505_v59 }
 0x27f   : > { %v1703_v50 = vstv %s4358_s5  ;;  %v1713_v35 = vstv %s4360_s3  ;;  %v1639_v48 = vstv %s4364_s10  ;;  %v1725_v59 = vstv %s4366_s13  ;;  %s2301_s5 = scalar_lea.vmem %s4595_s11, 256  ;;  %s2394_s3 = smov [#allocation13]  }
 0x280   : > { %v1513_v17 = vpop.permute.xlu1 %1512  ;;  %v4305_v24 = vadd.f32 %v1496_v36, %v1400_v63  ;;  %v4307_v12 = vadd.f32 %v1497_v42, %v1401_v7  ;;  %v1511_v61 = vpop.permute.xlu0 %1510  ;;  %v1565_v36 = vstv %s4368_s18  ;;  %v1651_v31 = vstv %s4370_s24  ;;  %p2302_p13 = scmp.ne.s32.totalorder %s4595_s11, %s2301_s5  ;;  %s2305_s28 = sshll.u32 %s2394_s3, 4  ;;  %s2306_s28 = int_to_ptr.vmem [resolvable:$false] %s2305_s28 }
 0x281   : > { %v1514_v44 = vsel %vm716_vm5, %v1511_v61, %v1513_v17  ;;  %v1515_v10 = vsel %vm716_vm5, %v1513_v17, %v1511_v61  ;;  %v1577_v61 = vstv %s4376_s21  ;;  %s2307_s10 = scalar_lea.vmem %s2306_s28, 512  ;;  %p2308_p0 = scmp.lt.s32.totalorder %s4595_s11, %s2306_s28 }
 0x282   : > { %v1518_v15 = vmul.f32 %v1517_v49, %v1514_v44  ;;  %v1519_v54 = vmul.f32 %v1517_v49, %v1515_v10  ;;  %v1737_v49 = vstv %s4374_s7  ;;  %v1663_v10 = vstv %s4380_s1  ;;  %p2303_p8 = pnand %p2302_p13, %p5135_p7  ;;  %p2309_p2 = scmp.lt.s32.totalorder %s2307_s10, %s2301_s5 }
 0x283   : > { %s4593_s19 = scalar_lea.hbm %s5134_s29, %s2100_s25 }
 0x284   : > { %v1525_v46 = vpop.permute.xlu1 %1524  ;;  %v1520_v0 = vadd.f32 %v1518_v15, %v1508_v9  ;;  %v1521_v57 = vadd.f32 %v1519_v54, %v1509_v23  ;;  %v1523_v41 = vpop.permute.xlu0 %1522  ;;  %v1749_v9 = vstv %s4382_s12  ;;  %v1589_v23 = vstv %s4384_s15  ;;  %p2304_p12 = pneg %p2303_p8  ;;  %p2310_p5 = por %p2309_p2, %p2308_p0 }
 0x285   : > { %v1526_v43 = vsel %vm716_vm5, %v1523_v41, %v1525_v46  ;;  %v1527_v6 = vsel %vm716_vm5, %v1525_v46, %v1523_v41  ;;  %v1675_v15 = vstv %s4386_s14 }
 0x286   : > { %v1530_v47 = vmul.f32 %v1529_v51, %v1526_v43  ;;  %v1531_v52 = vmul.f32 %v1529_v51, %v1527_v6  ;;  %p2311_p1 = pnand %p2310_p5, %p2304_p12 }
 0x288   : > { %v1601_v4 = vpop.permute.xlu1 %1600  ;;  %v4318_v60 = vadd.f32 %v1530_v47, %v1520_v0  ;;  %v4320_v37 = vadd.f32 %v1531_v52, %v1521_v57  ;;  %v1599_v32 = vpop.permute.xlu0 %1598 }
 0x289   : > { %v4324_v18 = vsel %vm784_vm6, %v1599_v32, %v1601_v4  ;;  %v4328_v53 = vsel %vm784_vm6, %v1601_v4, %v1599_v32 }
 0x28a   : > { %v1606_v52 = vmul.f32 %v1605_v1, %v4324_v18  ;;  %v1607_v4 = vmul.f32 %v1605_v1, %v4328_v53 }
 0x28c   : > { %v1611_v34 = vpop.permute.xlu1 %1610  ;;  %v1609_v33 = vpop.permute.xlu0 %1608 }
 0x28d   : > { %v1612_v7 = vsel %vm784_vm6, %v1609_v33, %v1611_v34  ;;  %v1613_v63 = vsel %vm784_vm6, %v1611_v34, %v1609_v33  ;;  %v1761_v34 = vstv %s4393_s20  ;;  %v1687_v33 = vstv %s4395_s9 }
 0x28e   : > { %v1616_v54 = vmul.f32 %v1615_v56, %v1612_v7  ;;  %v1617_v46 = vmul.f32 %v1615_v56, %v1613_v63 }
 0x290   : > { %v1537_v30 = vpop.permute.xlu1 %1536  ;;  %v1535_v3 = vpop.permute.xlu0 %1534  ;;  %v1618_v56 = vadd.f32 %v1616_v54, %v1606_v52 }
 0x291   : > { %v1538_v26 = vsel %vm716_vm5, %v1535_v3, %v1537_v30  ;;  %v1539_v17 = vsel %vm716_vm5, %v1537_v30, %v1535_v3 }
 0x292   : > { %v1542_v57 = vmul.f32 %v1541_v38, %v1538_v26  ;;  %v1543_v41 = vmul.f32 %v1541_v38, %v1539_v17  ;;  %v1619_v38 = vadd.f32 %v1617_v46, %v1607_v4 }
 0x294   : > { %v4330_v5 = vpop.permute.xlu1 %1622  ;;  %v4332_v27 = vpop.permute.xlu0 %1620  ;;  %v1544_v7 = vadd.f32 %v1542_v57, %v4318_v60  ;;  %v1545_v18 = vadd.f32 %v1543_v41, %v4320_v37 }
 0x295   : > { %v1624_v51 = vsel %vm784_vm6, %v4332_v27, %v4330_v5  ;;  %v1625_v0 = vsel %vm784_vm6, %v4330_v5, %v4332_v27 }
 0x296   : > { %v1628_v30 = vmul.f32 %v1627_v20, %v1624_v51  ;;  %v1629_v3 = vmul.f32 %v1627_v20, %v1625_v0 }
 0x298   : > { %v4334_v45 = vpop.permute.xlu1 %1698  ;;  %v4336_v39 = vpop.permute.xlu0 %1696  ;;  %v1630_v63 = vadd.f32 %v1628_v30, %v1618_v56  ;;  %v1631_v26 = vadd.f32 %v1629_v3, %v1619_v38 }
 0x299   : > { %v1701_v60 = vsel %vm852_vm7, %v4334_v45, %v4336_v39 }
 0x29c   : > { %v4338_v14 = vpop.permute.xlu1 %1708 }
 0x29d   : > { %v4340_v22 = vpop.permute.xlu0 %1706 }
 0x29e   : > { %v1711_v0 = vsel %vm852_vm7, %v4338_v14, %v4340_v22 }
 0x2a0   : > { %v1549_v21 = vpop.permute.xlu1 %1548 }
 0x2a1   : > { %v1547_v19 = vpop.permute.xlu0 %1546 }
 0x2a2   : > { %v1550_v43 = vsel %vm716_vm5, %v1547_v19, %v1549_v21  ;;  %v1551_v6 = vsel %vm716_vm5, %v1549_v21, %v1547_v19 }
 0x2a3   : > { %v1554_v21 = vmul.f32 %v1553_v16, %v1550_v43  ;;  %v1555_v19 = vmul.f32 %v1553_v16, %v1551_v6 }
 0x2a4   : > { %v4342_v55 = vpop.permute.xlu1 %1634 }
 0x2a5   : > { %v4344_v28 = vpop.permute.xlu0 %1632  ;;  %v1557_v54 = vadd.f32 %v1555_v19, %v1545_v18 }
 0x2a6   : > { %v1637_v17 = vsel %vm784_vm6, %v4342_v55, %v4344_v28 }
 0x2a8   : > { %v4346_v40 = vpop.permute.xlu1 %1720 }
 0x2a9   : > { %v4348_v8 = vpop.permute.xlu0 %1718 }
 0x2aa   : > { %v1723_v6 = vsel %vm852_vm7, %v4346_v40, %v4348_v8 }
 0x2ac   : > { %v1561_v29 = vpop.permute.xlu1 %1560 }
 0x2ad   : > { %v1559_v62 = vpop.permute.xlu0 %1558 }
 0x2ae   : > { %v1562_v5 = vsel %vm716_vm5, %v1559_v62, %v1561_v29  ;;  %v1563_v27 = vsel %vm716_vm5, %v1561_v29, %v1559_v62  ;;  %v1700_v29 = vsel %vm852_vm7, %v4336_v39, %v4334_v45  ;;  %v1705_v39 = vmul.f32 %v1703_v50, %v1701_v60  ;;  %v5124_v60 = vld [vmem:[#allocation94_spill] sm:$0xff] }
 0x2af   : > { %v1566_v62 = vmul.f32 %v1565_v36, %v1562_v5  ;;  %v1567_v37 = vmul.f32 %v1565_v36, %v1563_v27  ;;  %v1704_v45 = vmul.f32 %v1703_v50, %v1700_v29  ;;  %v1710_v36 = vsel %vm852_vm7, %v4340_v22, %v4338_v14 }
 0x2b0   : > { %v4372_v2 = vpop.permute.xlu1 %1646  ;;  %v1722_v50 = vsel %vm852_vm7, %v4348_v8, %v4346_v40  ;;  %v1714_v3 = vmul.f32 %v1713_v35, %v1710_v36  ;;  %v1715_v5 = vmul.f32 %v1713_v35, %v1711_v0 }
 0x2b1   : > { %v4378_v11 = vpop.permute.xlu0 %1644  ;;  %v1569_v43 = vadd.f32 %v1567_v37, %v1557_v54  ;;  %v1726_v35 = vmul.f32 %v1725_v59, %v1722_v50 }
 0x2b2   : > { %v1648_v40 = vsel %vm784_vm6, %v4378_v11, %v4372_v2  ;;  %v1649_v8 = vsel %vm784_vm6, %v4372_v2, %v4378_v11 }
 0x2b3   : > { %v1652_v11 = vmul.f32 %v1651_v31, %v1648_v40 }
 0x2b4   : > { %v4388_v25 = vpop.permute.xlu1 %1732 }
 0x2b5   : > { %v4391_v13 = vpop.permute.xlu0 %1730 }
 0x2b6   : > { %v1735_v37 = vsel %vm852_vm7, %v4388_v25, %v4391_v13 }
 0x2b8   : > { %v1573_v42 = vpop.permute.xlu1 %1572 }
 0x2b9   : > { %v1571_v44 = vpop.permute.xlu0 %1570 }
 0x2ba   : > { %v1574_v53 = vsel %vm716_vm5, %v1571_v44, %v1573_v42  ;;  %v1575_v1 = vsel %vm716_vm5, %v1573_v42, %v1571_v44  ;;  %v1636_v42 = vsel %vm784_vm6, %v4344_v28, %v4342_v55  ;;  %v1556_v44 = vadd.f32 %v1554_v21, %v1544_v7 }
 0x2bb   : > { %v1578_v46 = vmul.f32 %v1577_v61, %v1574_v53  ;;  %v1579_v51 = vmul.f32 %v1577_v61, %v1575_v1  ;;  %v1640_v55 = vmul.f32 %v1639_v48, %v1636_v42  ;;  %v1641_v28 = vmul.f32 %v1639_v48, %v1637_v17  ;;  %v5123_v1 = vld [vmem:[#allocation93_spill] sm:$0xff] }
 0x2bc   : > { %v4433_v47 = vpop.permute.xlu1 %1658  ;;  %v1568_v41 = vadd.f32 %v1566_v62, %v1556_v44  ;;  %v1727_v7 = vmul.f32 %v1725_v59, %v1723_v6  ;;  %v1653_v53 = vmul.f32 %v1651_v31, %v1649_v8  ;;  %v1734_v59 = vsel %vm852_vm7, %v4391_v13, %v4388_v25 }
 0x2bd   : > { %v1657_v32 = vpop.permute.xlu0 %1656  ;;  %v1581_v52 = vadd.f32 %v1579_v51, %v1569_v43  ;;  %v1642_v56 = vadd.f32 %v1640_v55, %v1630_v63  ;;  %v1643_v38 = vadd.f32 %v1641_v28, %v1631_v26  ;;  %v1716_v17 = vadd.f32 %v1714_v3, %v1704_v45 }
 0x2be   : > { %v1580_v48 = vadd.f32 %v1578_v46, %v1568_v41  ;;  %v1660_v18 = vsel %vm784_vm6, %v1657_v32, %v4433_v47  ;;  %v1661_v2 = vsel %vm784_vm6, %v4433_v47, %v1657_v32  ;;  %v1717_v44 = vadd.f32 %v1715_v5, %v1705_v39 }
 0x2bf   : > { %v1664_v63 = vmul.f32 %v1663_v10, %v1660_v18  ;;  %v1665_v26 = vmul.f32 %v1663_v10, %v1661_v2  ;;  %v1654_v51 = vadd.f32 %v1652_v11, %v1642_v56  ;;  %v1655_v36 = vadd.f32 %v1653_v53, %v1643_v38 }
 0x2c0   : > { %v4449_v20 = vpop.permute.xlu1 %1744  ;;  %v1729_v0 = vadd.f32 %v1727_v7, %v1717_v44  ;;  %v1738_v45 = vmul.f32 %v1737_v49, %v1734_v59  ;;  %v1739_v39 = vmul.f32 %v1737_v49, %v1735_v37  ;;  %v1785_v11 = vstv %s4549_s4 }
 0x2c1   : > { %v1743_v16 = vpop.permute.xlu0 %1742  ;;  %v1666_v55 = vadd.f32 %v1664_v63, %v1654_v51 }
 0x2c2   : > { %v1746_v54 = vsel %vm852_vm7, %v1743_v16, %v4449_v20  ;;  %v1747_v46 = vsel %vm852_vm7, %v4449_v20, %v1743_v16  ;;  %v1667_v20 = vadd.f32 %v1665_v26, %v1655_v36  ;;  %v2197_v36 = vld [vmem:[%s5129_s17 + $0x8] sm:$0xff] }
 0x2c3   : > { %v1750_v16 = vmul.f32 %v1749_v9, %v1746_v54 }
 0x2c4   : > { %v1585_v57 = vpop.permute.xlu1 %1584 }
 0x2c5   : > { %v1583_v61 = vpop.permute.xlu0 %1582 }
 0x2c6   : > { %v1586_v14 = vsel %vm716_vm5, %v1583_v61, %v1585_v57  ;;  %v1587_v22 = vsel %vm716_vm5, %v1585_v57, %v1583_v61 }
 0x2c7   : > { %v1590_v4 = vmul.f32 %v1589_v23, %v1586_v14  ;;  %v1591_v30 = vmul.f32 %v1589_v23, %v1587_v22 }
 0x2c8   : > { %v1671_v27 = vpop.permute.xlu1 %1670 }
 0x2c9   : > { %v1592_v21 = vadd.f32 %v1590_v4, %v1580_v48  ;;  %v1593_v23 = vadd.f32 %v1591_v30, %v1581_v52  ;;  %v1669_v19 = vpop.permute.xlu0 %1668  ;;  %v1741_v48 = vadd.f32 %v1739_v39, %v1729_v0  ;;  %v1773_v4 = vstv %s4527_s2 }
 0x2ca   : > { %v1672_v47 = vsel %vm784_vm6, %v1669_v19, %v1671_v27  ;;  %v1673_v31 = vsel %vm784_vm6, %v1671_v27, %v1669_v19  ;;  %v5126_v19 = vld [vmem:[#allocation98_spill] sm:$0xff] }
 0x2cb   : > { %v1594_v29 = vmul.f32 %v1592_v21, %v5123_v1  ;;  %v1595_v62 = vmul.f32 %v1593_v23, %v5124_v60  ;;  %v1676_v10 = vmul.f32 %v1675_v15, %v1672_v47  ;;  %v5125_v21 = vld [vmem:[#allocation97_spill] sm:$0xff] }
 0x2cc   : > { %v1757_v32 = vpop.permute.xlu1 %1756 }
 0x2cd   : > { %v1596_v42 = vadd.f32 %v1594_v29, %v4305_v24  ;;  %v1597_v25 = vadd.f32 %v1595_v62, %v4307_v12  ;;  %v1755_v13 = vpop.permute.xlu0 %1754  ;;  %v1677_v24 = vmul.f32 %v1675_v15, %v1673_v31  ;;  %v1728_v12 = vadd.f32 %v1726_v35, %v1716_v17 }
 0x2ce   : > { %v1751_v15 = vmul.f32 %v1749_v9, %v1747_v46  ;;  %v1758_v41 = vsel %vm852_vm7, %v1755_v13, %v1757_v32  ;;  %v1759_v43 = vsel %vm852_vm7, %v1757_v32, %v1755_v13  ;;  %v1678_v50 = vadd.f32 %v1676_v10, %v1666_v55  ;;  %v5131_v13 = vld [vmem:[#allocation100_spill] sm:$0xff] }
 0x2cf   : > { %v1679_v6 = vadd.f32 %v1677_v24, %v1667_v20  ;;  %v1740_v9 = vadd.f32 %v1738_v45, %v1728_v12  ;;  %v1762_v30 = vmul.f32 %v1761_v34, %v1758_v41  ;;  %v1763_v3 = vmul.f32 %v1761_v34, %v1759_v43 }
 0x2d0   : > { %v1683_v57 = vpop.permute.xlu1 %1682  ;;  %v1753_v56 = vadd.f32 %v1751_v15, %v1741_v48  ;;  %v1797_v46 = vstv %s1796_s0 }
 0x2d1   : > { %v1681_v28 = vpop.permute.xlu0 %1680  ;;  %v1752_v27 = vadd.f32 %v1750_v16, %v1740_v9 }
 0x2d2   : > { %v1684_v49 = vsel %vm784_vm6, %v1681_v28, %v1683_v57  ;;  %v1685_v61 = vsel %vm784_vm6, %v1683_v57, %v1681_v28  ;;  %v1765_v53 = vadd.f32 %v1763_v3, %v1753_v56 }
 0x2d3   : > { %v1688_v14 = vmul.f32 %v1687_v33, %v1684_v49  ;;  %v1689_v22 = vmul.f32 %v1687_v33, %v1685_v61  ;;  %v1764_v34 = vadd.f32 %v1762_v30, %v1752_v27 }
 0x2d4   : > { %v1769_v52 = vpop.permute.xlu1 %1768 }
 0x2d5   : > { %v1690_v5 = vadd.f32 %v1688_v14, %v1678_v50  ;;  %v1691_v40 = vadd.f32 %v1689_v22, %v1679_v6  ;;  %v1767_v8 = vpop.permute.xlu0 %1766 }
 0x2d6   : > { %v1770_v38 = vsel %vm852_vm7, %v1767_v8, %v1769_v52  ;;  %v1771_v33 = vsel %vm852_vm7, %v1769_v52, %v1767_v8 }
 0x2d7   : > { %v1692_v23 = vmul.f32 %v1690_v5, %v5125_v21  ;;  %v1693_v35 = vmul.f32 %v1691_v40, %v5126_v19  ;;  %v1774_v7 = vmul.f32 %v1773_v4, %v1770_v38  ;;  %v1775_v18 = vmul.f32 %v1773_v4, %v1771_v33 }
 0x2d8   : > { %v1781_v2 = vpop.permute.xlu1 %1780 }
 0x2d9   : > { %v1694_v1 = vadd.f32 %v1692_v23, %v1596_v42  ;;  %v1695_v29 = vadd.f32 %v1693_v35, %v1597_v25  ;;  %v1779_v60 = vpop.permute.xlu0 %1778  ;;  %v1776_v37 = vadd.f32 %v1774_v7, %v1764_v34  ;;  %v1777_v47 = vadd.f32 %v1775_v18, %v1765_v53  ;;  %v5130_v42 = vld [vmem:[#allocation99_spill] sm:$0xff] }
 0x2da   : > { %v1782_v62 = vsel %vm852_vm7, %v1779_v60, %v1781_v2  ;;  %v1783_v59 = vsel %vm852_vm7, %v1781_v2, %v1779_v60 }
 0x2db   : > { %v1786_v31 = vmul.f32 %v1785_v11, %v1782_v62  ;;  %v1787_v32 = vmul.f32 %v1785_v11, %v1783_v59 }
 0x2dd   : > { %v1788_v63 = vadd.f32 %v1786_v31, %v1776_v37  ;;  %v1789_v26 = vadd.f32 %v1787_v32, %v1777_v47 }
 0x2df   : > { %v1790_v25 = vmul.f32 %v1788_v63, %v5130_v42  ;;  %v1791_v17 = vmul.f32 %v1789_v26, %v5131_v13 }
 0x2e1   : > { %v1792_v44 = vadd.f32 %v1790_v25, %v1694_v1  ;;  %v1793_v54 = vadd.f32 %v1791_v17, %v1695_v29 }
 0x2e3   : > { %v1794_v51 = vadd.f32 %v2196_v58, %v1792_v44  ;;  %v1795_v10 = vadd.f32 %v2197_v36, %v1793_v54 }
 0x2e5   : > { %v1798_v24 = vadd.f32 %v1797_v46, %v1794_v51  ;;  %v1799_v12 = vadd.f32 %v1797_v46, %v1795_v10 }
 0x2e7   : > { %1800 = vst [vmem:[%s320_s22] sm:$0xff] %v1798_v24  ;;  %1801 = vst [vmem:[%s320_s22 + $0x8] sm:$0xff] %v1799_v12 }
 0x2e8   : > { %2314 = shalt.err (!%p2311_p1)
}
 0x2e9   : > { %s2315_s13 = scalar_lea.hbm %s4593_s19, 256  ;;  %s2319_s7 = scalar_lea.hbm %s5134_s29, 512 }
 0x2ea   : > { %p2316_p6 = scmp.ne.s32.totalorder %s4593_s19, %s2315_s13  ;;  %p2320_p4 = scmp.lt.u32.totalorder %s4593_s19, %s5134_s29 }
 0x2eb   : > { %p2321_p10 = scmp.lt.u32.totalorder %s2319_s7, %s2315_s13  ;;  %p2323_p13 = scmp.lt.u32.totalorder %s2315_s13, %s4593_s19 }
 0x2ec   : > { %p2317_p3 = pnand %p2316_p6, %p5135_p7 }
 0x2ed   : > { %p2322_p11 = por %p2321_p10, %p2320_p4 }
 0x2ee   : > { %p2318_p9 = pneg %p2317_p3 }
 0x2ef   : > { %p2324_p8 = por %p2323_p13, %p2322_p11 }
 0x2f1   : > { %p2325_p12 = pnand %p2324_p8, %p2318_p9 }
 0x2f3   : > { %2328 = shalt.err (!%p2325_p12)
}
 0x2f4   : > { %2119 = dma.vmem_to_hbm [thread:$0]  (%p5135_p7), %s4595_s11, 256, %s4593_s19, %s1803_s26  }
 0x2f5 PF: > { %s5136_s12 = sld [smem:[#allocation19_spill]]  ;;  %s5137_s15 = sld [smem:[#allocation27_spill]] }
 0x2f6   : > { %s5138_s14 = sld [smem:[#allocation22_spill]] }
 0x2fb   : > { %s1829_s20 = sand.u32 1, %s5136_s12   ;;  %p5139_p0 = scmp.ne.s32.totalorder %s5137_s15, 0 }
 0x2fc   : > { %p5140_p2 = scmp.ge.s32.totalorder %s5138_s14, 2  ;;  %s1830_s9 = scalar_lea.sflag [#allocation5], %s1829_s20 }
 0x2fe   : > { %p2139_p5 = pnand %p5140_p2, %p5139_p0 }
 0x300   : > { %2362 = dma.done.wait (!%p2139_p5), %s1830_s9, 256  }
 0x301   : > { %2364 = vsyncadd (!%p2139_p5), %s1830_s9, 4294967040  ;;  %s5141_s26 = sld [smem:[#allocation24_spill]]  ;;  %s5142_s23 = sld [smem:[#allocation20_spill]] }
 0x302   : > { %s5143_s24 = sld [smem:[#allocation21_spill]]  ;;  %s5144_s25 = sld [smem:[#allocation25_spill]] }
 0x307   : > { %p23_p1 = scmp.ge.s32.totalorder %s5141_s26, 4  }
 0x309   :  { %25 = sbr.rel (!%p23_p1) target bundleno = 16 (0x10), region = 113 }
 0x310   :  { %1835 = vsyncpa [#allocation4], 1 }
 0x311   :  { %1837 = vsyncpa [#allocation4 + $0x1], 1 }
 0x312   :  { %1838 = vsyncpa [#allocation8], 1 }
 0x313   :  { %1839 = vsyncpa [#allocation5], 1 }
 0x314   :  { %1841 = vsyncpa [#allocation5 + $0x1], 1 }
 0x315   :  { %1842 = vsyncpa [#allocation6], 1 }
 0x316   :  { %1844 = vsyncpa [#allocation6 + $0x1], 1 }
 0x317   :  { %1845 = vsyncpa [#allocation11], 1 }

</bundles_post_ra>
